<compile_context>
chip_gen: v7x
topology: tpu7x:2x2x1
jax: 0.10.0
libtpu: 0.0.40
codegen_flags: <defaults>
</compile_context>

<pallas_src>
import numpy as np
import jax
import jax.numpy as jnp
from jax import lax
from jax.experimental import pallas as pl
from jax.experimental.pallas import tpu as pltpu  # noqa: F401  (TPU backend)


# Parcel counts of the A424 atlas and their lane-padded (multiple-of-128) sizes.
K_R, K_L, K_SUB = 180, 180, 64
K_R_PAD, K_L_PAD, K_SUB_PAD = 256, 256, 128
_NEG = -1e30   # pre-softmax fill for padded parcel columns -> softmax exactly 0


# ----------------------------- fused Pallas kernel ------------------------------

def _fused_refine_kernel(ts_ref, a_r_ref, a_l_ref, a_s_ref,
                         out_r_ref, out_l_ref, out_s_ref,
                         soft_r_ref, soft_l_ref):
    # ts_ref : (B, T, V_masked)  masked timeseries, voxel order = [R | L | sub]
    # a_*    : lane-padded assignment matrices (V_g, K_g_pad)
    # out_*  : (B, T, K_g_pad)   standardized parcel timeseries per group
    # soft_* : (V_g, K_g_pad)    softmaxed assignment (returned by the module)
    B, T, _ = ts_ref.shape
    v_r = a_r_ref.shape[0]
    v_l = a_l_ref.shape[0]

    # ---------------- weight prep (batch invariant, done once) ----------------
    def _softmax_rows(a):                        # softmax over parcel axis (dim=1)
        m = jnp.max(a, axis=1, keepdims=True)
        e = jnp.exp(a - m)
        return e / jnp.sum(e, axis=1, keepdims=True)

    soft_r = _softmax_rows(a_r_ref[...])
    soft_l = _softmax_rows(a_l_ref[...])
    soft_r_ref[...] = soft_r
    soft_l_ref[...] = soft_l

    def _col_normalize(w):
        # hoisted column-sum normalization; padded / empty parcels have zero
        # column sum -> guard so the weight stays 0 instead of inf/NaN.
        colsum = jnp.sum(w, axis=0, keepdims=True)
        inv = pl.reciprocal(jnp.maximum(colsum, 1e-12), approx=True)
        return w * inv

    w_r = _col_normalize(soft_r)
    w_l = _col_normalize(soft_l)
    w_s = _col_normalize(a_s_ref[...])

    # -------- voxel -> parcel matmuls, (B, T) folded into the MXU M dim --------
    ts = ts_ref[...].reshape(B * T, ts_ref.shape[2])
    p_r = jnp.dot(ts[:, :v_r], w_r, preferred_element_type=jnp.float32)
    p_l = jnp.dot(ts[:, v_r:v_r + v_l], w_l, preferred_element_type=jnp.float32)
    p_s = jnp.dot(ts[:, v_r + v_l:], w_s, preferred_element_type=jnp.float32)

    # ------------- temporal standardization epilogue (unbiased std) -----------
    def _standardize(p, o_ref):
        x = p.reshape(B, T, p.shape[-1])
        mean = jnp.mean(x, axis=1, keepdims=True)
        d = x - mean
        var = jnp.sum(d * d, axis=1, keepdims=True) * (1.0 / (T - 1))
        # zero-variance columns (the lane padding) -> 0 instead of NaN; real
        # parcels with random data always have var > 0 (matches torch there).
        inv_std = jnp.where(var > 0, lax.rsqrt(var), 0.0)
        o_ref[...] = d * inv_std

    _standardize(p_r, out_r_ref)
    _standardize(p_l, out_l_ref)
    _standardize(p_s, out_s_ref)


def fused_refine_blm(ts_masked, assign_r_pad, assign_l_pad, assign_sub_pad):
    B, T, _ = ts_masked.shape
    v_r = assign_r_pad.shape[0]
    v_l = assign_l_pad.shape[0]
    out_shape = (
        jax.ShapeDtypeStruct((B, T, K_R_PAD), jnp.float32),
        jax.ShapeDtypeStruct((B, T, K_L_PAD), jnp.float32),
        jax.ShapeDtypeStruct((B, T, K_SUB_PAD), jnp.float32),
        jax.ShapeDtypeStruct((v_r, K_R_PAD), jnp.float32),
        jax.ShapeDtypeStruct((v_l, K_L_PAD), jnp.float32),
    )
    # Single kernel invocation: everything fits comfortably in VMEM (~1.3 MiB),
    # so no grid / pipelining is needed at these sizes.
    return pl.pallas_call(_fused_refine_kernel, out_shape=out_shape)(
        ts_masked, assign_r_pad, assign_l_pad, assign_sub_pad)


# ----------------------------- parameter construction ---------------------------

def make_synthetic_labels():
    """Deterministic stand-in for A424.dlabel.nii: every parcel (1..424) gets
    at least one voxel; a few label-0 (unused) voxels are mixed in."""
    lab_r = np.tile(np.arange(1, 181), 2)[:256]          # 256 right-cortex voxels
    lab_l = np.tile(np.arange(181, 361), 2)[:256]        # 256 left-cortex voxels
    lab_sub = np.tile(np.arange(361, 425), 2)[:128]      # 128 subcortical voxels
    lab_zero = np.zeros(60, dtype=np.int64)              # 60 voxels outside parcels
    labels = np.concatenate([lab_r, lab_l, lab_sub, lab_zero]).astype(np.int64)
    perm = np.random.RandomState(0).permutation(labels.shape[0])
    return labels[perm]


def build_params(labels):
    ind_r = (labels >= 1) & (labels <= 180)
    ind_l = (labels >= 181) & (labels <= 360)
    ind_sub = labels > 360

    assign_r = np.stack([labels[ind_r] == k for k in range(1, 181)], axis=1)
    assign_l = np.stack([labels[ind_l] == k for k in range(181, 361)], axis=1)
    assign_sub = np.stack([labels[ind_sub] == k for k in range(361, 425)], axis=1)

    assign_r = (10.0 * assign_r - 10.0 * ~assign_r).astype(np.float32)
    assign_l = (10.0 * assign_l - 10.0 * ~assign_l).astype(np.float32)
    assign_sub = assign_sub.astype(np.float32)

    def _pad_neg(a, k_pad):      # pre-softmax: padded columns get -1e30 -> softmax 0
        out = np.full((a.shape[0], k_pad), _NEG, dtype=np.float32)
        out[:, :a.shape[1]] = a
        return out

    def _pad_zero(a, k_pad):     # hard assignment: padded columns get 0
        out = np.zeros((a.shape[0], k_pad), dtype=np.float32)
        out[:, :a.shape[1]] = a
        return out

    idx_r = np.where(ind_r)[0]
    idx_l = np.where(ind_l)[0]
    idx_sub = np.where(ind_sub)[0]

    return dict(
        assign_R_pad=jnp.asarray(_pad_neg(assign_r, K_R_PAD)),
        assign_L_pad=jnp.asarray(_pad_neg(assign_l, K_L_PAD)),
        assign_sub_pad=jnp.asarray(_pad_zero(assign_sub, K_SUB_PAD)),
        idx_all=jnp.asarray(np.concatenate([idx_r, idx_l, idx_sub]),
                            dtype=jnp.int32),
    )


# ----------------------------- refineBLM forward --------------------------------

def refine_blm_forward(params, timeseries):
    """timeseries: (B, T, V_total) float32.
    Returns (blm_out, soft_L, soft_R) with BLM treated as identity."""
    # single permutation gather of the masked voxels (ordering = [R | L | sub])
    ts_masked = jnp.take(timeseries, params["idx_all"], axis=2)

    out_r, out_l, out_s, soft_r_pad, soft_l_pad = fused_refine_blm(
        ts_masked, params["assign_R_pad"], params["assign_L_pad"],
        params["assign_sub_pad"])

    soft_R = soft_r_pad[:, :K_R]
    soft_L = soft_l_pad[:, :K_L]
    parcel_ts = jnp.concatenate(
        [out_r[..., :K_R], out_l[..., :K_L], out_s[..., :K_SUB]], axis=-1)

    # TODO(synk): BLM is an external, unspecified sub-module; identity is used here.
    blm_out = parcel_ts
    return blm_out, soft_L, soft_R


# ----------------------------- main ---------------------------------------------

if __name__ == "__main__":
    labels = make_synthetic_labels()
    params = build_params(labels)

    B, T, V_total = 2, 16, labels.shape[0]   # V_total = 700
    key = jax.random.PRNGKey(0)
    timeseries = jax.random.normal(key, (B, T, V_total), dtype=jnp.float32)

    fwd = jax.jit(refine_blm_forward)
    blm_out, soft_L, soft_R = fwd(params, timeseries)
    jax.block_until_ready((blm_out, soft_L, soft_R))

    assert blm_out.shape == (B, T, 424)
    assert soft_R.shape == (params["assign_R_pad"].shape[0], K_R)
    assert soft_L.shape == (params["assign_L_pad"].shape[0], K_L)
    assert bool(jnp.all(jnp.isfinite(blm_out)))
    assert bool(jnp.all(jnp.isfinite(soft_R)))
    assert bool(jnp.all(jnp.isfinite(soft_L)))

    print("KERNEL_OK")
</pallas_src>

<mosaic_0001>
module attributes {stable_mosaic.version = 11 : i64} {
  func.func @_fused_refine_kernel(%arg0: memref<2x16x640xf32, #tpu.memory_space<vmem>>, %arg1: memref<256x256xf32, #tpu.memory_space<vmem>>, %arg2: memref<256x256xf32, #tpu.memory_space<vmem>>, %arg3: memref<128x128xf32, #tpu.memory_space<vmem>>, %arg4: memref<2x16x256xf32, #tpu.memory_space<vmem>>, %arg5: memref<2x16x256xf32, #tpu.memory_space<vmem>>, %arg6: memref<2x16x128xf32, #tpu.memory_space<vmem>>, %arg7: memref<256x256xf32, #tpu.memory_space<vmem>>, %arg8: memref<256x256xf32, #tpu.memory_space<vmem>>) attributes {dimension_semantics = [], scalar_prefetch = 0 : i64, scratch_operands = 0 : i64, tpu.core_type = #tpu.core_type<tc>} {
    %c0 = arith.constant 0 : index
    %c0_0 = arith.constant 0 : index
    %0 = vector.load %arg1[%c0, %c0_0] : memref<256x256xf32, #tpu.memory_space<vmem>>, vector<256x256xf32>
    %cst = arith.constant dense<0xFF800000> : vector<256xf32>
    %1 = vector.multi_reduction <maximumf>, %0, %cst [1] : vector<256x256xf32> to vector<256xf32>
    %2 = vector.shape_cast %1 : vector<256xf32> to vector<256x1xf32>
    %3 = vector.broadcast %2 : vector<256x1xf32> to vector<256x256xf32>
    %4 = arith.subf %0, %3 : vector<256x256xf32>
    %5 = math.exp %4 : vector<256x256xf32>
    %cst_1 = arith.constant dense<0.000000e+00> : vector<256xf32>
    %6 = vector.multi_reduction <add>, %5, %cst_1 [1] : vector<256x256xf32> to vector<256xf32>
    %7 = vector.shape_cast %6 : vector<256xf32> to vector<256x1xf32>
    %8 = vector.broadcast %7 : vector<256x1xf32> to vector<256x256xf32>
    %9 = arith.divf %5, %8 : vector<256x256xf32>
    %c0_2 = arith.constant 0 : index
    %c0_3 = arith.constant 0 : index
    %10 = vector.load %arg2[%c0_2, %c0_3] : memref<256x256xf32, #tpu.memory_space<vmem>>, vector<256x256xf32>
    %cst_4 = arith.constant dense<0xFF800000> : vector<256xf32>
    %11 = vector.multi_reduction <maximumf>, %10, %cst_4 [1] : vector<256x256xf32> to vector<256xf32>
    %12 = vector.shape_cast %11 : vector<256xf32> to vector<256x1xf32>
    %13 = vector.broadcast %12 : vector<256x1xf32> to vector<256x256xf32>
    %14 = arith.subf %10, %13 : vector<256x256xf32>
    %15 = math.exp %14 : vector<256x256xf32>
    %cst_5 = arith.constant dense<0.000000e+00> : vector<256xf32>
    %16 = vector.multi_reduction <add>, %15, %cst_5 [1] : vector<256x256xf32> to vector<256xf32>
    %17 = vector.shape_cast %16 : vector<256xf32> to vector<256x1xf32>
    %18 = vector.broadcast %17 : vector<256x1xf32> to vector<256x256xf32>
    %19 = arith.divf %15, %18 : vector<256x256xf32>
    %c0_6 = arith.constant 0 : index
    %c0_7 = arith.constant 0 : index
    %20 = vector.load %arg7[%c0_6, %c0_7] : memref<256x256xf32, #tpu.memory_space<vmem>>, vector<256x256xf32>
    tpu.vector_store %arg7[%c0_6, %c0_7], %9 {strides = array<i32>} : memref<256x256xf32, #tpu.memory_space<vmem>>, vector<256x256xf32>,
    %c0_8 = arith.constant 0 : index
    %c0_9 = arith.constant 0 : index
    %21 = vector.load %arg8[%c0_8, %c0_9] : memref<256x256xf32, #tpu.memory_space<vmem>>, vector<256x256xf32>
    tpu.vector_store %arg8[%c0_8, %c0_9], %19 {strides = array<i32>} : memref<256x256xf32, #tpu.memory_space<vmem>>, vector<256x256xf32>,
    %cst_10 = arith.constant dense<0.000000e+00> : vector<256xf32>
    %22 = vector.multi_reduction <add>, %9, %cst_10 [0] : vector<256x256xf32> to vector<256xf32>
    %23 = vector.shape_cast %22 : vector<256xf32> to vector<1x256xf32>
    %cst_11 = arith.constant 9.99999996E-13 : f32
    %24 = vector.broadcast %cst_11 : f32 to vector<1x256xf32>
    %25 = arith.maximumf %23, %24 : vector<1x256xf32>
    %26 = tpu.reciprocal %25 {approx = true} : vector<1x256xf32> -> vector<1x256xf32>
    %27 = vector.broadcast %26 : vector<1x256xf32> to vector<256x256xf32>
    %28 = arith.mulf %9, %27 : vector<256x256xf32>
    %cst_12 = arith.constant dense<0.000000e+00> : vector<256xf32>
    %29 = vector.multi_reduction <add>, %19, %cst_12 [0] : vector<256x256xf32> to vector<256xf32>
    %30 = vector.shape_cast %29 : vector<256xf32> to vector<1x256xf32>
    %cst_13 = arith.constant 9.99999996E-13 : f32
    %31 = vector.broadcast %cst_13 : f32 to vector<1x256xf32>
    %32 = arith.maximumf %30, %31 : vector<1x256xf32>
    %33 = tpu.reciprocal %32 {approx = true} : vector<1x256xf32> -> vector<1x256xf32>
    %34 = vector.broadcast %33 : vector<1x256xf32> to vector<256x256xf32>
    %35 = arith.mulf %19, %34 : vector<256x256xf32>
    %c0_14 = arith.constant 0 : index
    %c0_15 = arith.constant 0 : index
    %36 = vector.load %arg3[%c0_14, %c0_15] : memref<128x128xf32, #tpu.memory_space<vmem>>, vector<128x128xf32>
    %cst_16 = arith.constant dense<0.000000e+00> : vector<128xf32>
    %37 = vector.multi_reduction <add>, %36, %cst_16 [0] : vector<128x128xf32> to vector<128xf32>
    %38 = vector.shape_cast %37 : vector<128xf32> to vector<1x128xf32>
    %cst_17 = arith.constant 9.99999996E-13 : f32
    %39 = vector.broadcast %cst_17 : f32 to vector<1x128xf32>
    %40 = arith.maximumf %38, %39 : vector<1x128xf32>
    %41 = tpu.reciprocal %40 {approx = true} : vector<1x128xf32> -> vector<1x128xf32>
    %42 = vector.broadcast %41 : vector<1x128xf32> to vector<128x128xf32>
    %43 = arith.mulf %36, %42 : vector<128x128xf32>
    %c0_18 = arith.constant 0 : index
    %c0_19 = arith.constant 0 : index
    %c0_20 = arith.constant 0 : index
    %44 = vector.load %arg0[%c0_18, %c0_19, %c0_20] : memref<2x16x640xf32, #tpu.memory_space<vmem>>, vector<2x16x640xf32>
    %45 = vector.shape_cast %44 : vector<2x16x640xf32> to vector<32x640xf32>
    %46 = vector.extract_strided_slice %45 {offsets = [0, 0], sizes = [32, 256], strides = [1, 1]} : vector<32x640xf32> to vector<32x256xf32>
    %cst_21 = arith.constant dense<0.000000e+00> : vector<32x256xf32>
    %47 = tpu.matmul %46, %28, %cst_21 {dimension_numbers = #tpu.dot_dimension_numbers<[1], [0], [0], [1], [0, 0, 1, 1], [], []>} : vector<32x256xf32>, vector<256x256xf32>, vector<32x256xf32> -> vector<32x256xf32>
    %48 = vector.extract_strided_slice %45 {offsets = [0, 256], sizes = [32, 256], strides = [1, 1]} : vector<32x640xf32> to vector<32x256xf32>
    %cst_22 = arith.constant dense<0.000000e+00> : vector<32x256xf32>
    %49 = tpu.matmul %48, %35, %cst_22 {dimension_numbers = #tpu.dot_dimension_numbers<[1], [0], [0], [1], [0, 0, 1, 1], [], []>} : vector<32x256xf32>, vector<256x256xf32>, vector<32x256xf32> -> vector<32x256xf32>
    %50 = vector.extract_strided_slice %45 {offsets = [0, 512], sizes = [32, 128], strides = [1, 1]} : vector<32x640xf32> to vector<32x128xf32>
    %cst_23 = arith.constant dense<0.000000e+00> : vector<32x128xf32>
    %51 = tpu.matmul %50, %43, %cst_23 {dimension_numbers = #tpu.dot_dimension_numbers<[1], [0], [0], [1], [0, 0, 1, 1], [], []>} : vector<32x128xf32>, vector<128x128xf32>, vector<32x128xf32> -> vector<32x128xf32>
    %52 = vector.shape_cast %47 : vector<32x256xf32> to vector<2x16x256xf32>
    %cst_24 = arith.constant dense<0.000000e+00> : vector<2x256xf32>
    %53 = vector.multi_reduction <add>, %52, %cst_24 [1] : vector<2x16x256xf32> to vector<2x256xf32>
    %54 = vector.shape_cast %53 : vector<2x256xf32> to vector<2x1x256xf32>
    %cst_25 = arith.constant 1.600000e+01 : f32
    %55 = vector.broadcast %cst_25 : f32 to vector<2x1x256xf32>
    %56 = arith.divf %54, %55 : vector<2x1x256xf32>
    %57 = vector.broadcast %56 : vector<2x1x256xf32> to vector<2x16x256xf32>
    %58 = arith.subf %52, %57 : vector<2x16x256xf32>
    %59 = arith.mulf %58, %58 : vector<2x16x256xf32>
    %cst_26 = arith.constant dense<0.000000e+00> : vector<2x256xf32>
    %60 = vector.multi_reduction <add>, %59, %cst_26 [1] : vector<2x16x256xf32> to vector<2x256xf32>
    %61 = vector.shape_cast %60 : vector<2x256xf32> to vector<2x1x256xf32>
    %cst_27 = arith.constant 0.0666666701 : f32
    %62 = vector.broadcast %cst_27 : f32 to vector<2x1x256xf32>
    %63 = arith.mulf %61, %62 : vector<2x1x256xf32>
    %cst_28 = arith.constant 0.000000e+00 : f32
    %64 = vector.broadcast %cst_28 : f32 to vector<2x1x256xf32>
    %65 = arith.cmpf ogt, %63, %64 : vector<2x1x256xf32>
    %66 = math.rsqrt %63 : vector<2x1x256xf32>
    %cst_29 = arith.constant 0.000000e+00 : f32
    %67 = vector.broadcast %cst_29 : f32 to vector<2x1x256xf32>
    %68 = arith.select %65, %66, %67 : vector<2x1x256xi1>, vector<2x1x256xf32>
    %69 = vector.broadcast %68 : vector<2x1x256xf32> to vector<2x16x256xf32>
    %70 = arith.mulf %58, %69 : vector<2x16x256xf32>
    %c0_30 = arith.constant 0 : index
    %c0_31 = arith.constant 0 : index
    %c0_32 = arith.constant 0 : index
    %71 = vector.load %arg4[%c0_30, %c0_31, %c0_32] : memref<2x16x256xf32, #tpu.memory_space<vmem>>, vector<2x16x256xf32>
    tpu.vector_store %arg4[%c0_30, %c0_31, %c0_32], %70 {strides = array<i32>} : memref<2x16x256xf32, #tpu.memory_space<vmem>>, vector<2x16x256xf32>,
    %72 = vector.shape_cast %49 : vector<32x256xf32> to vector<2x16x256xf32>
    %cst_33 = arith.constant dense<0.000000e+00> : vector<2x256xf32>
    %73 = vector.multi_reduction <add>, %72, %cst_33 [1] : vector<2x16x256xf32> to vector<2x256xf32>
    %74 = vector.shape_cast %73 : vector<2x256xf32> to vector<2x1x256xf32>
    %cst_34 = arith.constant 1.600000e+01 : f32
    %75 = vector.broadcast %cst_34 : f32 to vector<2x1x256xf32>
    %76 = arith.divf %74, %75 : vector<2x1x256xf32>
    %77 = vector.broadcast %76 : vector<2x1x256xf32> to vector<2x16x256xf32>
    %78 = arith.subf %72, %77 : vector<2x16x256xf32>
    %79 = arith.mulf %78, %78 : vector<2x16x256xf32>
    %cst_35 = arith.constant dense<0.000000e+00> : vector<2x256xf32>
    %80 = vector.multi_reduction <add>, %79, %cst_35 [1] : vector<2x16x256xf32> to vector<2x256xf32>
    %81 = vector.shape_cast %80 : vector<2x256xf32> to vector<2x1x256xf32>
    %cst_36 = arith.constant 0.0666666701 : f32
    %82 = vector.broadcast %cst_36 : f32 to vector<2x1x256xf32>
    %83 = arith.mulf %81, %82 : vector<2x1x256xf32>
    %cst_37 = arith.constant 0.000000e+00 : f32
    %84 = vector.broadcast %cst_37 : f32 to vector<2x1x256xf32>
    %85 = arith.cmpf ogt, %83, %84 : vector<2x1x256xf32>
    %86 = math.rsqrt %83 : vector<2x1x256xf32>
    %cst_38 = arith.constant 0.000000e+00 : f32
    %87 = vector.broadcast %cst_38 : f32 to vector<2x1x256xf32>
    %88 = arith.select %85, %86, %87 : vector<2x1x256xi1>, vector<2x1x256xf32>
    %89 = vector.broadcast %88 : vector<2x1x256xf32> to vector<2x16x256xf32>
    %90 = arith.mulf %78, %89 : vector<2x16x256xf32>
    %c0_39 = arith.constant 0 : index
    %c0_40 = arith.constant 0 : index
    %c0_41 = arith.constant 0 : index
    %91 = vector.load %arg5[%c0_39, %c0_40, %c0_41] : memref<2x16x256xf32, #tpu.memory_space<vmem>>, vector<2x16x256xf32>
    tpu.vector_store %arg5[%c0_39, %c0_40, %c0_41], %90 {strides = array<i32>} : memref<2x16x256xf32, #tpu.memory_space<vmem>>, vector<2x16x256xf32>,
    %92 = vector.shape_cast %51 : vector<32x128xf32> to vector<2x16x128xf32>
    %cst_42 = arith.constant dense<0.000000e+00> : vector<2x128xf32>
    %93 = vector.multi_reduction <add>, %92, %cst_42 [1] : vector<2x16x128xf32> to vector<2x128xf32>
    %94 = vector.shape_cast %93 : vector<2x128xf32> to vector<2x1x128xf32>
    %cst_43 = arith.constant 1.600000e+01 : f32
    %95 = vector.broadcast %cst_43 : f32 to vector<2x1x128xf32>
    %96 = arith.divf %94, %95 : vector<2x1x128xf32>
    %97 = vector.broadcast %96 : vector<2x1x128xf32> to vector<2x16x128xf32>
    %98 = arith.subf %92, %97 : vector<2x16x128xf32>
    %99 = arith.mulf %98, %98 : vector<2x16x128xf32>
    %cst_44 = arith.constant dense<0.000000e+00> : vector<2x128xf32>
    %100 = vector.multi_reduction <add>, %99, %cst_44 [1] : vector<2x16x128xf32> to vector<2x128xf32>
    %101 = vector.shape_cast %100 : vector<2x128xf32> to vector<2x1x128xf32>
    %cst_45 = arith.constant 0.0666666701 : f32
    %102 = vector.broadcast %cst_45 : f32 to vector<2x1x128xf32>
    %103 = arith.mulf %101, %102 : vector<2x1x128xf32>
    %cst_46 = arith.constant 0.000000e+00 : f32
    %104 = vector.broadcast %cst_46 : f32 to vector<2x1x128xf32>
    %105 = arith.cmpf ogt, %103, %104 : vector<2x1x128xf32>
    %106 = math.rsqrt %103 : vector<2x1x128xf32>
    %cst_47 = arith.constant 0.000000e+00 : f32
    %107 = vector.broadcast %cst_47 : f32 to vector<2x1x128xf32>
    %108 = arith.select %105, %106, %107 : vector<2x1x128xi1>, vector<2x1x128xf32>
    %109 = vector.broadcast %108 : vector<2x1x128xf32> to vector<2x16x128xf32>
    %110 = arith.mulf %98, %109 : vector<2x16x128xf32>
    %c0_48 = arith.constant 0 : index
    %c0_49 = arith.constant 0 : index
    %c0_50 = arith.constant 0 : index
    %111 = vector.load %arg6[%c0_48, %c0_49, %c0_50] : memref<2x16x128xf32, #tpu.memory_space<vmem>>, vector<2x16x128xf32>
    tpu.vector_store %arg6[%c0_48, %c0_49, %c0_50], %110 {strides = array<i32>} : memref<2x16x128xf32, #tpu.memory_space<vmem>>, vector<2x16x128xf32>,
    return
  }
}

</mosaic_0001>

<bundles_post_ra>
// kernel: refine_blm_forward.1
= control target key start
LH: loop header
LB: loop body
LE: loop exit
PB: predicated region body
PF: predicated region fallthrough
CT: control target
= control target key end

     0   :  { %s6017_s1 = inlined_call_operand.vmem [shape: f32[256,256], index: 1, kind: input, shape index: {}]   ;;  %s6018_s2 = inlined_call_operand.vmem [shape: f32[256,256], index: 2, kind: input, shape index: {}]   ;;  %s6019_s7 = inlined_call_operand.vmem [shape: f32[256,256], index: 7, kind: output, shape index: {3}]   ;;  %s6020_s8 = inlined_call_operand.vmem [shape: f32[256,256], index: 8, kind: output, shape index: {4}]   ;;  %s6021_s0 = inlined_call_operand.vmem [shape: f32[2,16,640], index: 0, kind: input, shape index: {}]   ;;  %s6022_s3 = inlined_call_operand.vmem [shape: f32[128,128], index: 3, kind: input, shape index: {}]   ;;  %s6023_s4 = inlined_call_operand.vmem [shape: f32[2,16,256], index: 4, kind: output, shape index: {0}]   ;;  %s6024_s5 = inlined_call_operand.vmem [shape: f32[2,16,256], index: 5, kind: output, shape index: {1}]   ;;  %s6025_s6 = inlined_call_operand.vmem [shape: f32[2,16,128], index: 6, kind: output, shape index: {2}]  }
   0x1   :  { %v2957_v0 = vld [vmem:[%s6017_s1] sm:$0xff]  ;;  %v2962_v1 = vld [vmem:[%s6017_s1 + $0x8] sm:$0xff]  ;;  %v2979_v5 = vld [vmem:[%s6017_s1 + $0x10] sm:$0xff] }
   0x2   :  { %v2967_v2 = vld [vmem:[%s6018_s2] sm:$0xff]  ;;  %v86_v3 = vmax.f32 %v2957_v0, %v2962_v1  ;;  %v2974_v4 = vld [vmem:[%s6018_s2 + $0x8] sm:$0xff]  ;;  %v2984_v6 = vld [vmem:[%s6017_s1 + $0x18] sm:$0xff] }
   0x3   :  { %v630_v7 = vmax.f32 %v2967_v2, %v2974_v4  ;;  %v2991_v8 = vld [vmem:[%s6018_s2 + $0x10] sm:$0xff]  ;;  %v2996_v9 = vld [vmem:[%s6018_s2 + $0x18] sm:$0xff]  ;;  %v89_v10 = vmax.f32 %v2979_v5, %v2984_v6  ;;  %v3005_v12 = vld [vmem:[%s6017_s1 + $0x20] sm:$0xff] }
   0x4   :  { %87 = vmax.xlane.f32.xlu0 %v86_v3  ;;  %v633_v11 = vmax.f32 %v2991_v8, %v2996_v9  ;;  %v3010_v13 = vld [vmem:[%s6017_s1 + $0x28] sm:$0xff]  ;;  %v3015_v14 = vld [vmem:[%s6018_s2 + $0x20] sm:$0xff]  ;;  %v3029_v18 = vld [vmem:[%s6017_s1 + $0x30] sm:$0xff] }
   0x5   :  { %631 = vmax.xlane.f32.xlu1 %v630_v7  ;;  %v3020_v15 = vld [vmem:[%s6018_s2 + $0x28] sm:$0xff]  ;;  %v92_v16 = vmax.f32 %v3005_v12, %v3010_v13  ;;  %v3034_v19 = vld [vmem:[%s6017_s1 + $0x38] sm:$0xff]  ;;  %v3039_v20 = vld [vmem:[%s6018_s2 + $0x30] sm:$0xff] }
   0x6   :  { %v636_v17 = vmax.f32 %v3015_v14, %v3020_v15  ;;  %v3044_v21 = vld [vmem:[%s6018_s2 + $0x38] sm:$0xff]  ;;  %v95_v22 = vmax.f32 %v3029_v18, %v3034_v19  ;;  %v3053_v24 = vld [vmem:[%s6017_s1 + $0x40] sm:$0xff]  ;;  %v3058_v25 = vld [vmem:[%s6017_s1 + $0x48] sm:$0xff] }
   0x7   :  { %v639_v23 = vmax.f32 %v3039_v20, %v3044_v21  ;;  %v3063_v26 = vld [vmem:[%s6018_s2 + $0x40] sm:$0xff]  ;;  %v3068_v27 = vld [vmem:[%s6018_s2 + $0x48] sm:$0xff]  ;;  %v98_v28 = vmax.f32 %v3053_v24, %v3058_v25  ;;  %v3077_v30 = vld [vmem:[%s6017_s1 + $0x50] sm:$0xff] }
   0x8   :  { %90 = vmax.xlane.f32.xlu0 %v89_v10  ;;  %v642_v29 = vmax.f32 %v3063_v26, %v3068_v27  ;;  %v3082_v31 = vld [vmem:[%s6017_s1 + $0x58] sm:$0xff]  ;;  %v3087_v32 = vld [vmem:[%s6018_s2 + $0x50] sm:$0xff]  ;;  %v3101_v36 = vld [vmem:[%s6017_s1 + $0x60] sm:$0xff] }
   0x9   :  { %634 = vmax.xlane.f32.xlu1 %v633_v11  ;;  %v3092_v33 = vld [vmem:[%s6018_s2 + $0x58] sm:$0xff]  ;;  %v101_v34 = vmax.f32 %v3077_v30, %v3082_v31  ;;  %v3106_v37 = vld [vmem:[%s6017_s1 + $0x68] sm:$0xff]  ;;  %v3111_v38 = vld [vmem:[%s6018_s2 + $0x60] sm:$0xff] }
   0xa   :  { %v645_v35 = vmax.f32 %v3087_v32, %v3092_v33  ;;  %v3116_v39 = vld [vmem:[%s6018_s2 + $0x68] sm:$0xff]  ;;  %v104_v40 = vmax.f32 %v3101_v36, %v3106_v37  ;;  %v3125_v42 = vld [vmem:[%s6017_s1 + $0x70] sm:$0xff]  ;;  %v3130_v43 = vld [vmem:[%s6017_s1 + $0x78] sm:$0xff] }
   0xb   :  { %v648_v41 = vmax.f32 %v3111_v38, %v3116_v39  ;;  %v3135_v44 = vld [vmem:[%s6018_s2 + $0x70] sm:$0xff]  ;;  %v3140_v45 = vld [vmem:[%s6018_s2 + $0x78] sm:$0xff]  ;;  %v107_v46 = vmax.f32 %v3125_v42, %v3130_v43  ;;  %v3149_v48 = vld [vmem:[%s6017_s1 + $0x80] sm:$0xff] }
   0xc   :  { %93 = vmax.xlane.f32.xlu0 %v92_v16  ;;  %v651_v47 = vmax.f32 %v3135_v44, %v3140_v45  ;;  %v3154_v49 = vld [vmem:[%s6017_s1 + $0x88] sm:$0xff]  ;;  %v3159_v50 = vld [vmem:[%s6018_s2 + $0x80] sm:$0xff]  ;;  %v3173_v54 = vld [vmem:[%s6017_s1 + $0x90] sm:$0xff] }
   0xd   :  { %637 = vmax.xlane.f32.xlu1 %v636_v17  ;;  %v3164_v51 = vld [vmem:[%s6018_s2 + $0x88] sm:$0xff]  ;;  %v110_v52 = vmax.f32 %v3149_v48, %v3154_v49  ;;  %v3178_v55 = vld [vmem:[%s6017_s1 + $0x98] sm:$0xff]  ;;  %v3183_v56 = vld [vmem:[%s6018_s2 + $0x90] sm:$0xff] }
   0xe   :  { %v654_v53 = vmax.f32 %v3159_v50, %v3164_v51  ;;  %v3188_v57 = vld [vmem:[%s6018_s2 + $0x98] sm:$0xff]  ;;  %v113_v58 = vmax.f32 %v3173_v54, %v3178_v55  ;;  %v3197_v60 = vld [vmem:[%s6017_s1 + $0xa0] sm:$0xff]  ;;  %v3202_v61 = vld [vmem:[%s6017_s1 + $0xa8] sm:$0xff] }
   0xf   :  { %v657_v59 = vmax.f32 %v3183_v56, %v3188_v57  ;;  %v3207_v62 = vld [vmem:[%s6018_s2 + $0xa0] sm:$0xff]  ;;  %v3212_v63 = vld [vmem:[%s6018_s2 + $0xa8] sm:$0xff]  ;;  %v116_v3 = vmax.f32 %v3197_v60, %v3202_v61  ;;  %v3221_v10 = vld [vmem:[%s6017_s1 + $0xb0] sm:$0xff] }
  0x10   :  { %96 = vmax.xlane.f32.xlu0 %v95_v22  ;;  %v660_v7 = vmax.f32 %v3207_v62, %v3212_v63  ;;  %v3226_v11 = vld [vmem:[%s6017_s1 + $0xb8] sm:$0xff]  ;;  %v3231_v16 = vld [vmem:[%s6018_s2 + $0xb0] sm:$0xff] }
  0x11   :  { %640 = vmax.xlane.f32.xlu1 %v639_v23  ;;  %6198 = vst [vmem:[#allocation2_spill] sm:$0xff] %v3231_v16  ;;  %v3236_v17 = vld [vmem:[%s6018_s2 + $0xb8] sm:$0xff]  ;;  %v119_v22 = vmax.f32 %v3221_v10, %v3226_v11 }
  0x12   :  { %6199 = vst [vmem:[#allocation3_spill] sm:$0xff] %v3236_v17  ;;  %v663_v23 = vmax.f32 %v3231_v16, %v3236_v17 }
  0x14   :  { %99 = vmax.xlane.f32.xlu0 %v98_v28  ;;  %v3245_v28 = vld [vmem:[%s6017_s1 + $0xc0] sm:$0xff] }
  0x15   :  { %643 = vmax.xlane.f32.xlu1 %v642_v29  ;;  %6200 = vst [vmem:[#allocation4_spill] sm:$0xff] %v3245_v28  ;;  %v3250_v29 = vld [vmem:[%s6017_s1 + $0xc8] sm:$0xff] }
  0x16   :  { %6201 = vst [vmem:[#allocation5_spill] sm:$0xff] %v3250_v29 }
  0x18   :  { %102 = vmax.xlane.f32.xlu0 %v101_v34  ;;  %v3255_v34 = vld [vmem:[%s6018_s2 + $0xc0] sm:$0xff] }
  0x19   :  { %646 = vmax.xlane.f32.xlu1 %v645_v35  ;;  %6202 = vst [vmem:[#allocation6_spill] sm:$0xff] %v3255_v34  ;;  %v3260_v35 = vld [vmem:[%s6018_s2 + $0xc8] sm:$0xff] }
  0x1a   :  { %6203 = vst [vmem:[#allocation7_spill] sm:$0xff] %v3260_v35 }
  0x1c   :  { %105 = vmax.xlane.f32.xlu0 %v104_v40  ;;  %v122_v40 = vmax.f32 %v3245_v28, %v3250_v29 }
  0x1d   :  { %649 = vmax.xlane.f32.xlu1 %v648_v41  ;;  %v666_v41 = vmax.f32 %v3255_v34, %v3260_v35 }
  0x20   :  { %108 = vmax.xlane.f32.xlu0 %v107_v46  ;;  %v3269_v46 = vld [vmem:[%s6017_s1 + $0xd0] sm:$0xff] }
  0x21   :  { %652 = vmax.xlane.f32.xlu1 %v651_v47  ;;  %6204 = vst [vmem:[#allocation8_spill] sm:$0xff] %v3269_v46  ;;  %v3274_v47 = vld [vmem:[%s6017_s1 + $0xd8] sm:$0xff] }
  0x22   :  { %6205 = vst [vmem:[#allocation9_spill] sm:$0xff] %v3274_v47 }
  0x24   :  { %111 = vmax.xlane.f32.xlu0 %v110_v52  ;;  %v3279_v52 = vld [vmem:[%s6018_s2 + $0xd0] sm:$0xff] }
  0x25   :  { %655 = vmax.xlane.f32.xlu1 %v654_v53  ;;  %6206 = vst [vmem:[#allocation10_spill] sm:$0xff] %v3279_v52  ;;  %v3284_v53 = vld [vmem:[%s6018_s2 + $0xd8] sm:$0xff] }
  0x26   :  { %6207 = vst [vmem:[#allocation11_spill] sm:$0xff] %v3284_v53 }
  0x28   :  { %114 = vmax.xlane.f32.xlu0 %v113_v58  ;;  %v125_v58 = vmax.f32 %v3269_v46, %v3274_v47  ;;  %v608_v47 = vld [vmem:[%s6018_s2 + $0x150] sm:$0xff]  ;;  %v611_v46 = vld [vmem:[%s6018_s2 + $0x168] sm:$0xff] }
  0x29   :  { %658 = vmax.xlane.f32.xlu1 %v657_v59  ;;  %v669_v59 = vmax.f32 %v3279_v52, %v3284_v53  ;;  %v3317_v53 = vld [vmem:[%s6017_s1 + $0xf0] sm:$0xff]  ;;  %v3322_v52 = vld [vmem:[%s6017_s1 + $0xf8] sm:$0xff] }
  0x2a   :  { %6212 = vst [vmem:[#allocation16_spill] sm:$0xff] %v3317_v53  ;;  %6213 = vst [vmem:[#allocation17_spill] sm:$0xff] %v3322_v52 }
  0x2c   :  { %117 = vmax.xlane.f32.xlu0 %v116_v3  ;;  %v3293_v3 = vld [vmem:[%s6017_s1 + $0xe0] sm:$0xff] }
  0x2d   :  { %661 = vmax.xlane.f32.xlu1 %v660_v7  ;;  %6208 = vst [vmem:[#allocation12_spill] sm:$0xff] %v3293_v3  ;;  %v3298_v7 = vld [vmem:[%s6017_s1 + $0xe8] sm:$0xff] }
  0x2e   :  { %6209 = vst [vmem:[#allocation13_spill] sm:$0xff] %v3298_v7 }
  0x30   :  { %120 = vmax.xlane.f32.xlu0 %v119_v22  ;;  %v3303_v22 = vld [vmem:[%s6018_s2 + $0xe0] sm:$0xff] }
  0x31   :  { %664 = vmax.xlane.f32.xlu1 %v663_v23  ;;  %6210 = vst [vmem:[#allocation14_spill] sm:$0xff] %v3303_v22  ;;  %v3308_v23 = vld [vmem:[%s6018_s2 + $0xe8] sm:$0xff] }
  0x32   :  { %6211 = vst [vmem:[#allocation15_spill] sm:$0xff] %v3308_v23 }
  0x34   :  { %123 = vmax.xlane.f32.xlu0 %v122_v40  ;;  %v128_v40 = vmax.f32 %v3293_v3, %v3298_v7  ;;  %v3341_v7 = vld [vmem:[%s6017_s1 + $0x100] sm:$0xff]  ;;  %v3346_v3 = vld [vmem:[%s6017_s1 + $0x108] sm:$0xff] }
  0x35   :  { %667 = vmax.xlane.f32.xlu1 %v666_v41  ;;  %v672_v41 = vmax.f32 %v3303_v22, %v3308_v23  ;;  %v131_v23 = vmax.f32 %v3317_v53, %v3322_v52  ;;  %6216 = vst [vmem:[#allocation20_spill] sm:$0xff] %v3341_v7  ;;  %6217 = vst [vmem:[#allocation21_spill] sm:$0xff] %v3346_v3  ;;  %v3365_v52 = vld [vmem:[%s6017_s1 + $0x110] sm:$0xff]  ;;  %v3370_v53 = vld [vmem:[%s6017_s1 + $0x118] sm:$0xff] }
  0x36   :  { %6220 = vst [vmem:[#allocation24_spill] sm:$0xff] %v3365_v52  ;;  %6221 = vst [vmem:[#allocation25_spill] sm:$0xff] %v3370_v53 }
  0x38   :  { %126 = vmax.xlane.f32.xlu0 %v125_v58  ;;  %v3327_v58 = vld [vmem:[%s6018_s2 + $0xf0] sm:$0xff] }
  0x39   :  { %670 = vmax.xlane.f32.xlu1 %v669_v59  ;;  %6214 = vst [vmem:[#allocation18_spill] sm:$0xff] %v3327_v58  ;;  %v3332_v59 = vld [vmem:[%s6018_s2 + $0xf8] sm:$0xff] }
  0x3a   :  { %6215 = vst [vmem:[#allocation19_spill] sm:$0xff] %v3332_v59  ;;  %v675_v22 = vmax.f32 %v3327_v58, %v3332_v59  ;;  %v134_v59 = vmax.f32 %v3341_v7, %v3346_v3  ;;  %v3389_v3 = vld [vmem:[%s6017_s1 + $0x120] sm:$0xff]  ;;  %v3394_v7 = vld [vmem:[%s6017_s1 + $0x128] sm:$0xff] }
  0x3b   :  { %6224 = vst [vmem:[#allocation28_spill] sm:$0xff] %v3389_v3  ;;  %6225 = vst [vmem:[#allocation29_spill] sm:$0xff] %v3394_v7 }
  0x3c   :  { %129 = vmax.xlane.f32.xlu0 %v128_v40  ;;  %v3351_v40 = vld [vmem:[%s6018_s2 + $0x100] sm:$0xff] }
  0x3d   :  { %673 = vmax.xlane.f32.xlu1 %v672_v41  ;;  %6218 = vst [vmem:[#allocation22_spill] sm:$0xff] %v3351_v40  ;;  %v3356_v41 = vld [vmem:[%s6018_s2 + $0x108] sm:$0xff] }
  0x3e   :  { %6219 = vst [vmem:[#allocation23_spill] sm:$0xff] %v3356_v41  ;;  %v678_v58 = vmax.f32 %v3351_v40, %v3356_v41  ;;  %v137_v41 = vmax.f32 %v3365_v52, %v3370_v53  ;;  %v3413_v53 = vld [vmem:[%s6017_s1 + $0x130] sm:$0xff]  ;;  %v3418_v52 = vld [vmem:[%s6017_s1 + $0x138] sm:$0xff] }
  0x3f   :  { %6228 = vst [vmem:[#allocation32_spill] sm:$0xff] %v3413_v53  ;;  %6229 = vst [vmem:[#allocation33_spill] sm:$0xff] %v3418_v52 }
  0x40   :  { %132 = vmax.xlane.f32.xlu0 %v131_v23  ;;  %v3375_v23 = vld [vmem:[%s6018_s2 + $0x110] sm:$0xff] }
  0x41   :  { %676 = vmax.xlane.f32.xlu1 %v675_v22  ;;  %6222 = vst [vmem:[#allocation26_spill] sm:$0xff] %v3375_v23  ;;  %v3380_v22 = vld [vmem:[%s6018_s2 + $0x118] sm:$0xff] }
  0x42   :  { %6223 = vst [vmem:[#allocation27_spill] sm:$0xff] %v3380_v22  ;;  %v681_v40 = vmax.f32 %v3375_v23, %v3380_v22  ;;  %v140_v22 = vmax.f32 %v3389_v3, %v3394_v7  ;;  %v3437_v7 = vld [vmem:[%s6017_s1 + $0x140] sm:$0xff]  ;;  %v3442_v3 = vld [vmem:[%s6017_s1 + $0x148] sm:$0xff] }
  0x43   :  { %6232 = vst [vmem:[#allocation36_spill] sm:$0xff] %v3437_v7  ;;  %6233 = vst [vmem:[#allocation37_spill] sm:$0xff] %v3442_v3 }
  0x44   :  { %135 = vmax.xlane.f32.xlu0 %v134_v59  ;;  %v3399_v59 = vld [vmem:[%s6018_s2 + $0x120] sm:$0xff] }
  0x45   :  { %679 = vmax.xlane.f32.xlu1 %v678_v58  ;;  %6226 = vst [vmem:[#allocation30_spill] sm:$0xff] %v3399_v59  ;;  %v3404_v58 = vld [vmem:[%s6018_s2 + $0x128] sm:$0xff] }
  0x46   :  { %6227 = vst [vmem:[#allocation31_spill] sm:$0xff] %v3404_v58  ;;  %v684_v23 = vmax.f32 %v3399_v59, %v3404_v58  ;;  %v143_v58 = vmax.f32 %v3413_v53, %v3418_v52  ;;  %v64_v52 = vld [vmem:[%s6017_s1 + $0x150] sm:$0xff]  ;;  %v65_v53 = vld [vmem:[%s6017_s1 + $0x158] sm:$0xff] }
  0x48   :  { %138 = vmax.xlane.f32.xlu0 %v137_v41  ;;  %v3423_v41 = vld [vmem:[%s6018_s2 + $0x130] sm:$0xff] }
  0x49   :  { %682 = vmax.xlane.f32.xlu1 %v681_v40  ;;  %6230 = vst [vmem:[#allocation34_spill] sm:$0xff] %v3423_v41  ;;  %v3428_v40 = vld [vmem:[%s6018_s2 + $0x138] sm:$0xff] }
  0x4a   :  { %6231 = vst [vmem:[#allocation35_spill] sm:$0xff] %v3428_v40  ;;  %v687_v59 = vmax.f32 %v3423_v41, %v3428_v40  ;;  %v146_v40 = vmax.f32 %v3437_v7, %v3442_v3  ;;  %v67_v3 = vld [vmem:[%s6017_s1 + $0x168] sm:$0xff]  ;;  %v610_v7 = vld [vmem:[%s6018_s2 + $0x160] sm:$0xff] }
  0x4c   :  { %141 = vmax.xlane.f32.xlu0 %v140_v22  ;;  %v3447_v22 = vld [vmem:[%s6018_s2 + $0x140] sm:$0xff] }
  0x4d   :  { %685 = vmax.xlane.f32.xlu1 %v684_v23  ;;  %6234 = vst [vmem:[#allocation38_spill] sm:$0xff] %v3447_v22  ;;  %v3452_v23 = vld [vmem:[%s6018_s2 + $0x148] sm:$0xff] }
  0x4e   :  { %6235 = vst [vmem:[#allocation39_spill] sm:$0xff] %v3452_v23  ;;  %v690_v41 = vmax.f32 %v3447_v22, %v3452_v23  ;;  %v66_v22 = vld [vmem:[%s6017_s1 + $0x160] sm:$0xff] }
  0x50   :  { %144 = vmax.xlane.f32.xlu0 %v143_v58  ;;  %v609_v58 = vld [vmem:[%s6018_s2 + $0x158] sm:$0xff] }
  0x51   :  { %688 = vmax.xlane.f32.xlu1 %v687_v59  ;;  %v149_v59 = vmax.f32 %v64_v52, %v65_v53  ;;  %v693_v23 = vmax.f32 %v608_v47, %v609_v58  ;;  %v152_v52 = vmax.f32 %v66_v22, %v67_v3  ;;  %v696_v47 = vmax.f32 %v610_v7, %v611_v46  ;;  %v68_v53 = vld [vmem:[%s6017_s1 + $0x170] sm:$0xff]  ;;  %v613_v58 = vld [vmem:[%s6018_s2 + $0x178] sm:$0xff]  ;;  %v70_v7 = vld [vmem:[%s6017_s1 + $0x180] sm:$0xff] }
  0x52   :  { %v71_v22 = vld [vmem:[%s6017_s1 + $0x188] sm:$0xff] }
  0x54   :  { %147 = vmax.xlane.f32.xlu0 %v146_v40  ;;  %v612_v40 = vld [vmem:[%s6018_s2 + $0x170] sm:$0xff] }
  0x55   :  { %691 = vmax.xlane.f32.xlu1 %v690_v41  ;;  %v69_v41 = vld [vmem:[%s6017_s1 + $0x178] sm:$0xff]  ;;  %v699_v46 = vmax.f32 %v612_v40, %v613_v58  ;;  %v616_v40 = vld [vmem:[%s6018_s2 + $0x190] sm:$0xff] }
  0x56   :  { %v155_v3 = vmax.f32 %v68_v53, %v69_v41  ;;  %v72_v53 = vld [vmem:[%s6017_s1 + $0x190] sm:$0xff]  ;;  %v73_v41 = vld [vmem:[%s6017_s1 + $0x198] sm:$0xff] }
  0x57   :  { %v617_v58 = vld [vmem:[%s6018_s2 + $0x198] sm:$0xff] }
  0x58   :  { %150 = vmax.xlane.f32.xlu0 %v149_v59  ;;  %v615_v59 = vld [vmem:[%s6018_s2 + $0x188] sm:$0xff] }
  0x59   :  { %694 = vmax.xlane.f32.xlu1 %v693_v23  ;;  %v614_v23 = vld [vmem:[%s6018_s2 + $0x180] sm:$0xff] }
  0x5c   :  { %153 = vmax.xlane.f32.xlu0 %v152_v52  ;;  %v158_v52 = vmax.f32 %v70_v7, %v71_v22  ;;  %v74_v7 = vld [vmem:[%s6017_s1 + $0x1a0] sm:$0xff]  ;;  %v75_v22 = vld [vmem:[%s6017_s1 + $0x1a8] sm:$0xff] }
  0x5d   :  { %697 = vmax.xlane.f32.xlu1 %v696_v47  ;;  %v702_v47 = vmax.f32 %v614_v23, %v615_v59  ;;  %v618_v23 = vld [vmem:[%s6018_s2 + $0x1a0] sm:$0xff]  ;;  %v619_v59 = vld [vmem:[%s6018_s2 + $0x1a8] sm:$0xff] }
  0x60   :  { %156 = vmax.xlane.f32.xlu0 %v155_v3  ;;  %v161_v3 = vmax.f32 %v72_v53, %v73_v41  ;;  %v76_v53 = vld [vmem:[%s6017_s1 + $0x1b0] sm:$0xff]  ;;  %v77_v41 = vld [vmem:[%s6017_s1 + $0x1b8] sm:$0xff] }
  0x61   :  { %700 = vmax.xlane.f32.xlu1 %v699_v46  ;;  %v705_v46 = vmax.f32 %v616_v40, %v617_v58  ;;  %v620_v40 = vld [vmem:[%s6018_s2 + $0x1b0] sm:$0xff]  ;;  %v621_v58 = vld [vmem:[%s6018_s2 + $0x1b8] sm:$0xff] }
  0x64   :  { %159 = vmax.xlane.f32.xlu0 %v158_v52  ;;  %v164_v52 = vmax.f32 %v74_v7, %v75_v22  ;;  %v78_v7 = vld [vmem:[%s6017_s1 + $0x1c0] sm:$0xff]  ;;  %v79_v22 = vld [vmem:[%s6017_s1 + $0x1c8] sm:$0xff] }
  0x65   :  { %703 = vmax.xlane.f32.xlu1 %v702_v47  ;;  %v708_v47 = vmax.f32 %v618_v23, %v619_v59  ;;  %v622_v23 = vld [vmem:[%s6018_s2 + $0x1c0] sm:$0xff]  ;;  %v623_v59 = vld [vmem:[%s6018_s2 + $0x1c8] sm:$0xff] }
  0x68   :  { %162 = vmax.xlane.f32.xlu0 %v161_v3  ;;  %v167_v3 = vmax.f32 %v76_v53, %v77_v41  ;;  %v80_v53 = vld [vmem:[%s6017_s1 + $0x1d0] sm:$0xff]  ;;  %v81_v41 = vld [vmem:[%s6017_s1 + $0x1d8] sm:$0xff] }
  0x69   :  { %706 = vmax.xlane.f32.xlu1 %v705_v46  ;;  %v711_v46 = vmax.f32 %v620_v40, %v621_v58  ;;  %v624_v40 = vld [vmem:[%s6018_s2 + $0x1d0] sm:$0xff]  ;;  %v625_v58 = vld [vmem:[%s6018_s2 + $0x1d8] sm:$0xff] }
  0x6c   :  { %165 = vmax.xlane.f32.xlu0 %v164_v52  ;;  %v170_v52 = vmax.f32 %v78_v7, %v79_v22  ;;  %v82_v7 = vld [vmem:[%s6017_s1 + $0x1e0] sm:$0xff]  ;;  %v83_v22 = vld [vmem:[%s6017_s1 + $0x1e8] sm:$0xff] }
  0x6d   :  { %709 = vmax.xlane.f32.xlu1 %v708_v47  ;;  %v714_v47 = vmax.f32 %v622_v23, %v623_v59  ;;  %v626_v23 = vld [vmem:[%s6018_s2 + $0x1e0] sm:$0xff]  ;;  %v627_v59 = vld [vmem:[%s6018_s2 + $0x1e8] sm:$0xff] }
  0x70   :  { %168 = vmax.xlane.f32.xlu0 %v167_v3  ;;  %v173_v3 = vmax.f32 %v80_v53, %v81_v41  ;;  %v84_v53 = vld [vmem:[%s6017_s1 + $0x1f0] sm:$0xff]  ;;  %v85_v41 = vld [vmem:[%s6017_s1 + $0x1f8] sm:$0xff] }
  0x71   :  { %712 = vmax.xlane.f32.xlu1 %v711_v46  ;;  %v717_v46 = vmax.f32 %v624_v40, %v625_v58  ;;  %v628_v40 = vld [vmem:[%s6018_s2 + $0x1f0] sm:$0xff]  ;;  %v629_v58 = vld [vmem:[%s6018_s2 + $0x1f8] sm:$0xff] }
  0x74   :  { %171 = vmax.xlane.f32.xlu0 %v170_v52  ;;  %v176_v52 = vmax.f32 %v82_v7, %v83_v22 }
  0x75   :  { %715 = vmax.xlane.f32.xlu1 %v714_v47  ;;  %v720_v47 = vmax.f32 %v626_v23, %v627_v59 }
  0x78   :  { %174 = vmax.xlane.f32.xlu0 %v173_v3  ;;  %v179_v3 = vmax.f32 %v84_v53, %v85_v41 }
  0x79   :  { %718 = vmax.xlane.f32.xlu1 %v717_v46  ;;  %v723_v46 = vmax.f32 %v628_v40, %v629_v58 }
  0x7c   :  { %177 = vmax.xlane.f32.xlu0 %v176_v52 }
  0x7d   :  { %721 = vmax.xlane.f32.xlu1 %v720_v47 }
  0x80   :  { %180 = vmax.xlane.f32.xlu0 %v179_v3 }
  0x81   :  { %724 = vmax.xlane.f32.xlu1 %v723_v46 }
  0x91   :  { %v88_v7 = vpop.xlane.xlu0 %87 }
  0x92   :  { %v182_v22 = vsub.f32 %v2957_v0, %v88_v7  ;;  %v183_v23 = vsub.f32 %v2962_v1, %v88_v7  ;;  %v632_v59 = vpop.xlane.xlu1 %631 }
  0x93   :  { %v726_v35 = vsub.f32 %v2967_v2, %v632_v59  ;;  %v727_v34 = vsub.f32 %v2974_v4, %v632_v59 }
  0x94   :  { %v246_v29 = vmul.f32 1.442695, %v182_v22  ;;  %v248_v28 = vmul.f32 1.442695, %v183_v23 }
  0x95   :  { %v790_v17 = vmul.f32 1.442695, %v726_v35  ;;  %v792_v16 = vmul.f32 1.442695, %v727_v34  ;;  %v91_v52 = vpop.xlane.xlu0 %90 }
  0x96   :  { %2385 = vpow2.f32 %v246_v29  ;;  %v184_v47 = vsub.f32 %v2979_v5, %v91_v52  ;;  %v185_v53 = vsub.f32 %v2984_v6, %v91_v52  ;;  %v635_v41 = vpop.xlane.xlu1 %634 }
  0x97   :  { %2387 = vpow2.f32 %v248_v28  ;;  %v728_v0 = vsub.f32 %v2991_v8, %v635_v41  ;;  %v729_v1 = vsub.f32 %v2996_v9, %v635_v41 }
  0x98   :  { %2389 = vpow2.f32 %v790_v17  ;;  %v250_v2 = vmul.f32 1.442695, %v184_v47  ;;  %v252_v40 = vmul.f32 1.442695, %v185_v53 }
  0x99   :  { %2391 = vpow2.f32 %v792_v16  ;;  %v794_v4 = vmul.f32 1.442695, %v728_v0  ;;  %v796_v58 = vmul.f32 1.442695, %v729_v1  ;;  %v94_v35 = vpop.xlane.xlu0 %93 }
  0x9a   :  { %2393 = vpow2.f32 %v250_v2  ;;  %v186_v29 = vsub.f32 %v3005_v12, %v94_v35  ;;  %v187_v5 = vsub.f32 %v3010_v13, %v94_v35  ;;  %v638_v34 = vpop.xlane.xlu1 %637 }
  0x9b   :  { %2395 = vpow2.f32 %v252_v40  ;;  %v730_v6 = vsub.f32 %v3015_v14, %v638_v34  ;;  %v731_v8 = vsub.f32 %v3020_v15, %v638_v34 }
  0x9c   :  { %2397 = vpow2.f32 %v794_v4  ;;  %v254_v9 = vmul.f32 1.442695, %v186_v29  ;;  %v256_v17 = vmul.f32 1.442695, %v187_v5 }
  0x9d   :  { %2399 = vpow2.f32 %v796_v58  ;;  %v798_v28 = vmul.f32 1.442695, %v730_v6  ;;  %v800_v16 = vmul.f32 1.442695, %v731_v8  ;;  %v97_v3 = vpop.xlane.xlu0 %96 }
  0x9e   :  { %2401 = vpow2.f32 %v254_v9  ;;  %v188_v46 = vsub.f32 %v3029_v18, %v97_v3  ;;  %v189_v12 = vsub.f32 %v3034_v19, %v97_v3  ;;  %v641_v7 = vpop.xlane.xlu1 %640 }
  0x9f   :  { %2403 = vpow2.f32 %v256_v17  ;;  %v732_v13 = vsub.f32 %v3039_v20, %v641_v7  ;;  %v733_v14 = vsub.f32 %v3044_v21, %v641_v7 }
  0xa0   :  { %v3606_v22 = vpop.eup %2385  ;;  %2405 = vpow2.f32 %v798_v28  ;;  %v258_v15 = vmul.f32 1.442695, %v188_v46  ;;  %v260_v23 = vmul.f32 1.442695, %v189_v12 }
  0xa1   :  { %v3608_v59 = vpop.eup %2387  ;;  %2407 = vpow2.f32 %v800_v16  ;;  %v802_v52 = vmul.f32 1.442695, %v732_v13  ;;  %v804_v47 = vmul.f32 1.442695, %v733_v14  ;;  %v100_v53 = vpop.xlane.xlu0 %99 }
  0xa2   :  { %v3610_v18 = vpop.eup %2389  ;;  %2409 = vpow2.f32 %v258_v15  ;;  %v190_v19 = vsub.f32 %v3053_v24, %v100_v53  ;;  %v191_v20 = vsub.f32 %v3058_v25, %v100_v53  ;;  %v374_v21 = vadd.f32 %v3608_v59, %v3606_v22  ;;  %v644_v41 = vpop.xlane.xlu1 %643 }
  0xa3   :  { %v3616_v0 = vpop.eup %2391  ;;  %2411 = vpow2.f32 %v260_v23  ;;  %v734_v1 = vsub.f32 %v3063_v26, %v644_v41  ;;  %v735_v2 = vsub.f32 %v3068_v27, %v644_v41 }
  0xa4   :  { %v3620_v40 = vpop.eup %2393  ;;  %2413 = vpow2.f32 %v802_v52  ;;  %v262_v4 = vmul.f32 1.442695, %v190_v19  ;;  %v264_v58 = vmul.f32 1.442695, %v191_v20  ;;  %375 = vadd.xlane.f32.xlu0 %v374_v21  ;;  %v918_v24 = vadd.f32 %v3616_v0, %v3610_v18 }
  0xa5   :  { %v3624_v25 = vpop.eup %2395  ;;  %2415 = vpow2.f32 %v804_v47  ;;  %v806_v35 = vmul.f32 1.442695, %v734_v1  ;;  %v808_v29 = vmul.f32 1.442695, %v735_v2  ;;  %v103_v5 = vpop.xlane.xlu0 %102 }
  0xa6   :  { %v3626_v34 = vpop.eup %2397  ;;  %2417 = vpow2.f32 %v262_v4  ;;  %v192_v26 = vsub.f32 %v3077_v30, %v103_v5  ;;  %v193_v27 = vsub.f32 %v3082_v31, %v103_v5  ;;  %v377_v6 = vadd.f32 %v3624_v25, %v3620_v40  ;;  %v647_v8 = vpop.xlane.xlu1 %646 }
  0xa7   :  { %v3632_v9 = vpop.eup %2399  ;;  %2419 = vpow2.f32 %v264_v58  ;;  %v736_v17 = vsub.f32 %v3087_v32, %v647_v8  ;;  %v737_v28 = vsub.f32 %v3092_v33, %v647_v8 }
  0xa8   :  { %v3636_v16 = vpop.eup %2401  ;;  %2421 = vpow2.f32 %v806_v35  ;;  %v266_v3 = vmul.f32 1.442695, %v192_v26  ;;  %v268_v46 = vmul.f32 1.442695, %v193_v27  ;;  %919 = vadd.xlane.f32.xlu0 %v918_v24  ;;  %378 = vadd.xlane.f32.xlu1 %v377_v6  ;;  %v921_v30 = vadd.f32 %v3632_v9, %v3626_v34 }
  0xa9   :  { %v3640_v31 = vpop.eup %2403  ;;  %2423 = vpow2.f32 %v808_v29  ;;  %v810_v12 = vmul.f32 1.442695, %v736_v17  ;;  %v812_v7 = vmul.f32 1.442695, %v737_v28  ;;  %v106_v13 = vpop.xlane.xlu0 %105 }
  0xaa   :  { %v3642_v14 = vpop.eup %2405  ;;  %2425 = vpow2.f32 %v266_v3  ;;  %v194_v32 = vsub.f32 %v3101_v36, %v106_v13  ;;  %v195_v33 = vsub.f32 %v3106_v37, %v106_v13  ;;  %v380_v15 = vadd.f32 %v3640_v31, %v3636_v16  ;;  %v650_v23 = vpop.xlane.xlu1 %649 }
  0xab   :  { %v3648_v52 = vpop.eup %2407  ;;  %2427 = vpow2.f32 %v268_v46  ;;  %v738_v47 = vsub.f32 %v3111_v38, %v650_v23  ;;  %v739_v53 = vsub.f32 %v3116_v39, %v650_v23 }
  0xac   :  { %v3652_v19 = vpop.eup %2409  ;;  %2429 = vpow2.f32 %v810_v12  ;;  %v270_v20 = vmul.f32 1.442695, %v194_v32  ;;  %v272_v21 = vmul.f32 1.442695, %v195_v33  ;;  %922 = vadd.xlane.f32.xlu1 %v921_v30  ;;  %381 = vadd.xlane.f32.xlu0 %v380_v15  ;;  %v924_v36 = vadd.f32 %v3648_v52, %v3642_v14 }
  0xad   :  { %v3656_v37 = vpop.eup %2411  ;;  %2431 = vpow2.f32 %v812_v7  ;;  %v814_v41 = vmul.f32 1.442695, %v738_v47  ;;  %v816_v1 = vmul.f32 1.442695, %v739_v53  ;;  %v109_v2 = vpop.xlane.xlu0 %108 }
  0xae   :  { %v3658_v4 = vpop.eup %2413  ;;  %2433 = vpow2.f32 %v270_v20  ;;  %v196_v38 = vsub.f32 %v3125_v42, %v109_v2  ;;  %v197_v39 = vsub.f32 %v3130_v43, %v109_v2  ;;  %v383_v58 = vadd.f32 %v3656_v37, %v3652_v19  ;;  %v653_v24 = vpop.xlane.xlu1 %652 }
  0xaf   :  { %v3664_v35 = vpop.eup %2415  ;;  %2435 = vpow2.f32 %v272_v21  ;;  %v740_v29 = vsub.f32 %v3135_v44, %v653_v24  ;;  %v741_v5 = vsub.f32 %v3140_v45, %v653_v24 }
  0xb0   :  { %v3668_v26 = vpop.eup %2417  ;;  %2437 = vpow2.f32 %v814_v41  ;;  %v274_v27 = vmul.f32 1.442695, %v196_v38  ;;  %v276_v6 = vmul.f32 1.442695, %v197_v39  ;;  %925 = vadd.xlane.f32.xlu1 %v924_v36  ;;  %384 = vadd.xlane.f32.xlu0 %v383_v58  ;;  %v927_v42 = vadd.f32 %v3664_v35, %v3658_v4 }
  0xb1   :  { %v3672_v43 = vpop.eup %2419  ;;  %2439 = vpow2.f32 %v816_v1  ;;  %v818_v8 = vmul.f32 1.442695, %v740_v29  ;;  %v820_v17 = vmul.f32 1.442695, %v741_v5  ;;  %v112_v28 = vpop.xlane.xlu0 %111 }
  0xb2   :  { %v3674_v3 = vpop.eup %2421  ;;  %2441 = vpow2.f32 %v274_v27  ;;  %v198_v44 = vsub.f32 %v3149_v48, %v112_v28  ;;  %v199_v45 = vsub.f32 %v3154_v49, %v112_v28  ;;  %v386_v46 = vadd.f32 %v3672_v43, %v3668_v26  ;;  %v656_v30 = vpop.xlane.xlu1 %655 }
  0xb3   :  { %v3680_v12 = vpop.eup %2423  ;;  %2443 = vpow2.f32 %v276_v6  ;;  %v742_v7 = vsub.f32 %v3159_v50, %v656_v30  ;;  %v743_v13 = vsub.f32 %v3164_v51, %v656_v30 }
  0xb4   :  { %v3684_v32 = vpop.eup %2425  ;;  %2445 = vpow2.f32 %v818_v8  ;;  %v278_v33 = vmul.f32 1.442695, %v198_v44  ;;  %v280_v15 = vmul.f32 1.442695, %v199_v45  ;;  %928 = vadd.xlane.f32.xlu1 %v927_v42  ;;  %387 = vadd.xlane.f32.xlu0 %v386_v46  ;;  %v930_v48 = vadd.f32 %v3680_v12, %v3674_v3 }
  0xb5   :  { %v3688_v49 = vpop.eup %2427  ;;  %2447 = vpow2.f32 %v820_v17  ;;  %v822_v23 = vmul.f32 1.442695, %v742_v7  ;;  %v824_v47 = vmul.f32 1.442695, %v743_v13  ;;  %v115_v53 = vpop.xlane.xlu0 %114 }
  0xb6   :  { %v3690_v20 = vpop.eup %2429  ;;  %2449 = vpow2.f32 %v278_v33  ;;  %v200_v50 = vsub.f32 %v3173_v54, %v115_v53  ;;  %v201_v51 = vsub.f32 %v3178_v55, %v115_v53  ;;  %v389_v21 = vadd.f32 %v3688_v49, %v3684_v32  ;;  %v659_v36 = vpop.xlane.xlu1 %658 }
  0xb7   :  { %v3696_v41 = vpop.eup %2431  ;;  %2451 = vpow2.f32 %v280_v15  ;;  %v744_v1 = vsub.f32 %v3183_v56, %v659_v36  ;;  %v745_v2 = vsub.f32 %v3188_v57, %v659_v36 }
  0xb8   :  { %v3700_v38 = vpop.eup %2433  ;;  %2453 = vpow2.f32 %v822_v23  ;;  %v282_v39 = vmul.f32 1.442695, %v200_v50  ;;  %v284_v58 = vmul.f32 1.442695, %v201_v51  ;;  %931 = vadd.xlane.f32.xlu1 %v930_v48  ;;  %390 = vadd.xlane.f32.xlu0 %v389_v21  ;;  %v933_v54 = vadd.f32 %v3696_v41, %v3690_v20  ;;  %v6237_v50 = vld [vmem:[#allocation3_spill] sm:$0xff] }
  0xb9   :  { %v3704_v55 = vpop.eup %2435  ;;  %2455 = vpow2.f32 %v824_v47  ;;  %v826_v24 = vmul.f32 1.442695, %v744_v1  ;;  %v828_v29 = vmul.f32 1.442695, %v745_v2  ;;  %v118_v5 = vpop.xlane.xlu0 %117  ;;  %v6236_v47 = vld [vmem:[#allocation2_spill] sm:$0xff] }
  0xba   :  { %v3706_v27 = vpop.eup %2437  ;;  %2457 = vpow2.f32 %v282_v39  ;;  %v202_v56 = vsub.f32 %v3197_v60, %v118_v5  ;;  %v203_v57 = vsub.f32 %v3202_v61, %v118_v5  ;;  %v392_v6 = vadd.f32 %v3704_v55, %v3700_v38  ;;  %v662_v42 = vpop.xlane.xlu1 %661  ;;  %v6239_v5 = vld [vmem:[#allocation5_spill] sm:$0xff] }
  0xbb   :  { %v3712_v8 = vpop.eup %2439  ;;  %2459 = vpow2.f32 %v284_v58  ;;  %v746_v17 = vsub.f32 %v3207_v62, %v662_v42  ;;  %v747_v28 = vsub.f32 %v3212_v63, %v662_v42 }
  0xbc   :  { %v3716_v44 = vpop.eup %2441  ;;  %2461 = vpow2.f32 %v826_v24  ;;  %v286_v45 = vmul.f32 1.442695, %v202_v56  ;;  %v288_v46 = vmul.f32 1.442695, %v203_v57  ;;  %934 = vadd.xlane.f32.xlu1 %v933_v54  ;;  %393 = vadd.xlane.f32.xlu0 %v392_v6  ;;  %v936_v60 = vadd.f32 %v3712_v8, %v3706_v27  ;;  %v6238_v24 = vld [vmem:[#allocation4_spill] sm:$0xff] }
  0xbd   :  { %v3720_v61 = vpop.eup %2443  ;;  %2463 = vpow2.f32 %v828_v29  ;;  %v830_v30 = vmul.f32 1.442695, %v746_v17  ;;  %v832_v7 = vmul.f32 1.442695, %v747_v28  ;;  %v121_v13 = vpop.xlane.xlu0 %120  ;;  %v6240_v17 = vld [vmem:[#allocation6_spill] sm:$0xff] }
  0xbe   :  { %v3722_v33 = vpop.eup %2445  ;;  %2465 = vpow2.f32 %v286_v45  ;;  %v204_v62 = vsub.f32 %v3221_v10, %v121_v13  ;;  %v205_v63 = vsub.f32 %v3226_v11, %v121_v13  ;;  %v395_v15 = vadd.f32 %v3720_v61, %v3716_v44  ;;  %v665_v48 = vpop.xlane.xlu1 %664  ;;  %v6241_v45 = vld [vmem:[#allocation7_spill] sm:$0xff] }
  0xbf   :  { %v3728_v23 = vpop.eup %2447  ;;  %2467 = vpow2.f32 %v288_v46  ;;  %v748_v53 = vsub.f32 %v6236_v47, %v665_v48  ;;  %v749_v51 = vsub.f32 %v6237_v50, %v665_v48 }
  0xc0   :  { %v3732_v21 = vpop.eup %2449  ;;  %2469 = vpow2.f32 %v830_v30  ;;  %v290_v36 = vmul.f32 1.442695, %v204_v62  ;;  %v292_v1 = vmul.f32 1.442695, %v205_v63  ;;  %937 = vadd.xlane.f32.xlu1 %v936_v60  ;;  %396 = vadd.xlane.f32.xlu0 %v395_v15  ;;  %v939_v10 = vadd.f32 %v3728_v23, %v3722_v33 }
  0xc1   :  { %v3736_v11 = vpop.eup %2451  ;;  %2471 = vpow2.f32 %v832_v7  ;;  %v834_v2 = vmul.f32 1.442695, %v748_v53  ;;  %v836_v39 = vmul.f32 1.442695, %v749_v51  ;;  %v124_v58 = vpop.xlane.xlu0 %123  ;;  %v6242_v53 = vld [vmem:[#allocation8_spill] sm:$0xff]  ;;  %v6243_v51 = vld [vmem:[#allocation9_spill] sm:$0xff] }
  0xc2   :  { %v3738_v54 = vpop.eup %2453  ;;  %2473 = vpow2.f32 %v290_v36  ;;  %v206_v29 = vsub.f32 %v6238_v24, %v124_v58  ;;  %v207_v56 = vsub.f32 %v6239_v5, %v124_v58  ;;  %v398_v57 = vadd.f32 %v3736_v11, %v3732_v21  ;;  %v668_v6 = vpop.xlane.xlu1 %667  ;;  %v6244_v58 = vld [vmem:[#allocation10_spill] sm:$0xff] }
  0xc3   :  { %v3744_v42 = vpop.eup %2455  ;;  %2475 = vpow2.f32 %v292_v1  ;;  %v750_v28 = vsub.f32 %v6240_v17, %v668_v6  ;;  %v751_v46 = vsub.f32 %v6241_v45, %v668_v6 }
  0xc4   :  { %v3748_v60 = vpop.eup %2457  ;;  %2477 = vpow2.f32 %v834_v2  ;;  %v294_v30 = vmul.f32 1.442695, %v206_v29  ;;  %v296_v7 = vmul.f32 1.442695, %v207_v56  ;;  %940 = vadd.xlane.f32.xlu1 %v939_v10  ;;  %399 = vadd.xlane.f32.xlu0 %v398_v57  ;;  %v942_v13 = vadd.f32 %v3744_v42, %v3738_v54 }
  0xc5   :  { %v3752_v62 = vpop.eup %2459  ;;  %2479 = vpow2.f32 %v836_v39  ;;  %v838_v63 = vmul.f32 1.442695, %v750_v28  ;;  %v840_v15 = vmul.f32 1.442695, %v751_v46  ;;  %v127_v48 = vpop.xlane.xlu0 %126  ;;  %v6245_v39 = vld [vmem:[#allocation11_spill] sm:$0xff] }
  0xc6   :  { %v3754_v47 = vpop.eup %2461  ;;  %2481 = vpow2.f32 %v294_v30  ;;  %v208_v50 = vsub.f32 %v6242_v53, %v127_v48  ;;  %v209_v36 = vsub.f32 %v6243_v51, %v127_v48  ;;  %v401_v1 = vadd.f32 %v3752_v62, %v3748_v60  ;;  %v671_v10 = vpop.xlane.xlu1 %670  ;;  %v6248_v53 = vld [vmem:[#allocation13_spill] sm:$0xff] }
  0xc7   :  { %v3760_v2 = vpop.eup %2463  ;;  %2483 = vpow2.f32 %v296_v7  ;;  %v752_v24 = vsub.f32 %v6244_v58, %v671_v10  ;;  %v753_v29 = vsub.f32 %v6245_v39, %v671_v10  ;;  %v6247_v7 = vld [vmem:[#allocation12_spill] sm:$0xff] }
  0xc8   :  { %v3764_v5 = vpop.eup %2465  ;;  %2485 = vpow2.f32 %v838_v63  ;;  %v298_v56 = vmul.f32 1.442695, %v208_v50  ;;  %v300_v57 = vmul.f32 1.442695, %v209_v36  ;;  %943 = vadd.xlane.f32.xlu1 %v942_v13  ;;  %402 = vadd.xlane.f32.xlu0 %v401_v1  ;;  %v945_v6 = vadd.f32 %v3760_v2, %v3754_v47  ;;  %v6250_v36 = vld [vmem:[#allocation14_spill] sm:$0xff] }
  0xc9   :  { %v3768_v17 = vpop.eup %2467  ;;  %2487 = vpow2.f32 %v840_v15  ;;  %v842_v28 = vmul.f32 1.442695, %v752_v24  ;;  %v844_v45 = vmul.f32 1.442695, %v753_v29  ;;  %v130_v46 = vpop.xlane.xlu0 %129  ;;  %v6251_v15 = vld [vmem:[#allocation15_spill] sm:$0xff] }
  0xca   :  { %v3770_v30 = vpop.eup %2469  ;;  %2489 = vpow2.f32 %v298_v56  ;;  %v210_v48 = vsub.f32 %v6247_v7, %v130_v46  ;;  %v211_v63 = vsub.f32 %v6248_v53, %v130_v46  ;;  %v404_v13 = vadd.f32 %v3768_v17, %v3764_v5  ;;  %v674_v50 = vpop.xlane.xlu1 %673 }
  0xcb   :  { %6246 = vst [vmem:[#allocation2_spill] sm:$0xff] %v3770_v30  ;;  %v3776_v51 = vpop.eup %2471  ;;  %2491 = vpow2.f32 %v300_v57  ;;  %v754_v1 = vsub.f32 %v6250_v36, %v674_v50  ;;  %v755_v10 = vsub.f32 %v6251_v15, %v674_v50  ;;  %v6255_v50 = vld [vmem:[#allocation16_spill] sm:$0xff]  ;;  %v6256_v15 = vld [vmem:[#allocation17_spill] sm:$0xff] }
  0xcc   :  { %6249 = vst [vmem:[#allocation3_spill] sm:$0xff] %v3776_v51  ;;  %v3780_v58 = vpop.eup %2473  ;;  %2493 = vpow2.f32 %v842_v28  ;;  %v302_v24 = vmul.f32 1.442695, %v210_v48  ;;  %v304_v39 = vmul.f32 1.442695, %v211_v63  ;;  %946 = vadd.xlane.f32.xlu1 %v945_v6  ;;  %405 = vadd.xlane.f32.xlu0 %v404_v13  ;;  %v948_v29 = vadd.f32 %v3776_v51, %v3770_v30  ;;  %v6258_v13 = vld [vmem:[#allocation18_spill] sm:$0xff] }
  0xcd   :  { %6252 = vst [vmem:[#allocation4_spill] sm:$0xff] %v3780_v58  ;;  %v3784_v56 = vpop.eup %2475  ;;  %2495 = vpow2.f32 %v844_v45  ;;  %v846_v46 = vmul.f32 1.442695, %v754_v1  ;;  %v848_v7 = vmul.f32 1.442695, %v755_v10  ;;  %v133_v57 = vpop.xlane.xlu0 %132  ;;  %v6259_v45 = vld [vmem:[#allocation19_spill] sm:$0xff] }
  0xce   :  { %6253 = vst [vmem:[#allocation5_spill] sm:$0xff] %v3784_v56  ;;  %v3786_v53 = vpop.eup %2477  ;;  %2497 = vpow2.f32 %v302_v24  ;;  %v212_v36 = vsub.f32 %v6255_v50, %v133_v57  ;;  %v213_v28 = vsub.f32 %v6256_v15, %v133_v57  ;;  %v407_v6 = vadd.f32 %v3784_v56, %v3780_v58  ;;  %v677_v48 = vpop.xlane.xlu1 %676 }
  0xcf   :  { %6254 = vst [vmem:[#allocation6_spill] sm:$0xff] %v3786_v53  ;;  %v3792_v63 = vpop.eup %2479  ;;  %2499 = vpow2.f32 %v304_v39  ;;  %v756_v51 = vsub.f32 %v6258_v13, %v677_v48  ;;  %v757_v1 = vsub.f32 %v6259_v45, %v677_v48  ;;  %v6263_v48 = vld [vmem:[#allocation20_spill] sm:$0xff]  ;;  %v6264_v45 = vld [vmem:[#allocation21_spill] sm:$0xff] }
  0xd0   :  { %6257 = vst [vmem:[#allocation7_spill] sm:$0xff] %v3792_v63  ;;  %v3796_v10 = vpop.eup %2481  ;;  %2501 = vpow2.f32 %v846_v46  ;;  %v306_v30 = vmul.f32 1.442695, %v212_v36  ;;  %v308_v24 = vmul.f32 1.442695, %v213_v28  ;;  %949 = vadd.xlane.f32.xlu1 %v948_v29  ;;  %408 = vadd.xlane.f32.xlu0 %v407_v6  ;;  %v951_v57 = vadd.f32 %v3792_v63, %v3786_v53  ;;  %v6266_v6 = vld [vmem:[#allocation22_spill] sm:$0xff] }
  0xd1   :  { %6260 = vst [vmem:[#allocation8_spill] sm:$0xff] %v3796_v10  ;;  %v3800_v50 = vpop.eup %2483  ;;  %2503 = vpow2.f32 %v848_v7  ;;  %v850_v15 = vmul.f32 1.442695, %v756_v51  ;;  %v852_v56 = vmul.f32 1.442695, %v757_v1  ;;  %v136_v39 = vpop.xlane.xlu0 %135  ;;  %v6267_v7 = vld [vmem:[#allocation23_spill] sm:$0xff] }
  0xd2   :  { %6261 = vst [vmem:[#allocation9_spill] sm:$0xff] %v3800_v50  ;;  %v3802_v58 = vpop.eup %2485  ;;  %2505 = vpow2.f32 %v306_v30  ;;  %v214_v13 = vsub.f32 %v6263_v48, %v136_v39  ;;  %v215_v46 = vsub.f32 %v6264_v45, %v136_v39  ;;  %v410_v29 = vadd.f32 %v3800_v50, %v3796_v10  ;;  %v680_v36 = vpop.xlane.xlu1 %679 }
  0xd3   :  { %6262 = vst [vmem:[#allocation10_spill] sm:$0xff] %v3802_v58  ;;  %v3808_v28 = vpop.eup %2487  ;;  %2507 = vpow2.f32 %v308_v24  ;;  %v758_v63 = vsub.f32 %v6266_v6, %v680_v36  ;;  %v759_v51 = vsub.f32 %v6267_v7, %v680_v36  ;;  %v6271_v36 = vld [vmem:[#allocation24_spill] sm:$0xff]  ;;  %v6272_v7 = vld [vmem:[#allocation25_spill] sm:$0xff] }
  0xd4   :  { %6265 = vst [vmem:[#allocation11_spill] sm:$0xff] %v3808_v28  ;;  %v3812_v1 = vpop.eup %2489  ;;  %2509 = vpow2.f32 %v850_v15  ;;  %v310_v53 = vmul.f32 1.442695, %v214_v13  ;;  %v312_v30 = vmul.f32 1.442695, %v215_v46  ;;  %952 = vadd.xlane.f32.xlu1 %v951_v57  ;;  %411 = vadd.xlane.f32.xlu0 %v410_v29  ;;  %v954_v39 = vadd.f32 %v3808_v28, %v3802_v58  ;;  %v6274_v29 = vld [vmem:[#allocation26_spill] sm:$0xff] }
  0xd5   :  { %6268 = vst [vmem:[#allocation12_spill] sm:$0xff] %v3812_v1  ;;  %v3816_v48 = vpop.eup %2491  ;;  %2511 = vpow2.f32 %v852_v56  ;;  %v854_v45 = vmul.f32 1.442695, %v758_v63  ;;  %v856_v50 = vmul.f32 1.442695, %v759_v51  ;;  %v139_v24 = vpop.xlane.xlu0 %138  ;;  %v6275_v56 = vld [vmem:[#allocation27_spill] sm:$0xff] }
  0xd6   :  { %6269 = vst [vmem:[#allocation13_spill] sm:$0xff] %v3816_v48  ;;  %v3818_v10 = vpop.eup %2493  ;;  %2513 = vpow2.f32 %v310_v53  ;;  %v216_v6 = vsub.f32 %v6271_v36, %v139_v24  ;;  %v217_v15 = vsub.f32 %v6272_v7, %v139_v24  ;;  %v413_v57 = vadd.f32 %v3816_v48, %v3812_v1  ;;  %v683_v13 = vpop.xlane.xlu1 %682 }
  0xd7   :  { %6270 = vst [vmem:[#allocation14_spill] sm:$0xff] %v3818_v10  ;;  %v3824_v46 = vpop.eup %2495  ;;  %2515 = vpow2.f32 %v312_v30  ;;  %v760_v28 = vsub.f32 %v6274_v29, %v683_v13  ;;  %v761_v63 = vsub.f32 %v6275_v56, %v683_v13  ;;  %v6279_v13 = vld [vmem:[#allocation28_spill] sm:$0xff]  ;;  %v6280_v56 = vld [vmem:[#allocation29_spill] sm:$0xff] }
  0xd8   :  { %6273 = vst [vmem:[#allocation15_spill] sm:$0xff] %v3824_v46  ;;  %v3828_v51 = vpop.eup %2497  ;;  %2517 = vpow2.f32 %v854_v45  ;;  %v314_v58 = vmul.f32 1.442695, %v216_v6  ;;  %v316_v53 = vmul.f32 1.442695, %v217_v15  ;;  %955 = vadd.xlane.f32.xlu1 %v954_v39  ;;  %414 = vadd.xlane.f32.xlu0 %v413_v57  ;;  %v957_v24 = vadd.f32 %v3824_v46, %v3818_v10  ;;  %v6282_v57 = vld [vmem:[#allocation30_spill] sm:$0xff] }
  0xd9   :  { %6276 = vst [vmem:[#allocation16_spill] sm:$0xff] %v3828_v51  ;;  %v3832_v36 = vpop.eup %2499  ;;  %2519 = vpow2.f32 %v856_v50  ;;  %v858_v7 = vmul.f32 1.442695, %v760_v28  ;;  %v860_v48 = vmul.f32 1.442695, %v761_v63  ;;  %v142_v30 = vpop.xlane.xlu0 %141  ;;  %v6283_v50 = vld [vmem:[#allocation31_spill] sm:$0xff] }
  0xda   :  { %6277 = vst [vmem:[#allocation17_spill] sm:$0xff] %v3832_v36  ;;  %v3834_v1 = vpop.eup %2501  ;;  %2521 = vpow2.f32 %v314_v58  ;;  %v218_v29 = vsub.f32 %v6279_v13, %v142_v30  ;;  %v219_v45 = vsub.f32 %v6280_v56, %v142_v30  ;;  %v416_v39 = vadd.f32 %v3832_v36, %v3828_v51  ;;  %v686_v6 = vpop.xlane.xlu1 %685 }
  0xdb   :  { %6278 = vst [vmem:[#allocation18_spill] sm:$0xff] %v3834_v1  ;;  %v3840_v15 = vpop.eup %2503  ;;  %2523 = vpow2.f32 %v316_v53  ;;  %v762_v46 = vsub.f32 %v6282_v57, %v686_v6  ;;  %v763_v28 = vsub.f32 %v6283_v50, %v686_v6  ;;  %v6287_v6 = vld [vmem:[#allocation32_spill] sm:$0xff]  ;;  %v6288_v50 = vld [vmem:[#allocation33_spill] sm:$0xff] }
  0xdc   :  { %6281 = vst [vmem:[#allocation19_spill] sm:$0xff] %v3840_v15  ;;  %v3844_v63 = vpop.eup %2505  ;;  %2525 = vpow2.f32 %v858_v7  ;;  %v318_v10 = vmul.f32 1.442695, %v218_v29  ;;  %v320_v58 = vmul.f32 1.442695, %v219_v45  ;;  %958 = vadd.xlane.f32.xlu1 %v957_v24  ;;  %417 = vadd.xlane.f32.xlu0 %v416_v39  ;;  %v960_v30 = vadd.f32 %v3840_v15, %v3834_v1  ;;  %v6290_v39 = vld [vmem:[#allocation34_spill] sm:$0xff] }
  0xdd   :  { %6284 = vst [vmem:[#allocation20_spill] sm:$0xff] %v3844_v63  ;;  %v3848_v13 = vpop.eup %2507  ;;  %2527 = vpow2.f32 %v860_v48  ;;  %v862_v56 = vmul.f32 1.442695, %v762_v46  ;;  %v864_v36 = vmul.f32 1.442695, %v763_v28  ;;  %v145_v53 = vpop.xlane.xlu0 %144  ;;  %v6291_v48 = vld [vmem:[#allocation35_spill] sm:$0xff] }
  0xde   :  { %6285 = vst [vmem:[#allocation21_spill] sm:$0xff] %v3848_v13  ;;  %v3850_v51 = vpop.eup %2509  ;;  %2529 = vpow2.f32 %v318_v10  ;;  %v220_v57 = vsub.f32 %v6287_v6, %v145_v53  ;;  %v221_v7 = vsub.f32 %v6288_v50, %v145_v53  ;;  %v419_v24 = vadd.f32 %v3848_v13, %v3844_v63  ;;  %v689_v29 = vpop.xlane.xlu1 %688 }
  0xdf   :  { %6286 = vst [vmem:[#allocation22_spill] sm:$0xff] %v3850_v51  ;;  %v3856_v45 = vpop.eup %2511  ;;  %2531 = vpow2.f32 %v320_v58  ;;  %v764_v15 = vsub.f32 %v6290_v39, %v689_v29  ;;  %v765_v46 = vsub.f32 %v6291_v48, %v689_v29  ;;  %v6294_v29 = vld [vmem:[#allocation36_spill] sm:$0xff]  ;;  %v6295_v48 = vld [vmem:[#allocation37_spill] sm:$0xff] }
  0xe0   :  { %6289 = vst [vmem:[#allocation23_spill] sm:$0xff] %v3856_v45  ;;  %v3860_v28 = vpop.eup %2513  ;;  %2533 = vpow2.f32 %v862_v56  ;;  %v322_v1 = vmul.f32 1.442695, %v220_v57  ;;  %v324_v10 = vmul.f32 1.442695, %v221_v7  ;;  %961 = vadd.xlane.f32.xlu1 %v960_v30  ;;  %420 = vadd.xlane.f32.xlu0 %v419_v24  ;;  %v963_v53 = vadd.f32 %v3856_v45, %v3850_v51  ;;  %v6297_v24 = vld [vmem:[#allocation38_spill] sm:$0xff] }
  0xe1   :  { %6292 = vst [vmem:[#allocation24_spill] sm:$0xff] %v3860_v28  ;;  %v3864_v6 = vpop.eup %2515  ;;  %2535 = vpow2.f32 %v864_v36  ;;  %v866_v50 = vmul.f32 1.442695, %v764_v15  ;;  %v868_v13 = vmul.f32 1.442695, %v765_v46  ;;  %v148_v58 = vpop.xlane.xlu0 %147  ;;  %v6298_v36 = vld [vmem:[#allocation39_spill] sm:$0xff] }
  0xe2   :  { %6293 = vst [vmem:[#allocation25_spill] sm:$0xff] %v3864_v6  ;;  %v3866_v63 = vpop.eup %2517  ;;  %2537 = vpow2.f32 %v322_v1  ;;  %v222_v39 = vsub.f32 %v6294_v29, %v148_v58  ;;  %v223_v56 = vsub.f32 %v6295_v48, %v148_v58  ;;  %v422_v30 = vadd.f32 %v3864_v6, %v3860_v28  ;;  %v692_v57 = vpop.xlane.xlu1 %691 }
  0xe3   :  { %v3872_v7 = vpop.eup %2519  ;;  %2539 = vpow2.f32 %v324_v10  ;;  %v766_v45 = vsub.f32 %v6297_v24, %v692_v57  ;;  %v767_v15 = vsub.f32 %v6298_v36, %v692_v57  ;;  %v2802_v24 = vld [vmem:[%s6018_s2 + $0x158] sm:$0xff] }
  0xe4   :  { %6296 = vst [vmem:[#allocation26_spill] sm:$0xff] %v3872_v7  ;;  %v3876_v46 = vpop.eup %2521  ;;  %2541 = vpow2.f32 %v866_v50  ;;  %v326_v51 = vmul.f32 1.442695, %v222_v39  ;;  %v328_v1 = vmul.f32 1.442695, %v223_v56  ;;  %964 = vadd.xlane.f32.xlu1 %v963_v53  ;;  %423 = vadd.xlane.f32.xlu0 %v422_v30  ;;  %v966_v58 = vadd.f32 %v3872_v7, %v3866_v63  ;;  %v2799_v50 = vld [vmem:[%s6017_s1 + $0x150] sm:$0xff] }
  0xe5   :  { %6299 = vst [vmem:[#allocation27_spill] sm:$0xff] %v3876_v46  ;;  %v3880_v29 = vpop.eup %2523  ;;  %2543 = vpow2.f32 %v868_v13  ;;  %v870_v48 = vmul.f32 1.442695, %v766_v45  ;;  %v872_v6 = vmul.f32 1.442695, %v767_v15  ;;  %v151_v10 = vpop.xlane.xlu0 %150  ;;  %v2800_v53 = vld [vmem:[%s6017_s1 + $0x158] sm:$0xff] }
  0xe6   :  { %6300 = vst [vmem:[#allocation28_spill] sm:$0xff] %v3880_v29  ;;  %v3882_v28 = vpop.eup %2525  ;;  %2545 = vpow2.f32 %v326_v51  ;;  %v224_v39 = vsub.f32 %v2799_v50, %v151_v10  ;;  %v225_v56 = vsub.f32 %v2800_v53, %v151_v10  ;;  %v425_v30 = vadd.f32 %v3880_v29, %v3876_v46  ;;  %v695_v13 = vpop.xlane.xlu1 %694  ;;  %v2801_v51 = vld [vmem:[%s6018_s2 + $0x150] sm:$0xff] }
  0xe7   :  { %6301 = vst [vmem:[#allocation29_spill] sm:$0xff] %v3882_v28  ;;  %v3892_v45 = vpop.eup %2527  ;;  %2547 = vpow2.f32 %v328_v1  ;;  %v768_v57 = vsub.f32 %v2801_v51, %v695_v13  ;;  %v769_v36 = vsub.f32 %v2802_v24, %v695_v13 }
  0xe8   :  { %6302 = vst [vmem:[#allocation30_spill] sm:$0xff] %v3892_v45  ;;  %v3900_v15 = vpop.eup %2529  ;;  %2549 = vpow2.f32 %v870_v48  ;;  %v330_v10 = vmul.f32 1.442695, %v224_v39  ;;  %v332_v50 = vmul.f32 1.442695, %v225_v56  ;;  %967 = vadd.xlane.f32.xlu1 %v966_v58  ;;  %426 = vadd.xlane.f32.xlu0 %v425_v30  ;;  %v969_v1 = vadd.f32 %v3892_v45, %v3882_v28  ;;  %v2803_v48 = vld [vmem:[%s6017_s1 + $0x160] sm:$0xff] }
  0xe9   :  { %6303 = vst [vmem:[#allocation31_spill] sm:$0xff] %v3900_v15  ;;  %v3904_v53 = vpop.eup %2531  ;;  %2551 = vpow2.f32 %v872_v6  ;;  %v874_v29 = vmul.f32 1.442695, %v768_v57  ;;  %v876_v51 = vmul.f32 1.442695, %v769_v36  ;;  %v154_v46 = vpop.xlane.xlu0 %153  ;;  %v2804_v58 = vld [vmem:[%s6017_s1 + $0x168] sm:$0xff] }
  0xea   :  { %6304 = vst [vmem:[#allocation32_spill] sm:$0xff] %v3904_v53  ;;  %v3906_v7 = vpop.eup %2533  ;;  %2553 = vpow2.f32 %v330_v10  ;;  %v226_v39 = vsub.f32 %v2803_v48, %v154_v46  ;;  %v227_v56 = vsub.f32 %v2804_v58, %v154_v46  ;;  %v428_v30 = vadd.f32 %v3904_v53, %v3900_v15  ;;  %v698_v6 = vpop.xlane.xlu1 %697  ;;  %v2805_v57 = vld [vmem:[%s6018_s2 + $0x160] sm:$0xff]  ;;  %v2806_v36 = vld [vmem:[%s6018_s2 + $0x168] sm:$0xff] }
  0xeb   :  { %6305 = vst [vmem:[#allocation33_spill] sm:$0xff] %v3906_v7  ;;  %v3916_v13 = vpop.eup %2535  ;;  %2555 = vpow2.f32 %v332_v50  ;;  %v770_v24 = vsub.f32 %v2805_v57, %v698_v6  ;;  %v771_v10 = vsub.f32 %v2806_v36, %v698_v6 }
  0xec   :  { %6306 = vst [vmem:[#allocation34_spill] sm:$0xff] %v3916_v13  ;;  %v3924_v48 = vpop.eup %2537  ;;  %2557 = vpow2.f32 %v874_v29  ;;  %v334_v46 = vmul.f32 1.442695, %v226_v39  ;;  %v336_v58 = vmul.f32 1.442695, %v227_v56  ;;  %970 = vadd.xlane.f32.xlu1 %v969_v1  ;;  %429 = vadd.xlane.f32.xlu0 %v428_v30  ;;  %v972_v50 = vadd.f32 %v3916_v13, %v3906_v7  ;;  %v2807_v29 = vld [vmem:[%s6017_s1 + $0x170] sm:$0xff] }
  0xed   :  { %6307 = vst [vmem:[#allocation35_spill] sm:$0xff] %v3924_v48  ;;  %v3928_v53 = vpop.eup %2539  ;;  %2559 = vpow2.f32 %v876_v51  ;;  %v878_v15 = vmul.f32 1.442695, %v770_v24  ;;  %v880_v57 = vmul.f32 1.442695, %v771_v10  ;;  %v157_v45 = vpop.xlane.xlu0 %156  ;;  %v2808_v1 = vld [vmem:[%s6017_s1 + $0x178] sm:$0xff] }
  0xee   :  { %6308 = vst [vmem:[#allocation36_spill] sm:$0xff] %v3928_v53  ;;  %v3930_v28 = vpop.eup %2541  ;;  %2561 = vpow2.f32 %v334_v46  ;;  %v228_v39 = vsub.f32 %v2807_v29, %v157_v45  ;;  %v229_v56 = vsub.f32 %v2808_v1, %v157_v45  ;;  %v431_v30 = vadd.f32 %v3928_v53, %v3924_v48  ;;  %v701_v51 = vpop.xlane.xlu1 %700  ;;  %v2809_v24 = vld [vmem:[%s6018_s2 + $0x170] sm:$0xff]  ;;  %v2810_v10 = vld [vmem:[%s6018_s2 + $0x178] sm:$0xff] }
  0xef   :  { %6309 = vst [vmem:[#allocation37_spill] sm:$0xff] %v3930_v28  ;;  %v3940_v6 = vpop.eup %2543  ;;  %2563 = vpow2.f32 %v336_v58  ;;  %v772_v36 = vsub.f32 %v2809_v24, %v701_v51  ;;  %v773_v46 = vsub.f32 %v2810_v10, %v701_v51 }
  0xf0   :  { %6310 = vst [vmem:[#allocation38_spill] sm:$0xff] %v3940_v6  ;;  %v3948_v29 = vpop.eup %2545  ;;  %2565 = vpow2.f32 %v878_v15  ;;  %v338_v45 = vmul.f32 1.442695, %v228_v39  ;;  %v340_v1 = vmul.f32 1.442695, %v229_v56  ;;  %973 = vadd.xlane.f32.xlu1 %v972_v50  ;;  %432 = vadd.xlane.f32.xlu0 %v431_v30  ;;  %v975_v58 = vadd.f32 %v3940_v6, %v3930_v28  ;;  %v2811_v15 = vld [vmem:[%s6017_s1 + $0x180] sm:$0xff] }
  0xf1   :  { %6311 = vst [vmem:[#allocation39_spill] sm:$0xff] %v3948_v29  ;;  %v3952_v53 = vpop.eup %2547  ;;  %2567 = vpow2.f32 %v880_v57  ;;  %v882_v48 = vmul.f32 1.442695, %v772_v36  ;;  %v884_v24 = vmul.f32 1.442695, %v773_v46  ;;  %v160_v13 = vpop.xlane.xlu0 %159  ;;  %v2812_v50 = vld [vmem:[%s6017_s1 + $0x188] sm:$0xff] }
  0xf2   :  { %6312 = vst [vmem:[#allocation40_spill] sm:$0xff] %v3952_v53  ;;  %v3954_v7 = vpop.eup %2549  ;;  %2569 = vpow2.f32 %v338_v45  ;;  %v230_v39 = vsub.f32 %v2811_v15, %v160_v13  ;;  %v231_v56 = vsub.f32 %v2812_v50, %v160_v13  ;;  %v434_v30 = vadd.f32 %v3952_v53, %v3948_v29  ;;  %v704_v57 = vpop.xlane.xlu1 %703  ;;  %v2813_v36 = vld [vmem:[%s6018_s2 + $0x180] sm:$0xff]  ;;  %v2814_v46 = vld [vmem:[%s6018_s2 + $0x188] sm:$0xff] }
  0xf3   :  { %6313 = vst [vmem:[#allocation41_spill] sm:$0xff] %v3954_v7  ;;  %v3964_v51 = vpop.eup %2551  ;;  %2571 = vpow2.f32 %v340_v1  ;;  %v774_v10 = vsub.f32 %v2813_v36, %v704_v57  ;;  %v775_v45 = vsub.f32 %v2814_v46, %v704_v57 }
  0xf4   :  { %6314 = vst [vmem:[#allocation42_spill] sm:$0xff] %v3964_v51  ;;  %v3972_v15 = vpop.eup %2553  ;;  %2573 = vpow2.f32 %v882_v48  ;;  %v342_v13 = vmul.f32 1.442695, %v230_v39  ;;  %v344_v50 = vmul.f32 1.442695, %v231_v56  ;;  %976 = vadd.xlane.f32.xlu1 %v975_v58  ;;  %435 = vadd.xlane.f32.xlu0 %v434_v30  ;;  %v978_v1 = vadd.f32 %v3964_v51, %v3954_v7  ;;  %v2815_v48 = vld [vmem:[%s6017_s1 + $0x190] sm:$0xff] }
  0xf5   :  { %6315 = vst [vmem:[#allocation43_spill] sm:$0xff] %v3972_v15  ;;  %v3976_v53 = vpop.eup %2555  ;;  %2575 = vpow2.f32 %v884_v24  ;;  %v886_v29 = vmul.f32 1.442695, %v774_v10  ;;  %v888_v36 = vmul.f32 1.442695, %v775_v45  ;;  %v163_v6 = vpop.xlane.xlu0 %162  ;;  %v2816_v58 = vld [vmem:[%s6017_s1 + $0x198] sm:$0xff] }
  0xf6   :  { %6316 = vst [vmem:[#allocation44_spill] sm:$0xff] %v3976_v53  ;;  %v3978_v28 = vpop.eup %2557  ;;  %2577 = vpow2.f32 %v342_v13  ;;  %v232_v39 = vsub.f32 %v2815_v48, %v163_v6  ;;  %v233_v56 = vsub.f32 %v2816_v58, %v163_v6  ;;  %v437_v30 = vadd.f32 %v3976_v53, %v3972_v15  ;;  %v707_v24 = vpop.xlane.xlu1 %706  ;;  %v2817_v10 = vld [vmem:[%s6018_s2 + $0x190] sm:$0xff]  ;;  %v2818_v45 = vld [vmem:[%s6018_s2 + $0x198] sm:$0xff] }
  0xf7   :  { %6317 = vst [vmem:[#allocation45_spill] sm:$0xff] %v3978_v28  ;;  %v3988_v57 = vpop.eup %2559  ;;  %2579 = vpow2.f32 %v344_v50  ;;  %v776_v46 = vsub.f32 %v2817_v10, %v707_v24  ;;  %v777_v13 = vsub.f32 %v2818_v45, %v707_v24 }
  0xf8   :  { %6318 = vst [vmem:[#allocation46_spill] sm:$0xff] %v3988_v57  ;;  %v3996_v48 = vpop.eup %2561  ;;  %2581 = vpow2.f32 %v886_v29  ;;  %v346_v6 = vmul.f32 1.442695, %v232_v39  ;;  %v348_v58 = vmul.f32 1.442695, %v233_v56  ;;  %979 = vadd.xlane.f32.xlu1 %v978_v1  ;;  %438 = vadd.xlane.f32.xlu0 %v437_v30  ;;  %v981_v50 = vadd.f32 %v3988_v57, %v3978_v28  ;;  %v2819_v29 = vld [vmem:[%s6017_s1 + $0x1a0] sm:$0xff] }
  0xf9   :  { %6319 = vst [vmem:[#allocation47_spill] sm:$0xff] %v3996_v48  ;;  %v4000_v53 = vpop.eup %2563  ;;  %2583 = vpow2.f32 %v888_v36  ;;  %v890_v15 = vmul.f32 1.442695, %v776_v46  ;;  %v892_v10 = vmul.f32 1.442695, %v777_v13  ;;  %v166_v51 = vpop.xlane.xlu0 %165  ;;  %v2820_v1 = vld [vmem:[%s6017_s1 + $0x1a8] sm:$0xff] }
  0xfa   :  { %6320 = vst [vmem:[#allocation48_spill] sm:$0xff] %v4000_v53  ;;  %v4002_v7 = vpop.eup %2565  ;;  %2585 = vpow2.f32 %v346_v6  ;;  %v234_v39 = vsub.f32 %v2819_v29, %v166_v51  ;;  %v235_v56 = vsub.f32 %v2820_v1, %v166_v51  ;;  %v440_v30 = vadd.f32 %v4000_v53, %v3996_v48  ;;  %v710_v36 = vpop.xlane.xlu1 %709  ;;  %v2821_v46 = vld [vmem:[%s6018_s2 + $0x1a0] sm:$0xff]  ;;  %v2822_v13 = vld [vmem:[%s6018_s2 + $0x1a8] sm:$0xff] }
  0xfb   :  { %6321 = vst [vmem:[#allocation49_spill] sm:$0xff] %v4002_v7  ;;  %v4012_v24 = vpop.eup %2567  ;;  %2587 = vpow2.f32 %v348_v58  ;;  %v778_v45 = vsub.f32 %v2821_v46, %v710_v36  ;;  %v779_v6 = vsub.f32 %v2822_v13, %v710_v36 }
  0xfc   :  { %6322 = vst [vmem:[#allocation50_spill] sm:$0xff] %v4012_v24  ;;  %v4020_v29 = vpop.eup %2569  ;;  %2589 = vpow2.f32 %v890_v15  ;;  %v350_v51 = vmul.f32 1.442695, %v234_v39  ;;  %v352_v1 = vmul.f32 1.442695, %v235_v56  ;;  %982 = vadd.xlane.f32.xlu1 %v981_v50  ;;  %441 = vadd.xlane.f32.xlu0 %v440_v30  ;;  %v984_v58 = vadd.f32 %v4012_v24, %v4002_v7  ;;  %v2823_v15 = vld [vmem:[%s6017_s1 + $0x1b0] sm:$0xff] }
  0xfd   :  { %6323 = vst [vmem:[#allocation51_spill] sm:$0xff] %v4020_v29  ;;  %v4024_v53 = vpop.eup %2571  ;;  %2591 = vpow2.f32 %v892_v10  ;;  %v894_v48 = vmul.f32 1.442695, %v778_v45  ;;  %v896_v46 = vmul.f32 1.442695, %v779_v6  ;;  %v169_v57 = vpop.xlane.xlu0 %168  ;;  %v2824_v50 = vld [vmem:[%s6017_s1 + $0x1b8] sm:$0xff] }
  0xfe   :  { %6324 = vst [vmem:[#allocation52_spill] sm:$0xff] %v4024_v53  ;;  %v4026_v28 = vpop.eup %2573  ;;  %2593 = vpow2.f32 %v350_v51  ;;  %v236_v39 = vsub.f32 %v2823_v15, %v169_v57  ;;  %v237_v56 = vsub.f32 %v2824_v50, %v169_v57  ;;  %v443_v30 = vadd.f32 %v4024_v53, %v4020_v29  ;;  %v713_v10 = vpop.xlane.xlu1 %712  ;;  %v2825_v45 = vld [vmem:[%s6018_s2 + $0x1b0] sm:$0xff]  ;;  %v2826_v6 = vld [vmem:[%s6018_s2 + $0x1b8] sm:$0xff] }
  0xff   :  { %6325 = vst [vmem:[#allocation53_spill] sm:$0xff] %v4026_v28  ;;  %v4036_v36 = vpop.eup %2575  ;;  %2595 = vpow2.f32 %v352_v1  ;;  %v780_v13 = vsub.f32 %v2825_v45, %v713_v10  ;;  %v781_v51 = vsub.f32 %v2826_v6, %v713_v10 }
 0x100   :  { %6326 = vst [vmem:[#allocation54_spill] sm:$0xff] %v4036_v36  ;;  %v4044_v15 = vpop.eup %2577  ;;  %2597 = vpow2.f32 %v894_v48  ;;  %v354_v57 = vmul.f32 1.442695, %v236_v39  ;;  %v356_v50 = vmul.f32 1.442695, %v237_v56  ;;  %985 = vadd.xlane.f32.xlu1 %v984_v58  ;;  %444 = vadd.xlane.f32.xlu0 %v443_v30  ;;  %v987_v1 = vadd.f32 %v4036_v36, %v4026_v28  ;;  %v2827_v48 = vld [vmem:[%s6017_s1 + $0x1c0] sm:$0xff] }
 0x101   :  { %6327 = vst [vmem:[#allocation55_spill] sm:$0xff] %v4044_v15  ;;  %v4048_v53 = vpop.eup %2579  ;;  %2599 = vpow2.f32 %v896_v46  ;;  %v898_v29 = vmul.f32 1.442695, %v780_v13  ;;  %v900_v45 = vmul.f32 1.442695, %v781_v51  ;;  %v172_v24 = vpop.xlane.xlu0 %171  ;;  %v2828_v58 = vld [vmem:[%s6017_s1 + $0x1c8] sm:$0xff] }
 0x102   :  { %6328 = vst [vmem:[#allocation56_spill] sm:$0xff] %v4048_v53  ;;  %v4050_v7 = vpop.eup %2581  ;;  %2601 = vpow2.f32 %v354_v57  ;;  %v238_v39 = vsub.f32 %v2827_v48, %v172_v24  ;;  %v239_v56 = vsub.f32 %v2828_v58, %v172_v24  ;;  %v446_v30 = vadd.f32 %v4048_v53, %v4044_v15  ;;  %v716_v46 = vpop.xlane.xlu1 %715  ;;  %v2829_v13 = vld [vmem:[%s6018_s2 + $0x1c0] sm:$0xff]  ;;  %v2830_v51 = vld [vmem:[%s6018_s2 + $0x1c8] sm:$0xff] }
 0x103   :  { %6329 = vst [vmem:[#allocation57_spill] sm:$0xff] %v4050_v7  ;;  %v4060_v10 = vpop.eup %2583  ;;  %2603 = vpow2.f32 %v356_v50  ;;  %v782_v6 = vsub.f32 %v2829_v13, %v716_v46  ;;  %v783_v57 = vsub.f32 %v2830_v51, %v716_v46 }
 0x104   :  { %6330 = vst [vmem:[#allocation58_spill] sm:$0xff] %v4060_v10  ;;  %v4068_v48 = vpop.eup %2585  ;;  %2605 = vpow2.f32 %v898_v29  ;;  %v358_v24 = vmul.f32 1.442695, %v238_v39  ;;  %v360_v58 = vmul.f32 1.442695, %v239_v56  ;;  %988 = vadd.xlane.f32.xlu1 %v987_v1  ;;  %447 = vadd.xlane.f32.xlu0 %v446_v30  ;;  %v990_v50 = vadd.f32 %v4060_v10, %v4050_v7  ;;  %v2831_v29 = vld [vmem:[%s6017_s1 + $0x1d0] sm:$0xff] }
 0x105   :  { %6331 = vst [vmem:[#allocation59_spill] sm:$0xff] %v4068_v48  ;;  %v4072_v53 = vpop.eup %2587  ;;  %2607 = vpow2.f32 %v900_v45  ;;  %v902_v15 = vmul.f32 1.442695, %v782_v6  ;;  %v904_v13 = vmul.f32 1.442695, %v783_v57  ;;  %v175_v36 = vpop.xlane.xlu0 %174  ;;  %v2832_v1 = vld [vmem:[%s6017_s1 + $0x1d8] sm:$0xff] }
 0x106   :  { %6332 = vst [vmem:[#allocation60_spill] sm:$0xff] %v4072_v53  ;;  %v4074_v28 = vpop.eup %2589  ;;  %2609 = vpow2.f32 %v358_v24  ;;  %v240_v39 = vsub.f32 %v2831_v29, %v175_v36  ;;  %v241_v56 = vsub.f32 %v2832_v1, %v175_v36  ;;  %v449_v30 = vadd.f32 %v4072_v53, %v4068_v48  ;;  %v719_v45 = vpop.xlane.xlu1 %718  ;;  %v2833_v6 = vld [vmem:[%s6018_s2 + $0x1d0] sm:$0xff]  ;;  %v2834_v57 = vld [vmem:[%s6018_s2 + $0x1d8] sm:$0xff] }
 0x107   :  { %6333 = vst [vmem:[#allocation61_spill] sm:$0xff] %v4074_v28  ;;  %v4084_v46 = vpop.eup %2591  ;;  %2611 = vpow2.f32 %v360_v58  ;;  %v784_v51 = vsub.f32 %v2833_v6, %v719_v45  ;;  %v785_v24 = vsub.f32 %v2834_v57, %v719_v45 }
 0x108   :  { %6334 = vst [vmem:[#allocation62_spill] sm:$0xff] %v4084_v46  ;;  %v4092_v29 = vpop.eup %2593  ;;  %2613 = vpow2.f32 %v902_v15  ;;  %v362_v36 = vmul.f32 1.442695, %v240_v39  ;;  %v364_v1 = vmul.f32 1.442695, %v241_v56  ;;  %991 = vadd.xlane.f32.xlu1 %v990_v50  ;;  %450 = vadd.xlane.f32.xlu0 %v449_v30  ;;  %v993_v58 = vadd.f32 %v4084_v46, %v4074_v28  ;;  %v2835_v15 = vld [vmem:[%s6017_s1 + $0x1e0] sm:$0xff] }
 0x109   :  { %6335 = vst [vmem:[#allocation63_spill] sm:$0xff] %v4092_v29  ;;  %v4096_v53 = vpop.eup %2595  ;;  %2615 = vpow2.f32 %v904_v13  ;;  %v906_v48 = vmul.f32 1.442695, %v784_v51  ;;  %v908_v6 = vmul.f32 1.442695, %v785_v24  ;;  %v178_v10 = vpop.xlane.xlu0 %177  ;;  %v2836_v50 = vld [vmem:[%s6017_s1 + $0x1e8] sm:$0xff] }
 0x10a   :  { %6336 = vst [vmem:[#allocation64_spill] sm:$0xff] %v4096_v53  ;;  %v4098_v7 = vpop.eup %2597  ;;  %2617 = vpow2.f32 %v362_v36  ;;  %v242_v39 = vsub.f32 %v2835_v15, %v178_v10  ;;  %v243_v56 = vsub.f32 %v2836_v50, %v178_v10  ;;  %v452_v30 = vadd.f32 %v4096_v53, %v4092_v29  ;;  %v722_v13 = vpop.xlane.xlu1 %721  ;;  %v2837_v51 = vld [vmem:[%s6018_s2 + $0x1e0] sm:$0xff]  ;;  %v2838_v24 = vld [vmem:[%s6018_s2 + $0x1e8] sm:$0xff] }
 0x10b   :  { %6337 = vst [vmem:[#allocation65_spill] sm:$0xff] %v4098_v7  ;;  %v4108_v45 = vpop.eup %2599  ;;  %2619 = vpow2.f32 %v364_v1  ;;  %v786_v57 = vsub.f32 %v2837_v51, %v722_v13  ;;  %v787_v36 = vsub.f32 %v2838_v24, %v722_v13 }
 0x10c   :  { %6338 = vst [vmem:[#allocation66_spill] sm:$0xff] %v4108_v45  ;;  %v4116_v15 = vpop.eup %2601  ;;  %2621 = vpow2.f32 %v906_v48  ;;  %v366_v10 = vmul.f32 1.442695, %v242_v39  ;;  %v368_v50 = vmul.f32 1.442695, %v243_v56  ;;  %994 = vadd.xlane.f32.xlu1 %v993_v58  ;;  %453 = vadd.xlane.f32.xlu0 %v452_v30  ;;  %v996_v1 = vadd.f32 %v4108_v45, %v4098_v7  ;;  %v2839_v48 = vld [vmem:[%s6017_s1 + $0x1f0] sm:$0xff] }
 0x10d   :  { %6339 = vst [vmem:[#allocation67_spill] sm:$0xff] %v4116_v15  ;;  %v4120_v53 = vpop.eup %2603  ;;  %2623 = vpow2.f32 %v908_v6  ;;  %v910_v29 = vmul.f32 1.442695, %v786_v57  ;;  %v912_v51 = vmul.f32 1.442695, %v787_v36  ;;  %v181_v46 = vpop.xlane.xlu0 %180  ;;  %v2840_v58 = vld [vmem:[%s6017_s1 + $0x1f8] sm:$0xff] }
 0x10e   :  { %6340 = vst [vmem:[#allocation68_spill] sm:$0xff] %v4120_v53  ;;  %v4122_v28 = vpop.eup %2605  ;;  %2625 = vpow2.f32 %v366_v10  ;;  %v244_v39 = vsub.f32 %v2839_v48, %v181_v46  ;;  %v245_v56 = vsub.f32 %v2840_v58, %v181_v46  ;;  %v455_v30 = vadd.f32 %v4120_v53, %v4116_v15  ;;  %v725_v6 = vpop.xlane.xlu1 %724  ;;  %v2841_v57 = vld [vmem:[%s6018_s2 + $0x1f0] sm:$0xff]  ;;  %v2842_v36 = vld [vmem:[%s6018_s2 + $0x1f8] sm:$0xff] }
 0x10f   :  { %6341 = vst [vmem:[#allocation69_spill] sm:$0xff] %v4122_v28  ;;  %v4132_v13 = vpop.eup %2607  ;;  %2627 = vpow2.f32 %v368_v50  ;;  %v788_v24 = vsub.f32 %v2841_v57, %v725_v6  ;;  %v789_v10 = vsub.f32 %v2842_v36, %v725_v6  ;;  %v6380_v7 = vld [vmem:[#allocation16_spill] sm:$0xff] }
 0x110   :  { %6342 = vst [vmem:[#allocation70_spill] sm:$0xff] %v4132_v13  ;;  %v4140_v48 = vpop.eup %2609  ;;  %2629 = vpow2.f32 %v910_v29  ;;  %v370_v46 = vmul.f32 1.442695, %v244_v39  ;;  %v372_v58 = vmul.f32 1.442695, %v245_v56  ;;  %997 = vadd.xlane.f32.xlu1 %v996_v1  ;;  %456 = vadd.xlane.f32.xlu0 %v455_v30  ;;  %v999_v50 = vadd.f32 %v4132_v13, %v4122_v28  ;;  %v6374_v13 = vld [vmem:[#allocation13_spill] sm:$0xff] }
 0x111   :  { %6343 = vst [vmem:[#allocation71_spill] sm:$0xff] %v4140_v48  ;;  %v4144_v53 = vpop.eup %2611  ;;  %2631 = vpow2.f32 %v912_v51  ;;  %v914_v15 = vmul.f32 1.442695, %v788_v24  ;;  %v916_v57 = vmul.f32 1.442695, %v789_v10 }
 0x112   :  { %6344 = vst [vmem:[#allocation72_spill] sm:$0xff] %v4144_v53  ;;  %v4146_v45 = vpop.eup %2613  ;;  %2633 = vpow2.f32 %v370_v46  ;;  %v458_v6 = vadd.f32 %v4144_v53, %v4140_v48  ;;  %v6372_v53 = vld [vmem:[#allocation12_spill] sm:$0xff] }
 0x113   :  { %6345 = vst [vmem:[#allocation73_spill] sm:$0xff] %v4146_v45  ;;  %v4150_v36 = vpop.eup %2615  ;;  %2635 = vpow2.f32 %v372_v58 }
 0x114   :  { %6346 = vst [vmem:[#allocation74_spill] sm:$0xff] %v4150_v36  ;;  %v4152_v29 = vpop.eup %2617  ;;  %2637 = vpow2.f32 %v914_v15  ;;  %1000 = vadd.xlane.f32.xlu1 %v999_v50  ;;  %459 = vadd.xlane.f32.xlu0 %v458_v6  ;;  %v1002_v1 = vadd.f32 %v4150_v36, %v4146_v45  ;;  %v6367_v36 = vld [vmem:[#allocation9_spill] sm:$0xff] }
 0x115   :  { %6347 = vst [vmem:[#allocation75_spill] sm:$0xff] %v4152_v29  ;;  %v4156_v51 = vpop.eup %2619  ;;  %2639 = vpow2.f32 %v916_v57 }
 0x116   :  { %6348 = vst [vmem:[#allocation76_spill] sm:$0xff] %v4156_v51  ;;  %v4158_v39 = vpop.eup %2621  ;;  %v461_v56 = vadd.f32 %v4156_v51, %v4152_v29 }
 0x117   :  { %6349 = vst [vmem:[#allocation77_spill] sm:$0xff] %v4158_v39  ;;  %v4162_v30 = vpop.eup %2623 }
 0x118   :  { %6350 = vst [vmem:[#allocation78_spill] sm:$0xff] %v4162_v30  ;;  %v4164_v24 = vpop.eup %2625  ;;  %1003 = vadd.xlane.f32.xlu1 %v1002_v1  ;;  %462 = vadd.xlane.f32.xlu0 %v461_v56  ;;  %v1005_v15 = vadd.f32 %v4162_v30, %v4158_v39 }
 0x119   :  { %6351 = vst [vmem:[#allocation79_spill] sm:$0xff] %v4164_v24  ;;  %v4168_v10 = vpop.eup %2627 }
 0x11a   :  { %6352 = vst [vmem:[#allocation80_spill] sm:$0xff] %v4168_v10  ;;  %v4170_v46 = vpop.eup %2629  ;;  %v464_v58 = vadd.f32 %v4168_v10, %v4164_v24 }
 0x11b   :  { %6353 = vst [vmem:[#allocation81_spill] sm:$0xff] %v4170_v46  ;;  %v4174_v50 = vpop.eup %2631 }
 0x11c   :  { %6354 = vst [vmem:[#allocation82_spill] sm:$0xff] %v4174_v50  ;;  %v4176_v57 = vpop.eup %2633  ;;  %1006 = vadd.xlane.f32.xlu1 %v1005_v15  ;;  %465 = vadd.xlane.f32.xlu0 %v464_v58  ;;  %v1008_v6 = vadd.f32 %v4174_v50, %v4170_v46 }
 0x11d   :  { %6355 = vst [vmem:[#allocation83_spill] sm:$0xff] %v4176_v57  ;;  %v4180_v1 = vpop.eup %2635 }
 0x11e   :  { %6356 = vst [vmem:[#allocation84_spill] sm:$0xff] %v4180_v1  ;;  %v4182_v56 = vpop.eup %2637  ;;  %v467_v30 = vadd.f32 %v4180_v1, %v4176_v57 }
 0x11f   :  { %6357 = vst [vmem:[#allocation85_spill] sm:$0xff] %v4182_v56  ;;  %v4186_v39 = vpop.eup %2639 }
 0x120   :  { %6358 = vst [vmem:[#allocation86_spill] sm:$0xff] %v4186_v39  ;;  %1009 = vadd.xlane.f32.xlu1 %v1008_v6  ;;  %468 = vadd.xlane.f32.xlu0 %v467_v30  ;;  %v1011_v10 = vadd.f32 %v4186_v39, %v4182_v56  ;;  %v6365_v56 = vld [vmem:[#allocation8_spill] sm:$0xff] }
 0x124   :  { %1012 = vadd.xlane.f32.xlu1 %v1011_v10 }
 0x131   :  { %v376_v15 = vpop.xlane.xlu0 %375 }
 0x132   :  { %2641 = vrcp.f32 %v376_v15 }
 0x135   :  { %v379_v58 = vpop.xlane.xlu1 %378  ;;  %v920_v24 = vpop.xlane.xlu0 %919 }
 0x136   :  { %2643 = vrcp.f32 %v379_v58 }
 0x137   :  { %2645 = vrcp.f32 %v920_v24 }
 0x139   :  { %v923_v50 = vpop.xlane.xlu1 %922  ;;  %v382_v46 = vpop.xlane.xlu0 %381 }
 0x13a   :  { %2647 = vrcp.f32 %v923_v50 }
 0x13b   :  { %2649 = vrcp.f32 %v382_v46 }
 0x13c   :  { %v2642_v51 = vpop.eup %2641 }
 0x13d   :  { %v926_v1 = vpop.xlane.xlu1 %925  ;;  %v385_v57 = vpop.xlane.xlu0 %384  ;;  %v4191_v6 = vmul.f32 %v2642_v51, %v3608_v59  ;;  %v4194_v30 = vmul.f32 %v2642_v51, %v3606_v22 }
 0x13e   :  { %2651 = vrcp.f32 %v926_v1 }
 0x13f   :  { %2653 = vrcp.f32 %v385_v57  ;;  %1111 = vst [vmem:[%s6019_s7 + $0x8] sm:$0xff] %v4191_v6  ;;  %1110 = vst [vmem:[%s6019_s7] sm:$0xff] %v4194_v30 }
 0x140   :  { %v2644_v24 = vpop.eup %2643 }
 0x141   :  { %v2646_v10 = vpop.eup %2645  ;;  %v929_v46 = vpop.xlane.xlu1 %928  ;;  %v4205_v50 = vmul.f32 %v2644_v24, %v3624_v25  ;;  %v4208_v22 = vmul.f32 %v2644_v24, %v3620_v40 }
 0x142   :  { %v388_v59 = vpop.xlane.xlu0 %387  ;;  %2655 = vrcp.f32 %v929_v46  ;;  %v4211_v51 = vmul.f32 %v2646_v10, %v3616_v0  ;;  %v4214_v57 = vmul.f32 %v2646_v10, %v3610_v18 }
 0x143   :  { %2657 = vrcp.f32 %v388_v59  ;;  %1113 = vst [vmem:[%s6019_s7 + $0x18] sm:$0xff] %v4205_v50  ;;  %1112 = vst [vmem:[%s6019_s7 + $0x10] sm:$0xff] %v4208_v22 }
 0x144   :  { %v2648_v40 = vpop.eup %2647  ;;  %1175 = vst [vmem:[%s6020_s8 + $0x8] sm:$0xff] %v4211_v51  ;;  %1174 = vst [vmem:[%s6020_s8] sm:$0xff] %v4214_v57 }
 0x145   :  { %v2650_v18 = vpop.eup %2649  ;;  %v932_v0 = vpop.xlane.xlu1 %931  ;;  %v4233_v1 = vmul.f32 %v2648_v40, %v3632_v9  ;;  %v4236_v15 = vmul.f32 %v2648_v40, %v3626_v34 }
 0x146   :  { %v391_v25 = vpop.xlane.xlu0 %390  ;;  %v4239_v58 = vmul.f32 %v2650_v18, %v3636_v16  ;;  %v4242_v24 = vmul.f32 %v2650_v18, %v3640_v31  ;;  %2659 = vrcp.f32 %v932_v0 }
 0x147   :  { %2661 = vrcp.f32 %v391_v25  ;;  %1177 = vst [vmem:[%s6020_s8 + $0x18] sm:$0xff] %v4233_v1  ;;  %1176 = vst [vmem:[%s6020_s8 + $0x10] sm:$0xff] %v4236_v15 }
 0x148   :  { %v2652_v34 = vpop.eup %2651  ;;  %1114 = vst [vmem:[%s6019_s7 + $0x20] sm:$0xff] %v4239_v58  ;;  %1115 = vst [vmem:[%s6019_s7 + $0x28] sm:$0xff] %v4242_v24 }
 0x149   :  { %v2654_v9 = vpop.eup %2653  ;;  %v4261_v16 = vmul.f32 %v2652_v34, %v3642_v14  ;;  %v4264_v31 = vmul.f32 %v2652_v34, %v3648_v52  ;;  %v935_v10 = vpop.xlane.xlu1 %934 }
 0x14a   :  { %v394_v46 = vpop.xlane.xlu0 %393  ;;  %v4267_v59 = vmul.f32 %v2654_v9, %v3652_v19  ;;  %v4270_v40 = vmul.f32 %v2654_v9, %v3656_v37  ;;  %2663 = vrcp.f32 %v935_v10 }
 0x14b   :  { %1178 = vst [vmem:[%s6020_s8 + $0x20] sm:$0xff] %v4261_v16  ;;  %1179 = vst [vmem:[%s6020_s8 + $0x28] sm:$0xff] %v4264_v31  ;;  %2665 = vrcp.f32 %v394_v46 }
 0x14c   :  { %v2656_v14 = vpop.eup %2655  ;;  %1116 = vst [vmem:[%s6019_s7 + $0x30] sm:$0xff] %v4267_v59  ;;  %1117 = vst [vmem:[%s6019_s7 + $0x38] sm:$0xff] %v4270_v40 }
 0x14d   :  { %v2658_v52 = vpop.eup %2657  ;;  %v4289_v19 = vmul.f32 %v2656_v14, %v3658_v4  ;;  %v4292_v37 = vmul.f32 %v2656_v14, %v3664_v35  ;;  %v938_v18 = vpop.xlane.xlu1 %937 }
 0x14e   :  { %v397_v0 = vpop.xlane.xlu0 %396  ;;  %v4295_v25 = vmul.f32 %v2658_v52, %v3668_v26  ;;  %v4298_v34 = vmul.f32 %v2658_v52, %v3672_v43  ;;  %2667 = vrcp.f32 %v938_v18 }
 0x14f   :  { %1180 = vst [vmem:[%s6020_s8 + $0x30] sm:$0xff] %v4289_v19  ;;  %1181 = vst [vmem:[%s6020_s8 + $0x38] sm:$0xff] %v4292_v37  ;;  %2669 = vrcp.f32 %v397_v0 }
 0x150   :  { %v2660_v4 = vpop.eup %2659  ;;  %1118 = vst [vmem:[%s6019_s7 + $0x40] sm:$0xff] %v4295_v25  ;;  %1119 = vst [vmem:[%s6019_s7 + $0x48] sm:$0xff] %v4298_v34 }
 0x151   :  { %v2662_v35 = vpop.eup %2661  ;;  %v4317_v26 = vmul.f32 %v2660_v4, %v3674_v3  ;;  %v4320_v43 = vmul.f32 %v2660_v4, %v3680_v12  ;;  %v941_v9 = vpop.xlane.xlu1 %940 }
 0x152   :  { %v400_v10 = vpop.xlane.xlu0 %399  ;;  %v4323_v46 = vmul.f32 %v2662_v35, %v3684_v32  ;;  %v4326_v14 = vmul.f32 %v2662_v35, %v3688_v49  ;;  %2671 = vrcp.f32 %v941_v9 }
 0x153   :  { %1182 = vst [vmem:[%s6020_s8 + $0x40] sm:$0xff] %v4317_v26  ;;  %1183 = vst [vmem:[%s6020_s8 + $0x48] sm:$0xff] %v4320_v43  ;;  %2673 = vrcp.f32 %v400_v10 }
 0x154   :  { %v2664_v3 = vpop.eup %2663  ;;  %1120 = vst [vmem:[%s6019_s7 + $0x50] sm:$0xff] %v4323_v46  ;;  %1121 = vst [vmem:[%s6019_s7 + $0x58] sm:$0xff] %v4326_v14 }
 0x155   :  { %v2666_v12 = vpop.eup %2665  ;;  %v4345_v32 = vmul.f32 %v2664_v3, %v3690_v20  ;;  %v4348_v49 = vmul.f32 %v2664_v3, %v3696_v41  ;;  %v944_v52 = vpop.xlane.xlu1 %943 }
 0x156   :  { %v403_v18 = vpop.xlane.xlu0 %402  ;;  %v4351_v0 = vmul.f32 %v2666_v12, %v3700_v38  ;;  %v4354_v4 = vmul.f32 %v2666_v12, %v3704_v55  ;;  %2675 = vrcp.f32 %v944_v52 }
 0x157   :  { %1184 = vst [vmem:[%s6020_s8 + $0x50] sm:$0xff] %v4345_v32  ;;  %1185 = vst [vmem:[%s6020_s8 + $0x58] sm:$0xff] %v4348_v49  ;;  %2677 = vrcp.f32 %v403_v18 }
 0x158   :  { %v2668_v20 = vpop.eup %2667  ;;  %1122 = vst [vmem:[%s6019_s7 + $0x60] sm:$0xff] %v4351_v0  ;;  %1123 = vst [vmem:[%s6019_s7 + $0x68] sm:$0xff] %v4354_v4 }
 0x159   :  { %v2670_v41 = vpop.eup %2669  ;;  %v4373_v38 = vmul.f32 %v2668_v20, %v3706_v27  ;;  %v4376_v55 = vmul.f32 %v2668_v20, %v3712_v8  ;;  %v947_v35 = vpop.xlane.xlu1 %946 }
 0x15a   :  { %v406_v9 = vpop.xlane.xlu0 %405  ;;  %v4379_v10 = vmul.f32 %v2670_v41, %v3716_v44  ;;  %v4382_v3 = vmul.f32 %v2670_v41, %v3720_v61  ;;  %2679 = vrcp.f32 %v947_v35 }
 0x15b   :  { %1186 = vst [vmem:[%s6020_s8 + $0x60] sm:$0xff] %v4373_v38  ;;  %1187 = vst [vmem:[%s6020_s8 + $0x68] sm:$0xff] %v4376_v55  ;;  %2681 = vrcp.f32 %v406_v9 }
 0x15c   :  { %v2672_v27 = vpop.eup %2671  ;;  %1124 = vst [vmem:[%s6019_s7 + $0x70] sm:$0xff] %v4379_v10  ;;  %1125 = vst [vmem:[%s6019_s7 + $0x78] sm:$0xff] %v4382_v3 }
 0x15d   :  { %v2674_v8 = vpop.eup %2673  ;;  %v4401_v44 = vmul.f32 %v2672_v27, %v3722_v33  ;;  %v4404_v61 = vmul.f32 %v2672_v27, %v3728_v23  ;;  %v950_v12 = vpop.xlane.xlu1 %949 }
 0x15e   :  { %v409_v52 = vpop.xlane.xlu0 %408  ;;  %v4407_v18 = vmul.f32 %v2674_v8, %v3732_v21  ;;  %v4410_v20 = vmul.f32 %v2674_v8, %v3736_v11  ;;  %2683 = vrcp.f32 %v950_v12 }
 0x15f   :  { %1188 = vst [vmem:[%s6020_s8 + $0x70] sm:$0xff] %v4401_v44  ;;  %1189 = vst [vmem:[%s6020_s8 + $0x78] sm:$0xff] %v4404_v61  ;;  %2685 = vrcp.f32 %v409_v52 }
 0x160   :  { %v2676_v33 = vpop.eup %2675  ;;  %1126 = vst [vmem:[%s6019_s7 + $0x80] sm:$0xff] %v4407_v18  ;;  %1127 = vst [vmem:[%s6019_s7 + $0x88] sm:$0xff] %v4410_v20 }
 0x161   :  { %v2678_v23 = vpop.eup %2677  ;;  %v4429_v21 = vmul.f32 %v2676_v33, %v3738_v54  ;;  %v4432_v11 = vmul.f32 %v2676_v33, %v3744_v42  ;;  %v953_v41 = vpop.xlane.xlu1 %952 }
 0x162   :  { %v412_v35 = vpop.xlane.xlu0 %411  ;;  %v4435_v9 = vmul.f32 %v2678_v23, %v3748_v60  ;;  %v4438_v27 = vmul.f32 %v2678_v23, %v3752_v62  ;;  %2687 = vrcp.f32 %v953_v41  ;;  %v6360_v23 = vld [vmem:[#allocation3_spill] sm:$0xff] }
 0x163   :  { %1190 = vst [vmem:[%s6020_s8 + $0x80] sm:$0xff] %v4429_v21  ;;  %1191 = vst [vmem:[%s6020_s8 + $0x88] sm:$0xff] %v4432_v11  ;;  %2689 = vrcp.f32 %v412_v35 }
 0x164   :  { %v2680_v54 = vpop.eup %2679  ;;  %1128 = vst [vmem:[%s6019_s7 + $0x90] sm:$0xff] %v4435_v9  ;;  %1129 = vst [vmem:[%s6019_s7 + $0x98] sm:$0xff] %v4438_v27 }
 0x165   :  { %v2682_v42 = vpop.eup %2681  ;;  %v4457_v60 = vmul.f32 %v2680_v54, %v3754_v47  ;;  %v4460_v62 = vmul.f32 %v2680_v54, %v3760_v2  ;;  %v956_v8 = vpop.xlane.xlu1 %955 }
 0x166   :  { %v415_v12 = vpop.xlane.xlu0 %414  ;;  %v4463_v52 = vmul.f32 %v2682_v42, %v3764_v5  ;;  %v4466_v33 = vmul.f32 %v2682_v42, %v3768_v17  ;;  %2691 = vrcp.f32 %v956_v8  ;;  %v6359_v5 = vld [vmem:[#allocation2_spill] sm:$0xff]  ;;  %v6361_v42 = vld [vmem:[#allocation4_spill] sm:$0xff] }
 0x167   :  { %1192 = vst [vmem:[%s6020_s8 + $0x90] sm:$0xff] %v4457_v60  ;;  %1193 = vst [vmem:[%s6020_s8 + $0x98] sm:$0xff] %v4460_v62  ;;  %2693 = vrcp.f32 %v415_v12  ;;  %v6362_v12 = vld [vmem:[#allocation5_spill] sm:$0xff] }
 0x168   :  { %v2684_v47 = vpop.eup %2683  ;;  %1130 = vst [vmem:[%s6019_s7 + $0xa0] sm:$0xff] %v4463_v52  ;;  %1131 = vst [vmem:[%s6019_s7 + $0xa8] sm:$0xff] %v4466_v33 }
 0x169   :  { %v2686_v2 = vpop.eup %2685  ;;  %v4485_v17 = vmul.f32 %v2684_v47, %v6359_v5  ;;  %v4488_v41 = vmul.f32 %v2684_v47, %v6360_v23  ;;  %v959_v35 = vpop.xlane.xlu1 %958  ;;  %v6363_v5 = vld [vmem:[#allocation6_spill] sm:$0xff] }
 0x16a   :  { %v418_v54 = vpop.xlane.xlu0 %417  ;;  %v4491_v8 = vmul.f32 %v2686_v2, %v6361_v42  ;;  %v4494_v39 = vmul.f32 %v2686_v2, %v6362_v12  ;;  %2695 = vrcp.f32 %v959_v35  ;;  %v6364_v35 = vld [vmem:[#allocation7_spill] sm:$0xff] }
 0x16b   :  { %1194 = vst [vmem:[%s6020_s8 + $0xa0] sm:$0xff] %v4485_v17  ;;  %1195 = vst [vmem:[%s6020_s8 + $0xa8] sm:$0xff] %v4488_v41  ;;  %2697 = vrcp.f32 %v418_v54 }
 0x16c   :  { %v2688_v47 = vpop.eup %2687  ;;  %1132 = vst [vmem:[%s6019_s7 + $0xb0] sm:$0xff] %v4491_v8  ;;  %1133 = vst [vmem:[%s6019_s7 + $0xb8] sm:$0xff] %v4494_v39 }
 0x16d   :  { %v2690_v2 = vpop.eup %2689  ;;  %v4513_v23 = vmul.f32 %v2688_v47, %v6363_v5  ;;  %v4516_v42 = vmul.f32 %v2688_v47, %v6364_v35  ;;  %v962_v12 = vpop.xlane.xlu1 %961  ;;  %v6370_v5 = vld [vmem:[#allocation11_spill] sm:$0xff] }
 0x16e   :  { %v421_v54 = vpop.xlane.xlu0 %420  ;;  %v4519_v29 = vmul.f32 %v2690_v2, %v6365_v56  ;;  %v4522_v45 = vmul.f32 %v2690_v2, %v6367_v36  ;;  %2699 = vrcp.f32 %v962_v12  ;;  %v6368_v56 = vld [vmem:[#allocation10_spill] sm:$0xff] }
 0x16f   :  { %1196 = vst [vmem:[%s6020_s8 + $0xb0] sm:$0xff] %v4513_v23  ;;  %1197 = vst [vmem:[%s6020_s8 + $0xb8] sm:$0xff] %v4516_v42  ;;  %2701 = vrcp.f32 %v421_v54 }
 0x170   :  { %6366 = vst [vmem:[#allocation2_spill] sm:$0xff] %v4519_v29  ;;  %v2692_v47 = vpop.eup %2691  ;;  %1134 = vst [vmem:[%s6019_s7 + $0xc0] sm:$0xff] %v4519_v29 }
 0x171   :  { %1135 = vst [vmem:[%s6019_s7 + $0xc8] sm:$0xff] %v4522_v45  ;;  %v2694_v36 = vpop.eup %2693  ;;  %v4541_v2 = vmul.f32 %v2692_v47, %v6368_v56  ;;  %v4544_v35 = vmul.f32 %v2692_v47, %v6370_v5  ;;  %v965_v12 = vpop.xlane.xlu1 %964  ;;  %v6378_v56 = vld [vmem:[#allocation15_spill] sm:$0xff] }
 0x172   :  { %v424_v54 = vpop.xlane.xlu0 %423  ;;  %v4547_v48 = vmul.f32 %v2694_v36, %v6372_v53  ;;  %v4550_v28 = vmul.f32 %v2694_v36, %v6374_v13  ;;  %2703 = vrcp.f32 %v965_v12  ;;  %v6376_v13 = vld [vmem:[#allocation14_spill] sm:$0xff] }
 0x173   :  { %6369 = vst [vmem:[#allocation3_spill] sm:$0xff] %v4541_v2  ;;  %6371 = vst [vmem:[#allocation4_spill] sm:$0xff] %v4544_v35  ;;  %2705 = vrcp.f32 %v424_v54 }
 0x174   :  { %6373 = vst [vmem:[#allocation5_spill] sm:$0xff] %v4547_v48  ;;  %6375 = vst [vmem:[#allocation6_spill] sm:$0xff] %v4550_v28  ;;  %v2696_v47 = vpop.eup %2695 }
 0x175   :  { %1198 = vst [vmem:[%s6020_s8 + $0xc0] sm:$0xff] %v4541_v2  ;;  %1199 = vst [vmem:[%s6020_s8 + $0xc8] sm:$0xff] %v4544_v35  ;;  %v2698_v53 = vpop.eup %2697  ;;  %v4569_v36 = vmul.f32 %v2696_v47, %v6376_v13  ;;  %v4572_v5 = vmul.f32 %v2696_v47, %v6378_v56  ;;  %v968_v12 = vpop.xlane.xlu1 %967  ;;  %v6382_v35 = vld [vmem:[#allocation17_spill] sm:$0xff]  ;;  %v6385_v13 = vld [vmem:[#allocation19_spill] sm:$0xff] }
 0x176   :  { %1136 = vst [vmem:[%s6019_s7 + $0xd0] sm:$0xff] %v4547_v48  ;;  %1137 = vst [vmem:[%s6019_s7 + $0xd8] sm:$0xff] %v4550_v28  ;;  %v427_v54 = vpop.xlane.xlu0 %426  ;;  %v4575_v2 = vmul.f32 %v2698_v53, %v6380_v7  ;;  %v4578_v29 = vmul.f32 %v2698_v53, %v6382_v35  ;;  %2707 = vrcp.f32 %v968_v12  ;;  %v6384_v35 = vld [vmem:[#allocation18_spill] sm:$0xff] }
 0x177   :  { %6377 = vst [vmem:[#allocation7_spill] sm:$0xff] %v4569_v36  ;;  %6379 = vst [vmem:[#allocation8_spill] sm:$0xff] %v4572_v5  ;;  %2709 = vrcp.f32 %v427_v54 }
 0x178   :  { %6381 = vst [vmem:[#allocation9_spill] sm:$0xff] %v4575_v2  ;;  %6383 = vst [vmem:[#allocation10_spill] sm:$0xff] %v4578_v29  ;;  %v2700_v47 = vpop.eup %2699 }
 0x179   :  { %1200 = vst [vmem:[%s6020_s8 + $0xd0] sm:$0xff] %v4569_v36  ;;  %1201 = vst [vmem:[%s6020_s8 + $0xd8] sm:$0xff] %v4572_v5  ;;  %v2702_v7 = vpop.eup %2701  ;;  %v4597_v53 = vmul.f32 %v2700_v47, %v6384_v35  ;;  %v4600_v56 = vmul.f32 %v2700_v47, %v6385_v13  ;;  %v971_v12 = vpop.xlane.xlu1 %970  ;;  %v1275_v36 = vadd.f32 %v4205_v50, %v4191_v6  ;;  %v6386_v5 = vld [vmem:[#allocation20_spill] sm:$0xff] }
 0x17a   :  { %1138 = vst [vmem:[%s6019_s7 + $0xe0] sm:$0xff] %v4575_v2  ;;  %1139 = vst [vmem:[%s6019_s7 + $0xe8] sm:$0xff] %v4578_v29  ;;  %v430_v54 = vpop.xlane.xlu0 %429  ;;  %v4605_v48 = vmul.f32 %v2702_v7, %v6386_v5  ;;  %v6388_v2 = vld [vmem:[#allocation21_spill] sm:$0xff]  ;;  %2711 = vrcp.f32 %v971_v12  ;;  %v1238_v29 = vadd.f32 %v4208_v22, %v4194_v30  ;;  %v1417_v6 = vadd.f32 %v4233_v1, %v4211_v51  ;;  %v6389_v51 = vld [vmem:[#allocation22_spill] sm:$0xff] }
 0x17b   :  { %v4608_v28 = vmul.f32 %v2702_v7, %v6388_v2  ;;  %1202 = vst [vmem:[%s6020_s8 + $0xe0] sm:$0xff] %v4597_v53  ;;  %1203 = vst [vmem:[%s6020_s8 + $0xe8] sm:$0xff] %v4600_v56  ;;  %2713 = vrcp.f32 %v430_v54  ;;  %v1380_v50 = vadd.f32 %v4236_v15, %v4214_v57  ;;  %v1276_v30 = vadd.f32 %v1275_v36, %v4242_v24  ;;  %v6390_v57 = vld [vmem:[#allocation23_spill] sm:$0xff]  ;;  %v6391_v12 = vld [vmem:[#allocation24_spill] sm:$0xff] }
 0x17c   :  { %6387 = vst [vmem:[#allocation11_spill] sm:$0xff] %v4605_v48  ;;  %v2704_v2 = vpop.eup %2703  ;;  %1140 = vst [vmem:[%s6019_s7 + $0xf0] sm:$0xff] %v4605_v48  ;;  %v1239_v22 = vadd.f32 %v1238_v29, %v4239_v58  ;;  %v1418_v35 = vadd.f32 %v1417_v6, %v4264_v31  ;;  %v6392_v48 = vld [vmem:[#allocation25_spill] sm:$0xff] }
 0x17d   :  { %1141 = vst [vmem:[%s6019_s7 + $0xf8] sm:$0xff] %v4608_v28  ;;  %v2706_v5 = vpop.eup %2705  ;;  %v4635_v1 = vmul.f32 %v2704_v2, %v6389_v51  ;;  %v4638_v15 = vmul.f32 %v2704_v2, %v6390_v57  ;;  %v974_v47 = vpop.xlane.xlu1 %973  ;;  %v1381_v13 = vadd.f32 %v1380_v50, %v4261_v16  ;;  %v1277_v29 = vadd.f32 %v1276_v30, %v4270_v40  ;;  %v6395_v57 = vld [vmem:[#allocation28_spill] sm:$0xff] }
 0x17e   :  { %v433_v7 = vpop.xlane.xlu0 %432  ;;  %v4643_v54 = vmul.f32 %v2706_v5, %v6391_v12  ;;  %v4646_v24 = vmul.f32 %v2706_v5, %v6392_v48  ;;  %2715 = vrcp.f32 %v974_v47  ;;  %v1240_v58 = vadd.f32 %v1239_v22, %v4267_v59  ;;  %v6394_v5 = vld [vmem:[#allocation27_spill] sm:$0xff] }
 0x17f   :  { %1204 = vst [vmem:[%s6020_s8 + $0xf0] sm:$0xff] %v4635_v1  ;;  %1205 = vst [vmem:[%s6020_s8 + $0xf8] sm:$0xff] %v4638_v15  ;;  %2717 = vrcp.f32 %v433_v7  ;;  %v1419_v16 = vadd.f32 %v1418_v35, %v4292_v37  ;;  %v1278_v31 = vadd.f32 %v1277_v29, %v4298_v34  ;;  %v1382_v40 = vadd.f32 %v1381_v13, %v4289_v19  ;;  %v6393_v37 = vld [vmem:[#allocation26_spill] sm:$0xff]  ;;  %v6396_v35 = vld [vmem:[#allocation29_spill] sm:$0xff] }
 0x180   :  { %v2708_v48 = vpop.eup %2707  ;;  %1142 = vst [vmem:[%s6019_s7 + $0x100] sm:$0xff] %v4643_v54  ;;  %1143 = vst [vmem:[%s6019_s7 + $0x108] sm:$0xff] %v4646_v24  ;;  %v1241_v30 = vadd.f32 %v1240_v58, %v4295_v25 }
 0x181   :  { %v2710_v36 = vpop.eup %2709  ;;  %v4670_v59 = vmul.f32 %v2708_v48, %v3866_v63  ;;  %v4673_v6 = vmul.f32 %v2708_v48, %v6393_v37  ;;  %v977_v50 = vpop.xlane.xlu1 %976  ;;  %v1420_v22 = vadd.f32 %v1419_v16, %v4320_v43  ;;  %v1383_v19 = vadd.f32 %v1382_v40, %v4317_v26  ;;  %v6398_v48 = vld [vmem:[#allocation31_spill] sm:$0xff]  ;;  %v6399_v40 = vld [vmem:[#allocation32_spill] sm:$0xff] }
 0x182   :  { %v436_v2 = vpop.xlane.xlu0 %435  ;;  %v4678_v51 = vmul.f32 %v2710_v36, %v6394_v5  ;;  %v4681_v34 = vmul.f32 %v2710_v36, %v6395_v57  ;;  %2719 = vrcp.f32 %v977_v50  ;;  %v1279_v63 = vadd.f32 %v1278_v31, %v4326_v14 }
 0x183   :  { %1206 = vst [vmem:[%s6020_s8 + $0x100] sm:$0xff] %v4670_v59  ;;  %1207 = vst [vmem:[%s6020_s8 + $0x108] sm:$0xff] %v4673_v6  ;;  %2721 = vrcp.f32 %v436_v2  ;;  %v1242_v25 = vadd.f32 %v1241_v30, %v4323_v46  ;;  %v1421_v26 = vadd.f32 %v1420_v22, %v4348_v49  ;;  %v1384_v47 = vadd.f32 %v1383_v19, %v4345_v32  ;;  %v6397_v46 = vld [vmem:[#allocation30_spill] sm:$0xff]  ;;  %v6400_v2 = vld [vmem:[#allocation33_spill] sm:$0xff] }
 0x184   :  { %v2712_v43 = vpop.eup %2711  ;;  %1144 = vst [vmem:[%s6019_s7 + $0x110] sm:$0xff] %v4678_v51  ;;  %1145 = vst [vmem:[%s6019_s7 + $0x118] sm:$0xff] %v4681_v34  ;;  %v1280_v58 = vadd.f32 %v1279_v63, %v4354_v4  ;;  %v6402_v63 = vld [vmem:[#allocation35_spill] sm:$0xff] }
 0x185   :  { %v2714_v7 = vpop.eup %2713  ;;  %v4705_v14 = vmul.f32 %v2712_v43, %v6396_v35  ;;  %v4708_v13 = vmul.f32 %v2712_v43, %v6397_v46  ;;  %v980_v12 = vpop.xlane.xlu1 %979  ;;  %v1243_v16 = vadd.f32 %v1242_v25, %v4351_v0  ;;  %v1422_v32 = vadd.f32 %v1421_v26, %v4376_v55  ;;  %v6403_v43 = vld [vmem:[#allocation36_spill] sm:$0xff]  ;;  %v6404_v35 = vld [vmem:[#allocation37_spill] sm:$0xff] }
 0x186   :  { %v439_v29 = vpop.xlane.xlu0 %438  ;;  %v4713_v31 = vmul.f32 %v2714_v7, %v6398_v48  ;;  %v4716_v49 = vmul.f32 %v2714_v7, %v6399_v40  ;;  %2723 = vrcp.f32 %v980_v12  ;;  %v1281_v0 = vadd.f32 %v1280_v58, %v4382_v3  ;;  %v6406_v48 = vld [vmem:[#allocation39_spill] sm:$0xff] }
 0x187   :  { %1208 = vst [vmem:[%s6020_s8 + $0x110] sm:$0xff] %v4705_v14  ;;  %1209 = vst [vmem:[%s6020_s8 + $0x118] sm:$0xff] %v4708_v13  ;;  %2725 = vrcp.f32 %v439_v29  ;;  %v1385_v4 = vadd.f32 %v1384_v47, %v4373_v38  ;;  %v1244_v55 = vadd.f32 %v1243_v16, %v4379_v10  ;;  %v1423_v37 = vadd.f32 %v1422_v32, %v4404_v61  ;;  %v6401_v38 = vld [vmem:[#allocation34_spill] sm:$0xff]  ;;  %v6407_v32 = vld [vmem:[#allocation40_spill] sm:$0xff] }
 0x188   :  { %v2716_v36 = vpop.eup %2715  ;;  %1146 = vst [vmem:[%s6019_s7 + $0x120] sm:$0xff] %v4713_v31  ;;  %1147 = vst [vmem:[%s6019_s7 + $0x128] sm:$0xff] %v4716_v49  ;;  %v1282_v57 = vadd.f32 %v1281_v0, %v4410_v20 }
 0x189   :  { %v2718_v50 = vpop.eup %2717  ;;  %v4740_v3 = vmul.f32 %v2716_v36, %v6400_v2  ;;  %v4743_v30 = vmul.f32 %v2716_v36, %v6401_v38  ;;  %v983_v22 = vpop.xlane.xlu1 %982  ;;  %v1386_v19 = vadd.f32 %v1385_v4, %v4401_v44  ;;  %v1245_v61 = vadd.f32 %v1244_v55, %v4407_v18  ;;  %v6408_v55 = vld [vmem:[#allocation41_spill] sm:$0xff] }
 0x18a   :  { %v442_v5 = vpop.xlane.xlu0 %441  ;;  %v4748_v25 = vmul.f32 %v2718_v50, %v6402_v63  ;;  %v4751_v10 = vmul.f32 %v2718_v50, %v6403_v43  ;;  %2727 = vrcp.f32 %v983_v22  ;;  %v1424_v44 = vadd.f32 %v1423_v37, %v4432_v11 }
 0x18b   :  { %1210 = vst [vmem:[%s6020_s8 + $0x120] sm:$0xff] %v4740_v3  ;;  %1211 = vst [vmem:[%s6020_s8 + $0x128] sm:$0xff] %v4743_v30  ;;  %2729 = vrcp.f32 %v442_v5  ;;  %v1387_v20 = vadd.f32 %v1386_v19, %v4429_v21  ;;  %v1283_v18 = vadd.f32 %v1282_v57, %v4438_v27  ;;  %v1246_v47 = vadd.f32 %v1245_v61, %v4435_v9  ;;  %v6405_v21 = vld [vmem:[#allocation38_spill] sm:$0xff]  ;;  %v6410_v5 = vld [vmem:[#allocation43_spill] sm:$0xff] }
 0x18c   :  { %v2720_v26 = vpop.eup %2719  ;;  %1148 = vst [vmem:[%s6019_s7 + $0x130] sm:$0xff] %v4748_v25  ;;  %1149 = vst [vmem:[%s6019_s7 + $0x138] sm:$0xff] %v4751_v10  ;;  %v1425_v58 = vadd.f32 %v1424_v44, %v4460_v62  ;;  %v6411_v19 = vld [vmem:[#allocation44_spill] sm:$0xff]  ;;  %v6414_v44 = vld [vmem:[#allocation3_spill] sm:$0xff] }
 0x18d   :  { %v2722_v7 = vpop.eup %2721  ;;  %v4775_v11 = vmul.f32 %v2720_v26, %v6404_v35  ;;  %v4778_v46 = vmul.f32 %v2720_v26, %v6405_v21  ;;  %v986_v12 = vpop.xlane.xlu1 %985  ;;  %v1388_v16 = vadd.f32 %v1387_v20, %v4457_v60  ;;  %v1284_v9 = vadd.f32 %v1283_v18, %v4466_v33  ;;  %v6415_v18 = vld [vmem:[#allocation45_spill] sm:$0xff] }
 0x18e   :  { %v445_v29 = vpop.xlane.xlu0 %444  ;;  %v4783_v40 = vmul.f32 %v2722_v7, %v6406_v48  ;;  %v4786_v27 = vmul.f32 %v2722_v7, %v6407_v32  ;;  %2731 = vrcp.f32 %v986_v12  ;;  %v1247_v60 = vadd.f32 %v1246_v47, %v4463_v52  ;;  %v6416_v47 = vld [vmem:[#allocation46_spill] sm:$0xff]  ;;  %v6419_v48 = vld [vmem:[#allocation47_spill] sm:$0xff] }
 0x18f   :  { %1212 = vst [vmem:[%s6020_s8 + $0x130] sm:$0xff] %v4775_v11  ;;  %1213 = vst [vmem:[%s6020_s8 + $0x138] sm:$0xff] %v4778_v46  ;;  %2733 = vrcp.f32 %v445_v29  ;;  %v1426_v62 = vadd.f32 %v1425_v58, %v4488_v41  ;;  %v1285_v33 = vadd.f32 %v1284_v9, %v4494_v39  ;;  %v1389_v4 = vadd.f32 %v1388_v16, %v4485_v17  ;;  %v6409_v41 = vld [vmem:[#allocation42_spill] sm:$0xff]  ;;  %v6418_v58 = vld [vmem:[#allocation5_spill] sm:$0xff] }
 0x190   :  { %v2724_v0 = vpop.eup %2723  ;;  %1150 = vst [vmem:[%s6019_s7 + $0x140] sm:$0xff] %v4783_v40  ;;  %1151 = vst [vmem:[%s6019_s7 + $0x148] sm:$0xff] %v4786_v27  ;;  %v1248_v38 = vadd.f32 %v1247_v60, %v4491_v8  ;;  %v6417_v12 = vld [vmem:[#allocation6_spill] sm:$0xff]  ;;  %v6420_v9 = vld [vmem:[#allocation48_spill] sm:$0xff] }
 0x191   :  { %v2726_v36 = vpop.eup %2725  ;;  %v4810_v52 = vmul.f32 %v2724_v0, %v6408_v55  ;;  %v4813_v37 = vmul.f32 %v2724_v0, %v6409_v41  ;;  %v989_v50 = vpop.xlane.xlu1 %988  ;;  %v1427_v22 = vadd.f32 %v1426_v62, %v4516_v42  ;;  %v1390_v17 = vadd.f32 %v1389_v4, %v4513_v23  ;;  %v6412_v42 = vld [vmem:[#allocation2_spill] sm:$0xff]  ;;  %v6413_v23 = vld [vmem:[#allocation4_spill] sm:$0xff] }
 0x192   :  { %v448_v2 = vpop.xlane.xlu0 %447  ;;  %v4818_v57 = vmul.f32 %v2726_v36, %v6410_v5  ;;  %v4821_v39 = vmul.f32 %v2726_v36, %v6411_v19  ;;  %2735 = vrcp.f32 %v989_v50  ;;  %v1286_v8 = vadd.f32 %v1285_v33, %v4522_v45  ;;  %v6421_v62 = vld [vmem:[#allocation8_spill] sm:$0xff]  ;;  %v6422_v33 = vld [vmem:[#allocation10_spill] sm:$0xff]  ;;  %v6423_v36 = vld [vmem:[#allocation7_spill] sm:$0xff] }
 0x193   :  { %1214 = vst [vmem:[%s6020_s8 + $0x140] sm:$0xff] %v4810_v52  ;;  %1215 = vst [vmem:[%s6020_s8 + $0x148] sm:$0xff] %v4813_v37  ;;  %2737 = vrcp.f32 %v448_v2  ;;  %v1249_v63 = vadd.f32 %v1248_v38, %v6412_v42  ;;  %v1428_v61 = vadd.f32 %v1427_v22, %v6413_v23  ;;  %v1391_v20 = vadd.f32 %v1390_v17, %v6414_v44  ;;  %v6424_v50 = vld [vmem:[#allocation9_spill] sm:$0xff]  ;;  %v6427_v17 = vld [vmem:[#allocation50_spill] sm:$0xff] }
 0x194   :  { %v2728_v43 = vpop.eup %2727  ;;  %1152 = vst [vmem:[%s6019_s7 + $0x150] sm:$0xff] %v4818_v57  ;;  %1153 = vst [vmem:[%s6019_s7 + $0x158] sm:$0xff] %v4821_v39  ;;  %v1287_v29 = vadd.f32 %v1286_v8, %v6417_v12  ;;  %v6425_v5 = vld [vmem:[#allocation49_spill] sm:$0xff]  ;;  %v6428_v44 = vld [vmem:[#allocation51_spill] sm:$0xff] }
 0x195   :  { %v2730_v26 = vpop.eup %2729  ;;  %v4845_v45 = vmul.f32 %v2728_v43, %v6415_v18  ;;  %v4848_v7 = vmul.f32 %v2728_v43, %v6416_v47  ;;  %v992_v35 = vpop.xlane.xlu1 %991  ;;  %v1250_v16 = vadd.f32 %v1249_v63, %v6418_v58  ;;  %v1429_v0 = vadd.f32 %v1428_v61, %v6421_v62  ;;  %v1578_v61 = vld [vmem:[%s6021_s0 + $0x8] sm:$0xff]  ;;  %v6431_v58 = vld [vmem:[#allocation53_spill] sm:$0xff] }
 0x196   :  { %v451_v21 = vpop.xlane.xlu0 %450  ;;  %v4853_v32 = vmul.f32 %v2730_v26, %v6419_v48  ;;  %v4856_v60 = vmul.f32 %v2730_v26, %v6420_v9  ;;  %2739 = vrcp.f32 %v992_v35  ;;  %v1288_v4 = vadd.f32 %v1287_v29, %v6422_v33  ;;  %v6430_v18 = vld [vmem:[#allocation11_spill] sm:$0xff]  ;;  %1661 = vmatprep.mubr.f32.mxu0 %v1578_v61 }
 0x197   :  { %1216 = vst [vmem:[%s6020_s8 + $0x150] sm:$0xff] %v4845_v45  ;;  %1217 = vst [vmem:[%s6020_s8 + $0x158] sm:$0xff] %v4848_v7  ;;  %2741 = vrcp.f32 %v451_v21  ;;  %v1392_v55 = vadd.f32 %v1391_v20, %v6423_v36  ;;  %v1251_v2 = vadd.f32 %v1250_v16, %v6424_v50  ;;  %v1430_v38 = vadd.f32 %v1429_v0, %v4600_v56  ;;  %v6429_v56 = vld [vmem:[#allocation52_spill] sm:$0xff]  ;;  %v6434_v33 = vld [vmem:[#allocation55_spill] sm:$0xff] }
 0x198   :  { %v2732_v41 = vpop.eup %2731  ;;  %1154 = vst [vmem:[%s6019_s7 + $0x160] sm:$0xff] %v4853_v32  ;;  %1155 = vst [vmem:[%s6019_s7 + $0x168] sm:$0xff] %v4856_v60  ;;  %v1289_v43 = vadd.f32 %v1288_v4, %v4608_v28  ;;  %v6435_v36 = vld [vmem:[#allocation56_spill] sm:$0xff] }
 0x199   :  { %v2734_v22 = vpop.eup %2733  ;;  %v4880_v19 = vmul.f32 %v2732_v41, %v6425_v5  ;;  %v4883_v8 = vmul.f32 %v2732_v41, %v6427_v17  ;;  %v995_v42 = vpop.xlane.xlu1 %994  ;;  %v1393_v23 = vadd.f32 %v1392_v55, %v4597_v53  ;;  %v1252_v47 = vadd.f32 %v1251_v2, %v6430_v18  ;;  %v1580_v41 = vld [vmem:[%s6021_s0 + $0x18] sm:$0xff]  ;;  %v6440_v18 = vld [vmem:[#allocation59_spill] sm:$0xff] }
 0x19a   :  { %v454_v63 = vpop.xlane.xlu0 %453  ;;  %v4891_v20 = vmul.f32 %v2734_v22, %v6428_v44  ;;  %v4894_v26 = vmul.f32 %v2734_v22, %v6429_v56  ;;  %2743 = vrcp.f32 %v995_v42  ;;  %v1431_v28 = vadd.f32 %v1430_v38, %v4638_v15  ;;  %1750 = vmatprep.mubr.f32.mxu1 %v1580_v41  ;;  %v6436_v17 = vld [vmem:[#allocation57_spill] sm:$0xff] }
 0x19b   :  { %6426 = vst [vmem:[#allocation12_spill] sm:$0xff] %v4880_v19  ;;  %1218 = vst [vmem:[%s6020_s8 + $0x160] sm:$0xff] %v4880_v19  ;;  %2745 = vrcp.f32 %v454_v63  ;;  %v1394_v53 = vadd.f32 %v1393_v23, %v4635_v1  ;;  %v1290_v21 = vadd.f32 %v1289_v43, %v4646_v24  ;;  %v1253_v12 = vadd.f32 %v1252_v47, %v4643_v54  ;;  %v6433_v1 = vld [vmem:[#allocation54_spill] sm:$0xff] }
 0x19c   :  { %1219 = vst [vmem:[%s6020_s8 + $0x168] sm:$0xff] %v4883_v8  ;;  %v2736_v35 = vpop.eup %2735  ;;  %1156 = vst [vmem:[%s6019_s7 + $0x170] sm:$0xff] %v4891_v20  ;;  %v1432_v62 = vadd.f32 %v1431_v28, %v4673_v6  ;;  %v6438_v63 = vld [vmem:[#allocation58_spill] sm:$0xff]  ;;  %v6441_v28 = vld [vmem:[#allocation60_spill] sm:$0xff] }
 0x19d   :  { %1157 = vst [vmem:[%s6019_s7 + $0x178] sm:$0xff] %v4894_v26  ;;  %v2738_v29 = vpop.eup %2737  ;;  %v4918_v15 = vmul.f32 %v2736_v35, %v6431_v58  ;;  %v4921_v16 = vmul.f32 %v2736_v35, %v6433_v1  ;;  %v998_v48 = vpop.xlane.xlu1 %997  ;;  %v1395_v0 = vadd.f32 %v1394_v53, %v4670_v59  ;;  %v1291_v54 = vadd.f32 %v1290_v21, %v4681_v34 }
 0x19e   :  { %v457_v9 = vpop.xlane.xlu0 %456  ;;  %v4926_v4 = vmul.f32 %v2738_v29, %v6434_v33  ;;  %v4929_v55 = vmul.f32 %v2738_v29, %v6435_v36  ;;  %2747 = vrcp.f32 %v998_v48  ;;  %v1254_v59 = vadd.f32 %v1253_v12, %v4678_v51 }
 0x19f   :  { %6432 = vst [vmem:[#allocation13_spill] sm:$0xff] %v4918_v15  ;;  %1220 = vst [vmem:[%s6020_s8 + $0x170] sm:$0xff] %v4918_v15  ;;  %2749 = vrcp.f32 %v457_v9  ;;  %v1433_v50 = vadd.f32 %v1432_v62, %v4708_v13  ;;  %v1292_v38 = vadd.f32 %v1291_v54, %v4716_v49  ;;  %v1396_v22 = vadd.f32 %v1395_v0, %v4705_v14  ;;  %v6442_v9 = vld [vmem:[#allocation61_spill] sm:$0xff]  ;;  %v6444_v0 = vld [vmem:[#allocation62_spill] sm:$0xff] }
 0x1a0   :  { %1221 = vst [vmem:[%s6020_s8 + $0x178] sm:$0xff] %v4921_v16  ;;  %v2740_v2 = vpop.eup %2739  ;;  %1158 = vst [vmem:[%s6019_s7 + $0x180] sm:$0xff] %v4926_v4  ;;  %v1255_v44 = vadd.f32 %v1254_v59, %v4713_v31 }
 0x1a1   :  { %1159 = vst [vmem:[%s6019_s7 + $0x188] sm:$0xff] %v4929_v55  ;;  %v2742_v5 = vpop.eup %2741  ;;  %v4956_v42 = vmul.f32 %v2740_v2, %v6436_v17  ;;  %v4959_v43 = vmul.f32 %v2740_v2, %v6438_v63  ;;  %v1001_v23 = vpop.xlane.xlu1 %1000  ;;  %v1434_v56 = vadd.f32 %v1433_v50, %v4743_v30  ;;  %v1397_v35 = vadd.f32 %v1396_v22, %v4740_v3  ;;  %v5001_v50 = vld [vmem:[%s6022_s3] sm:$0xff]  ;;  %v5006_v2 = vld [vmem:[%s6022_s3 + $0x8] sm:$0xff] }
 0x1a2   :  { %v460_v61 = vpop.xlane.xlu0 %459  ;;  %v4964_v47 = vmul.f32 %v2742_v5, %v6440_v18  ;;  %v4967_v53 = vmul.f32 %v2742_v5, %v6441_v28  ;;  %2751 = vrcp.f32 %v1001_v23  ;;  %v1293_v21 = vadd.f32 %v1292_v38, %v4751_v10  ;;  %6445 = vst [vmem:[#allocation17_spill] sm:$0xff] %v5001_v50  ;;  %6446 = vst [vmem:[#allocation18_spill] sm:$0xff] %v5006_v2  ;;  %v6447_v38 = vld [vmem:[#allocation63_spill] sm:$0xff]  ;;  %v6449_v5 = vld [vmem:[#allocation64_spill] sm:$0xff] }
 0x1a3   :  { %6437 = vst [vmem:[#allocation14_spill] sm:$0xff] %v4956_v42  ;;  %6439 = vst [vmem:[#allocation15_spill] sm:$0xff] %v4959_v43  ;;  %2753 = vrcp.f32 %v460_v61  ;;  %v1256_v12 = vadd.f32 %v1255_v44, %v4748_v25  ;;  %v1435_v58 = vadd.f32 %v1434_v56, %v4778_v46  ;;  %v1398_v1 = vadd.f32 %v1397_v35, %v4775_v11 }
 0x1a4   :  { %1222 = vst [vmem:[%s6020_s8 + $0x180] sm:$0xff] %v4956_v42  ;;  %1223 = vst [vmem:[%s6020_s8 + $0x188] sm:$0xff] %v4959_v43  ;;  %v2744_v29 = vpop.eup %2743  ;;  %v1294_v41 = vadd.f32 %v1293_v21, %v4786_v27  ;;  %v1538_v28 = vadd.f32 %v5006_v2, %v5001_v50  ;;  %v6450_v21 = vld [vmem:[#allocation65_spill] sm:$0xff] }
 0x1a5   :  { %1160 = vst [vmem:[%s6019_s7 + $0x190] sm:$0xff] %v4964_v47  ;;  %1161 = vst [vmem:[%s6019_s7 + $0x198] sm:$0xff] %v4967_v53  ;;  %v2746_v48 = vpop.eup %2745  ;;  %v4991_v62 = vmul.f32 %v2744_v29, %v6442_v9  ;;  %v4994_v33 = vmul.f32 %v2744_v29, %v6444_v0  ;;  %v1004_v36 = vpop.xlane.xlu1 %1003  ;;  %v1257_v59 = vadd.f32 %v1256_v12, %v4783_v40  ;;  %v6452_v29 = vld [vmem:[#allocation66_spill] sm:$0xff] }
 0x1a6   :  { %v463_v54 = vpop.xlane.xlu0 %462  ;;  %v5009_v22 = vmul.f32 %v2746_v48, %v6447_v38  ;;  %v5012_v17 = vmul.f32 %v2746_v48, %v6449_v5  ;;  %2755 = vrcp.f32 %v1004_v36  ;;  %v1436_v63 = vadd.f32 %v1435_v58, %v4813_v37  ;;  %v5048_v36 = vld [vmem:[%s6022_s3 + $0x10] sm:$0xff] }
 0x1a7   :  { %6443 = vst [vmem:[#allocation16_spill] sm:$0xff] %v4991_v62  ;;  %1224 = vst [vmem:[%s6020_s8 + $0x190] sm:$0xff] %v4991_v62  ;;  %2757 = vrcp.f32 %v463_v54  ;;  %v1295_v23 = vadd.f32 %v1294_v41, %v4821_v39  ;;  %v1399_v61 = vadd.f32 %v1398_v1, %v4810_v52  ;;  %v1258_v56 = vadd.f32 %v1257_v59, %v4818_v57  ;;  %v6454_v54 = vld [vmem:[#allocation67_spill] sm:$0xff]  ;;  %v6455_v59 = vld [vmem:[#allocation68_spill] sm:$0xff] }
 0x1a8   :  { %6448 = vst [vmem:[#allocation19_spill] sm:$0xff] %v5009_v22  ;;  %1225 = vst [vmem:[%s6020_s8 + $0x198] sm:$0xff] %v4994_v33  ;;  %v2748_v44 = vpop.eup %2747  ;;  %v1437_v18 = vadd.f32 %v1436_v63, %v4848_v7 }
 0x1a9   :  { %1162 = vst [vmem:[%s6019_s7 + $0x1a0] sm:$0xff] %v5009_v22  ;;  %1163 = vst [vmem:[%s6019_s7 + $0x1a8] sm:$0xff] %v5012_v17  ;;  %v2750_v35 = vpop.eup %2749  ;;  %v5038_v12 = vmul.f32 %v2748_v44, %v6450_v21  ;;  %v5041_v58 = vmul.f32 %v2748_v44, %v6452_v29  ;;  %v1007_v1 = vpop.xlane.xlu1 %1006  ;;  %v1296_v9 = vadd.f32 %v1295_v23, %v4856_v60  ;;  %v6456_v29 = vld [vmem:[#allocation69_spill] sm:$0xff] }
 0x1aa   :  { %v466_v48 = vpop.xlane.xlu0 %465  ;;  %v1400_v0 = vadd.f32 %v1399_v61, %v4845_v45  ;;  %6453 = vst [vmem:[#allocation21_spill] sm:$0xff] %v5048_v36  ;;  %v5051_v41 = vmul.f32 %v2750_v35, %v6454_v54  ;;  %v5054_v38 = vmul.f32 %v2750_v35, %v6455_v59  ;;  %2759 = vrcp.f32 %v1007_v1  ;;  %v6458_v1 = vld [vmem:[#allocation70_spill] sm:$0xff] }
 0x1ab   :  { %6451 = vst [vmem:[#allocation20_spill] sm:$0xff] %v5038_v12  ;;  %v1259_v5 = vadd.f32 %v1258_v56, %v4853_v32  ;;  %1226 = vst [vmem:[%s6020_s8 + $0x1a0] sm:$0xff] %v5038_v12  ;;  %2761 = vrcp.f32 %v466_v48  ;;  %v1297_v63 = vadd.f32 %v1296_v9, %v4894_v26  ;;  %v1438_v23 = vadd.f32 %v1437_v18, %v4883_v8 }
 0x1ac   :  { %1227 = vst [vmem:[%s6020_s8 + $0x1a8] sm:$0xff] %v5041_v58  ;;  %v2752_v61 = vpop.eup %2751  ;;  %1164 = vst [vmem:[%s6019_s7 + $0x1b0] sm:$0xff] %v5051_v41  ;;  %v1401_v56 = vadd.f32 %v1400_v0, %v4880_v19  ;;  %v1539_v35 = vadd.f32 %v1538_v28, %v5048_v36  ;;  %v6461_v0 = vld [vmem:[#allocation71_spill] sm:$0xff]  ;;  %v6463_v36 = vld [vmem:[#allocation72_spill] sm:$0xff] }
 0x1ad   :  { %1165 = vst [vmem:[%s6019_s7 + $0x1b8] sm:$0xff] %v5054_v38  ;;  %v1260_v44 = vadd.f32 %v1259_v5, %v4891_v20  ;;  %v2754_v21 = vpop.eup %2753  ;;  %v5079_v18 = vmul.f32 %v2752_v61, %v6456_v29  ;;  %v5082_v48 = vmul.f32 %v2752_v61, %v6458_v1  ;;  %v1010_v9 = vpop.xlane.xlu1 %1009  ;;  %v1298_v59 = vadd.f32 %v1297_v63, %v4929_v55  ;;  %v5089_v5 = vld [vmem:[%s6022_s3 + $0x18] sm:$0xff] }
 0x1ae   :  { %v469_v54 = vpop.xlane.xlu0 %468  ;;  %v1439_v2 = vadd.f32 %v1438_v23, %v4921_v16  ;;  %6460 = vst [vmem:[#allocation24_spill] sm:$0xff] %v5089_v5  ;;  %v5092_v28 = vmul.f32 %v2754_v21, %v6461_v0  ;;  %v5095_v29 = vmul.f32 %v2754_v21, %v6463_v36  ;;  %2763 = vrcp.f32 %v1010_v9 }
 0x1af   :  { %6457 = vst [vmem:[#allocation22_spill] sm:$0xff] %v5079_v18  ;;  %6459 = vst [vmem:[#allocation23_spill] sm:$0xff] %v5082_v48  ;;  %v1261_v61 = vadd.f32 %v1260_v44, %v4926_v4  ;;  %2765 = vrcp.f32 %v469_v54  ;;  %v1299_v63 = vadd.f32 %v1298_v59, %v4967_v53  ;;  %v1402_v23 = vadd.f32 %v1401_v56, %v4918_v15  ;;  %v6465_v54 = vld [vmem:[#allocation73_spill] sm:$0xff]  ;;  %v6467_v59 = vld [vmem:[#allocation74_spill] sm:$0xff] }
 0x1b0   :  { %6462 = vst [vmem:[#allocation25_spill] sm:$0xff] %v5092_v28  ;;  %6464 = vst [vmem:[#allocation26_spill] sm:$0xff] %v5095_v29  ;;  %v2756_v36 = vpop.eup %2755  ;;  %v1440_v21 = vadd.f32 %v1439_v2, %v4959_v43  ;;  %v1540_v1 = vadd.f32 %v1539_v35, %v5089_v5  ;;  %v6470_v2 = vld [vmem:[#allocation75_spill] sm:$0xff]  ;;  %v6472_v35 = vld [vmem:[#allocation76_spill] sm:$0xff] }
 0x1b1   :  { %1228 = vst [vmem:[%s6020_s8 + $0x1b0] sm:$0xff] %v5079_v18  ;;  %1229 = vst [vmem:[%s6020_s8 + $0x1b8] sm:$0xff] %v5082_v48  ;;  %v1262_v44 = vadd.f32 %v1261_v61, %v4964_v47  ;;  %v2758_v9 = vpop.eup %2757  ;;  %v5120_v56 = vmul.f32 %v2756_v36, %v6465_v54  ;;  %v5123_v0 = vmul.f32 %v2756_v36, %v6467_v59  ;;  %v1013_v50 = vpop.xlane.xlu1 %1012  ;;  %v5130_v61 = vld [vmem:[%s6022_s3 + $0x20] sm:$0xff]  ;;  %v6474_v59 = vld [vmem:[#allocation77_spill] sm:$0xff] }
 0x1b2   :  { %1166 = vst [vmem:[%s6019_s7 + $0x1c0] sm:$0xff] %v5092_v28  ;;  %1167 = vst [vmem:[%s6019_s7 + $0x1c8] sm:$0xff] %v5095_v29  ;;  %v1300_v15 = vadd.f32 %v1299_v63, %v5012_v17  ;;  %v1403_v19 = vadd.f32 %v1402_v23, %v4956_v42  ;;  %v5133_v43 = vmul.f32 %v2758_v9, %v6470_v2  ;;  %2767 = vrcp.f32 %v1013_v50  ;;  %v6476_v2 = vld [vmem:[#allocation78_spill] sm:$0xff] }
 0x1b3   :  { %6466 = vst [vmem:[#allocation27_spill] sm:$0xff] %v5120_v56  ;;  %6468 = vst [vmem:[#allocation28_spill] sm:$0xff] %v5123_v0  ;;  %v5136_v5 = vmul.f32 %v2758_v9, %v6472_v35  ;;  %v1263_v36 = vadd.f32 %v1262_v44, %v5009_v22  ;;  %v1441_v63 = vadd.f32 %v1440_v21, %v4994_v33  ;;  %v5171_v22 = vld [vmem:[%s6022_s3 + $0x28] sm:$0xff] }
 0x1b4   :  { %6469 = vst [vmem:[#allocation29_spill] sm:$0xff] %v5130_v61  ;;  %6471 = vst [vmem:[#allocation30_spill] sm:$0xff] %v5133_v43  ;;  %v1404_v23 = vadd.f32 %v1403_v19, %v4991_v62  ;;  %v2760_v54 = vpop.eup %2759  ;;  %v1301_v50 = vadd.f32 %v1300_v15, %v5054_v38  ;;  %v1541_v9 = vadd.f32 %v1540_v1, %v5130_v61  ;;  %v6479_v15 = vld [vmem:[#allocation79_spill] sm:$0xff]  ;;  %v6481_v1 = vld [vmem:[#allocation80_spill] sm:$0xff] }
 0x1b5   :  { %6473 = vst [vmem:[#allocation31_spill] sm:$0xff] %v5136_v5  ;;  %1230 = vst [vmem:[%s6020_s8 + $0x1c0] sm:$0xff] %v5120_v56  ;;  %v1264_v44 = vadd.f32 %v1263_v36, %v5051_v41  ;;  %v2762_v21 = vpop.eup %2761  ;;  %v5161_v19 = vmul.f32 %v2760_v54, %v6474_v59  ;;  %v5164_v35 = vmul.f32 %v2760_v54, %v6476_v2 }
 0x1b6   :  { %1231 = vst [vmem:[%s6020_s8 + $0x1c8] sm:$0xff] %v5123_v0  ;;  %1168 = vst [vmem:[%s6019_s7 + $0x1d0] sm:$0xff] %v5133_v43  ;;  %v1442_v62 = vadd.f32 %v1441_v63, %v5041_v58  ;;  %v1405_v42 = vadd.f32 %v1404_v23, %v5038_v12  ;;  %v5174_v36 = vmul.f32 %v2762_v21, %v6479_v15  ;;  %v6483_v15 = vld [vmem:[#allocation81_spill] sm:$0xff] }
 0x1b7   :  { %1169 = vst [vmem:[%s6019_s7 + $0x1d8] sm:$0xff] %v5136_v5  ;;  %6475 = vst [vmem:[#allocation32_spill] sm:$0xff] %v5161_v19  ;;  %v5177_v61 = vmul.f32 %v2762_v21, %v6481_v1  ;;  %v1302_v59 = vadd.f32 %v1301_v50, %v5095_v29  ;;  %v1265_v54 = vadd.f32 %v1264_v44, %v5092_v28  ;;  %v6485_v1 = vld [vmem:[#allocation82_spill] sm:$0xff]  ;;  %v5213_v29 = vld [vmem:[%s6022_s3 + $0x30] sm:$0xff] }
 0x1b8   :  { %6477 = vst [vmem:[#allocation33_spill] sm:$0xff] %v5164_v35  ;;  %6478 = vst [vmem:[#allocation34_spill] sm:$0xff] %v5171_v22  ;;  %v1443_v63 = vadd.f32 %v1442_v62, %v5082_v48  ;;  %v1406_v23 = vadd.f32 %v1405_v42, %v5079_v18  ;;  %v2764_v21 = vpop.eup %2763  ;;  %v1542_v2 = vadd.f32 %v1541_v9, %v5171_v22  ;;  %v6490_v9 = vld [vmem:[#allocation84_spill] sm:$0xff] }
 0x1b9   :  { %6480 = vst [vmem:[#allocation35_spill] sm:$0xff] %v5174_v36  ;;  %6482 = vst [vmem:[#allocation36_spill] sm:$0xff] %v5177_v61  ;;  %v1303_v50 = vadd.f32 %v1302_v59, %v5136_v5  ;;  %v1266_v44 = vadd.f32 %v1265_v54, %v5133_v43  ;;  %v2766_v62 = vpop.eup %2765  ;;  %v5203_v42 = vmul.f32 %v2764_v21, %v6483_v15  ;;  %v6488_v59 = vld [vmem:[#allocation83_spill] sm:$0xff] }
 0x1ba   :  { %1232 = vst [vmem:[%s6020_s8 + $0x1d0] sm:$0xff] %v5161_v19  ;;  %1233 = vst [vmem:[%s6020_s8 + $0x1d8] sm:$0xff] %v5164_v35  ;;  %v5206_v18 = vmul.f32 %v2764_v21, %v6485_v1  ;;  %v1444_v12 = vadd.f32 %v1443_v63, %v5123_v0  ;;  %v1407_v28 = vadd.f32 %v1406_v23, %v5120_v56 }
 0x1bb   :  { %1170 = vst [vmem:[%s6019_s7 + $0x1e0] sm:$0xff] %v5174_v36  ;;  %1171 = vst [vmem:[%s6019_s7 + $0x1e8] sm:$0xff] %v5177_v61  ;;  %v5216_v54 = vmul.f32 %v2766_v62, %v6488_v59  ;;  %v5219_v22 = vmul.f32 %v2766_v62, %v6490_v9  ;;  %v1304_v15 = vadd.f32 %v1303_v50, %v5177_v61 }
 0x1bc   :  { %6484 = vst [vmem:[#allocation37_spill] sm:$0xff] %v5203_v42  ;;  %6486 = vst [vmem:[#allocation38_spill] sm:$0xff] %v5206_v18  ;;  %v1267_v21 = vadd.f32 %v1266_v44, %v5174_v36  ;;  %v1445_v63 = vadd.f32 %v1444_v12, %v5164_v35  ;;  %v1408_v23 = vadd.f32 %v1407_v28, %v5161_v19  ;;  %v2768_v62 = vpop.eup %2767  ;;  %v6492_v12 = vld [vmem:[#allocation85_spill] sm:$0xff]  ;;  %v6494_v28 = vld [vmem:[#allocation86_spill] sm:$0xff] }
 0x1bd   :  { %6487 = vst [vmem:[#allocation39_spill] sm:$0xff] %v5213_v29  ;;  %6489 = vst [vmem:[#allocation40_spill] sm:$0xff] %v5216_v54  ;;  %v1305_v50 = vadd.f32 %v1304_v15, %v5219_v22  ;;  %v1543_v1 = vadd.f32 %v1542_v2, %v5213_v29  ;;  %v5245_v59 = vmul.f32 %v2768_v62, %v6492_v12  ;;  %v5255_v36 = vld [vmem:[%s6022_s3 + $0x38] sm:$0xff]  ;;  %v5271_v29 = vld [vmem:[%s6022_s3 + $0x40] sm:$0xff] }
 0x1be   :  { %6491 = vst [vmem:[#allocation41_spill] sm:$0xff] %v5219_v22  ;;  %1234 = vst [vmem:[%s6020_s8 + $0x1e0] sm:$0xff] %v5203_v42  ;;  %v1268_v44 = vadd.f32 %v1267_v21, %v5216_v54  ;;  %v5248_v9 = vmul.f32 %v2768_v62, %v6494_v28  ;;  %v1446_v19 = vadd.f32 %v1445_v63, %v5206_v18 }
 0x1bf   :  { %1235 = vst [vmem:[%s6020_s8 + $0x1e8] sm:$0xff] %v5206_v18  ;;  %1172 = vst [vmem:[%s6019_s7 + $0x1f0] sm:$0xff] %v5216_v54  ;;  %v1409_v56 = vadd.f32 %v1408_v23, %v5203_v42  ;;  %v1306_v15 = vrot.slane %v1305_v50, 4  ;;  %v1544_v62 = vadd.f32 %v1543_v1, %v5255_v36 }
 0x1c0   :  { %1173 = vst [vmem:[%s6019_s7 + $0x1f8] sm:$0xff] %v5219_v22  ;;  %6493 = vst [vmem:[#allocation42_spill] sm:$0xff] %v5245_v59  ;;  %v1269_v22 = vrot.slane %v1268_v44, 4  ;;  %v1447_v2 = vadd.f32 %v1446_v19, %v5248_v9 }
 0x1c1   :  { %6495 = vst [vmem:[#allocation43_spill] sm:$0xff] %v5248_v9  ;;  %6496 = vst [vmem:[#allocation44_spill] sm:$0xff] %v5255_v36  ;;  %v1410_v21 = vadd.f32 %v1409_v56, %v5245_v59  ;;  %v1307_v63 = vadd.f32 %v1306_v15, %v1305_v50  ;;  %v1545_v19 = vadd.f32 %v1544_v62, %v5271_v29 }
 0x1c2   :  { %1236 = vst [vmem:[%s6020_s8 + $0x1f0] sm:$0xff] %v5245_v59  ;;  %1237 = vst [vmem:[%s6020_s8 + $0x1f8] sm:$0xff] %v5248_v9  ;;  %v1270_v23 = vadd.f32 %v1269_v22, %v1268_v44  ;;  %v1448_v12 = vrot.slane %v1447_v2, 4  ;;  %v5277_v22 = vld [vmem:[%s6022_s3 + $0x48] sm:$0xff] }
 0x1c3   :  { %v1411_v28 = vrot.slane %v1410_v21, 4  ;;  %6497 = vst [vmem:[#allocation2_spill] sm:$0xff] %v5271_v29  ;;  %v1308_v42 = vrot.slane %v1307_v63, 2  ;;  %6498 = vst [vmem:[#allocation4_spill] sm:$0xff] %v5277_v22 }
 0x1c4   :  { %v1271_v18 = vrot.slane %v1270_v23, 2  ;;  %v1449_v54 = vadd.f32 %v1448_v12, %v1447_v2  ;;  %v1546_v2 = vadd.f32 %v1545_v19, %v5277_v22 }
 0x1c5   :  { %v1412_v61 = vadd.f32 %v1411_v28, %v1410_v21  ;;  %v1309_v35 = vadd.f32 %v1308_v42, %v1307_v63 }
 0x1c6   :  { %v1272_v0 = vadd.f32 %v1271_v18, %v1270_v23  ;;  %v1450_v56 = vrot.slane %v1449_v54, 2  ;;  %v5283_v18 = vld [vmem:[%s6022_s3 + $0x50] sm:$0xff] }
 0x1c7   :  { %v1413_v50 = vrot.slane %v1412_v61, 2  ;;  %v1310_v44 = vrot.slane %v1309_v35, 1  ;;  %6499 = vst [vmem:[#allocation3_spill] sm:$0xff] %v5283_v18  ;;  %v1547_v28 = vadd.f32 %v1546_v2, %v5283_v18  ;;  %v2845_v2 = vld [vmem:[%s6019_s7 + $0x28] sm:$0xff] }
 0x1c8   :  { %v1273_v1 = vrot.slane %v1272_v0, 1  ;;  %v1451_v15 = vadd.f32 %v1450_v56, %v1449_v54 }
 0x1c9   :  { %v1414_v36 = vadd.f32 %v1413_v50, %v1412_v61  ;;  %v1311_v59 = vadd.f32 %v1310_v44, %v1309_v35  ;;  %v2843_v50 = vld [vmem:[%s6019_s7 + $0x8] sm:$0xff] }
 0x1ca   :  { %v1274_v9 = vadd.f32 %v1273_v1, %v1272_v0  ;;  %v1452_v21 = vrot.slane %v1451_v15, 1  ;;  %v5289_v0 = vld [vmem:[%s6022_s3 + $0x58] sm:$0xff] }
 0x1cb   :  { %v1415_v42 = vrot.slane %v1414_v36, 1  ;;  %v1313_v63 = vmax.f32 %v1311_v59, 1e-12  ;;  %6500 = vst [vmem:[#allocation45_spill] sm:$0xff] %v5289_v0  ;;  %v1548_v54 = vadd.f32 %v1547_v28, %v5289_v0  ;;  %v5295_v59 = vld [vmem:[%s6022_s3 + $0x60] sm:$0xff]  ;;  %v2844_v1 = vld [vmem:[%s6019_s7 + $0x18] sm:$0xff] }
 0x1cc   :  { %v1312_v23 = vmax.f32 %v1274_v9, 1e-12  ;;  %v1453_v62 = vadd.f32 %v1452_v21, %v1451_v15  ;;  %6501 = vst [vmem:[#allocation46_spill] sm:$0xff] %v5295_v59  ;;  %v5301_v9 = vld [vmem:[%s6022_s3 + $0x68] sm:$0xff] }
 0x1cd   :  { %v1416_v12 = vadd.f32 %v1415_v42, %v1414_v36  ;;  %2769 = vrcp.f32 %v1313_v63  ;;  %v1549_v36 = vadd.f32 %v1548_v54, %v5295_v59  ;;  %6502 = vst [vmem:[#allocation6_spill] sm:$0xff] %v5301_v9  ;;  %v2846_v42 = vld [vmem:[%s6019_s7 + $0x38] sm:$0xff] }
 0x1ce   :  { %2771 = vrcp.f32 %v1312_v23  ;;  %v1455_v61 = vmax.f32 %v1453_v62, 1e-12  ;;  %v2847_v23 = vld [vmem:[%s6019_s7] sm:$0xff] }
 0x1cf   :  { %v1454_v35 = vmax.f32 %v1416_v12, 1e-12  ;;  %v2848_v12 = vld [vmem:[%s6019_s7 + $0x10] sm:$0xff] }
 0x1d0   :  { %2773 = vrcp.f32 %v1455_v61  ;;  %v1550_v61 = vadd.f32 %v1549_v36, %v5301_v9  ;;  %v2851_v36 = vld [vmem:[%s6020_s8 + $0x8] sm:$0xff] }
 0x1d1   :  { %2775 = vrcp.f32 %v1454_v35 }
 0x1d7   :  { %v5303_v19 = vpop.eup %2769 }
 0x1d8   :  { %v5305_v56 = vpop.eup %2771  ;;  %v1317_v44 = vmul.f32 %v2843_v50, %v5303_v19  ;;  %v1319_v15 = vmul.f32 %v2844_v1, %v5303_v19  ;;  %v1321_v21 = vmul.f32 %v2845_v2, %v5303_v19  ;;  %v1323_v63 = vmul.f32 %v2846_v42, %v5303_v19  ;;  %v2849_v1 = vld [vmem:[%s6019_s7 + $0x20] sm:$0xff]  ;;  %v2850_v42 = vld [vmem:[%s6019_s7 + $0x30] sm:$0xff] }
 0x1d9   :  { %v1316_v62 = vmul.f32 %v2847_v23, %v5305_v56  ;;  %v1318_v28 = vmul.f32 %v2848_v12, %v5305_v56  ;;  %v1320_v2 = vmul.f32 %v2849_v1, %v5305_v56  ;;  %v1322_v23 = vmul.f32 %v2850_v42, %v5305_v56  ;;  %v2855_v42 = vld [vmem:[%s6020_s8 + $0x10] sm:$0xff] }
 0x1da   :  { %v5332_v35 = vpop.eup %2773  ;;  %v2209_v54 = vpack.c.bf16 %v1319_v15, %v1317_v44  ;;  %v2213_v50 = vpack.c.bf16 %v1323_v63, %v1321_v21  ;;  %v2852_v15 = vld [vmem:[%s6020_s8 + $0x18] sm:$0xff]  ;;  %v2853_v63 = vld [vmem:[%s6019_s7 + $0x48] sm:$0xff] }
 0x1db   :  { %v5342_v59 = vpop.eup %2775  ;;  %v2211_v12 = vpack.c.bf16 %v1318_v28, %v1316_v62  ;;  %v1459_v44 = vmul.f32 %v2851_v36, %v5332_v35  ;;  %v1461_v21 = vmul.f32 %v2852_v15, %v5332_v35  ;;  %v1325_v1 = vmul.f32 %v2853_v63, %v5303_v19  ;;  %v2854_v62 = vld [vmem:[%s6020_s8] sm:$0xff]  ;;  %v2856_v15 = vld [vmem:[%s6019_s7 + $0x58] sm:$0xff] }
 0x1dc   :  { %2210 = vmatprep.subr.bf16.mxu0 %v2209_v54  ;;  %v1458_v28 = vmul.f32 %v2854_v62, %v5342_v59  ;;  %v1460_v36 = vmul.f32 %v2855_v42, %v5342_v59  ;;  %v1327_v9 = vmul.f32 %v2856_v15, %v5303_v19  ;;  %v2857_v54 = vld [vmem:[%s6020_s8 + $0x28] sm:$0xff]  ;;  %v5375_v62 = vld [vmem:[%s6022_s3 + $0x70] sm:$0xff]  ;;  %v2858_v42 = vld [vmem:[%s6020_s8 + $0x38] sm:$0xff]  ;;  %v2215_v43 = vpack.c.bf16 %v1322_v23, %v1320_v2 }
 0x1dd   :  { %v1463_v63 = vmul.f32 %v2857_v54, %v5332_v35  ;;  %2212 = vmatpush1.bf16.msra.mxu0 %v2211_v12  ;;  %v2273_v0 = vpack.c.bf16 %v1461_v21, %v1459_v44  ;;  %v1465_v18 = vmul.f32 %v2858_v42, %v5332_v35  ;;  %v2859_v15 = vld [vmem:[%s6019_s7 + $0x40] sm:$0xff]  ;;  %v2860_v54 = vld [vmem:[%s6019_s7 + $0x50] sm:$0xff]  ;;  %v2866_v2 = vld [vmem:[%s6020_s8 + $0x58] sm:$0xff] }
 0x1de   :  { %v1324_v22 = vmul.f32 %v2859_v15, %v5305_v56  ;;  %v1326_v29 = vmul.f32 %v2860_v54, %v5305_v56  ;;  %2214 = vmatprep.subr.bf16.mxu0 %v2213_v50  ;;  %v2275_v12 = vpack.c.bf16 %v1460_v36, %v1458_v28  ;;  %v2861_v44 = vld [vmem:[%s6020_s8 + $0x20] sm:$0xff]  ;;  %v2862_v42 = vld [vmem:[%s6020_s8 + $0x30] sm:$0xff]  ;;  %v2863_v50 = vld [vmem:[%s6020_s8 + $0x48] sm:$0xff]  ;;  %v1551_v36 = vadd.f32 %v1550_v61, %v5375_v62 }
 0x1df   :  { %v1462_v21 = vmul.f32 %v2861_v44, %v5342_v59  ;;  %v1464_v15 = vmul.f32 %v2862_v42, %v5342_v59  ;;  %2274 = vmatprep.subr.bf16.mxu1 %v2273_v0  ;;  %v2277_v5 = vpack.c.bf16 %v1465_v18, %v1463_v63  ;;  %v1467_v28 = vmul.f32 %v2863_v50, %v5332_v35  ;;  %v2864_v44 = vld [vmem:[%s6019_s7 + $0x68] sm:$0xff]  ;;  %v2865_v18 = vld [vmem:[%s6019_s7 + $0x78] sm:$0xff]  ;;  %v2867_v63 = vld [vmem:[%s6019_s7 + $0x60] sm:$0xff] }
 0x1e0   :  { %2276 = vmatpush1.bf16.msra.mxu1 %v2275_v12  ;;  %v2217_v54 = vpack.c.bf16 %v1327_v9, %v1325_v1  ;;  %v1329_v48 = vmul.f32 %v2864_v44, %v5303_v19  ;;  %v1331_v0 = vmul.f32 %v2865_v18, %v5303_v19  ;;  %v1469_v61 = vmul.f32 %v2866_v2, %v5332_v35  ;;  %v5417_v23 = vld [vmem:[%s6022_s3 + $0x78] sm:$0xff]  ;;  %v2868_v42 = vld [vmem:[%s6020_s8 + $0x40] sm:$0xff]  ;;  %v2871_v50 = vld [vmem:[%s6020_s8 + $0x68] sm:$0xff] }
 0x1e1   :  { %2216 = vmatpush1.bf16.msra.mxu0 %v2215_v43  ;;  %2278 = vmatprep.subr.bf16.mxu1 %v2277_v5  ;;  %v2219_v9 = vpack.c.bf16 %v1326_v29, %v1324_v22  ;;  %v2279_v1 = vpack.c.bf16 %v1464_v15, %v1462_v21  ;;  %v1328_v12 = vmul.f32 %v2867_v63, %v5305_v56  ;;  %v2869_v5 = vld [vmem:[%s6020_s8 + $0x50] sm:$0xff]  ;;  %v2872_v44 = vld [vmem:[%s6020_s8 + $0x78] sm:$0xff]  ;;  %v2873_v2 = vld [vmem:[%s6019_s7 + $0x88] sm:$0xff] }
 0x1e2   :  { %2218 = vmatprep.subr.bf16.mxu0 %v2217_v54  ;;  %v1466_v43 = vmul.f32 %v2868_v42, %v5342_v59  ;;  %v1468_v29 = vmul.f32 %v2869_v5, %v5342_v59  ;;  %v2281_v22 = vpack.c.bf16 %v1469_v61, %v1467_v28  ;;  %v2870_v21 = vld [vmem:[%s6019_s7 + $0x70] sm:$0xff]  ;;  %v1471_v54 = vmul.f32 %v2871_v50, %v5332_v35  ;;  %v2874_v63 = vld [vmem:[%s6019_s7 + $0x98] sm:$0xff] }
 0x1e3   :  { %v1330_v15 = vmul.f32 %v2870_v21, %v5305_v56  ;;  %v1473_v18 = vmul.f32 %v2872_v44, %v5332_v35  ;;  %v2221_v28 = vpack.c.bf16 %v1331_v0, %v1329_v48  ;;  %v1333_v61 = vmul.f32 %v2873_v2, %v5303_v19  ;;  %v2875_v48 = vld [vmem:[%s6019_s7 + $0x80] sm:$0xff] }
 0x1e4   :  { %2280 = vmatpush1.bf16.msra.mxu1 %v2279_v1  ;;  %v1335_v42 = vmul.f32 %v2874_v63, %v5303_v19  ;;  %v1552_v5 = vadd.f32 %v1551_v36, %v5417_v23  ;;  %v1332_v0 = vmul.f32 %v2875_v48, %v5305_v56  ;;  %v2876_v1 = vld [vmem:[%s6019_s7 + $0x90] sm:$0xff]  ;;  %v2283_v50 = vpack.c.bf16 %v1468_v29, %v1466_v43  ;;  %v2877_v36 = vld [vmem:[%s6020_s8 + $0x60] sm:$0xff]  ;;  %v2879_v48 = vld [vmem:[%s6020_s8 + $0x88] sm:$0xff] }
 0x1e5   :  { %2220 = vmatpush1.bf16.msra.mxu0 %v2219_v9  ;;  %2282 = vmatprep.subr.bf16.mxu1 %v2281_v22  ;;  %v1334_v21 = vmul.f32 %v2876_v1, %v5305_v56  ;;  %v1470_v9 = vmul.f32 %v2877_v36, %v5342_v59  ;;  %v2878_v22 = vld [vmem:[%s6020_s8 + $0x70] sm:$0xff]  ;;  %v2223_v2 = vpack.c.bf16 %v1330_v15, %v1328_v12  ;;  %v2880_v29 = vld [vmem:[%s6020_s8 + $0x98] sm:$0xff]  ;;  %v2881_v36 = vld [vmem:[%s6019_s7 + $0xa8] sm:$0xff] }
 0x1e6   :  { %2222 = vmatprep.subr.bf16.mxu0 %v2221_v28  ;;  %v1472_v44 = vmul.f32 %v2878_v22, %v5342_v59  ;;  %v2285_v63 = vpack.c.bf16 %v1473_v18, %v1471_v54  ;;  %v1475_v43 = vmul.f32 %v2879_v48, %v5332_v35  ;;  %v1477_v28 = vmul.f32 %v2880_v29, %v5332_v35  ;;  %v2882_v15 = vld [vmem:[%s6019_s7 + $0xb8] sm:$0xff] }
 0x1e7   :  { %v2225_v1 = vpack.c.bf16 %v1335_v42, %v1333_v61  ;;  %v1337_v12 = vmul.f32 %v2881_v36, %v5303_v19  ;;  %v1339_v54 = vmul.f32 %v2882_v15, %v5303_v19  ;;  %v1553_v18 = vrot.slane %v1552_v5, 4  ;;  %v2883_v61 = vld [vmem:[%s6019_s7 + $0xa0] sm:$0xff]  ;;  %v2888_v36 = vld [vmem:[%s6020_s8 + $0xb8] sm:$0xff] }
 0x1e8   :  { %2284 = vmatpush1.bf16.msra.mxu1 %v2283_v50  ;;  %v2227_v22 = vpack.c.bf16 %v1334_v21, %v1332_v0  ;;  %v2287_v48 = vpack.c.bf16 %v1472_v44, %v1470_v9  ;;  %v1336_v42 = vmul.f32 %v2883_v61, %v5305_v56  ;;  %v2884_v50 = vld [vmem:[%s6020_s8 + $0x80] sm:$0xff]  ;;  %v2289_v21 = vpack.c.bf16 %v1477_v28, %v1475_v43  ;;  %v2886_v9 = vld [vmem:[%s6019_s7 + $0xb0] sm:$0xff]  ;;  %v2889_v28 = vld [vmem:[%s6019_s7 + $0xc8] sm:$0xff] }
 0x1e9   :  { %2224 = vmatpush1.bf16.msra.mxu0 %v2223_v2  ;;  %2286 = vmatprep.subr.bf16.mxu1 %v2285_v63  ;;  %v1474_v29 = vmul.f32 %v2884_v50, %v5342_v59  ;;  %v2885_v2 = vld [vmem:[%s6020_s8 + $0x90] sm:$0xff]  ;;  %v1338_v44 = vmul.f32 %v2886_v9, %v5305_v56  ;;  %v2887_v63 = vld [vmem:[%s6020_s8 + $0xa8] sm:$0xff]  ;;  %v1481_v15 = vmul.f32 %v2888_v36, %v5332_v35  ;;  %v2890_v50 = vld [vmem:[%s6019_s7 + $0xd8] sm:$0xff] }
 0x1ea   :  { %2226 = vmatprep.subr.bf16.mxu0 %v2225_v1  ;;  %v1476_v0 = vmul.f32 %v2885_v2, %v5342_v59  ;;  %v1479_v1 = vmul.f32 %v2887_v63, %v5332_v35  ;;  %v2229_v43 = vpack.c.bf16 %v1339_v54, %v1337_v12  ;;  %v1341_v61 = vmul.f32 %v2889_v28, %v5303_v19  ;;  %v2892_v54 = vld [vmem:[%s6019_s7 + $0xd0] sm:$0xff] }
 0x1eb   :  { %v1343_v2 = vmul.f32 %v2890_v50, %v5303_v19  ;;  %v1554_v9 = vadd.f32 %v1553_v18, %v1552_v5  ;;  %v1342_v63 = vmul.f32 %v2892_v54, %v5305_v56  ;;  %v2893_v5 = vld [vmem:[%s6020_s8 + $0xa0] sm:$0xff]  ;;  %v2231_v28 = vpack.c.bf16 %v1338_v44, %v1336_v42  ;;  %v2898_v44 = vld [vmem:[%s6019_s7 + $0xf8] sm:$0xff] }
 0x1ec   :  { %2288 = vmatpush1.bf16.msra.mxu1 %v2287_v48  ;;  %v2891_v48 = vld [vmem:[%s6019_s7 + $0xc0] sm:$0xff]  ;;  %v2291_v36 = vpack.c.bf16 %v1476_v0, %v1474_v29  ;;  %v1478_v18 = vmul.f32 %v2893_v5, %v5342_v59  ;;  %v2293_v50 = vpack.c.bf16 %v1481_v15, %v1479_v1  ;;  %v2896_v0 = vld [vmem:[%s6020_s8 + $0xd8] sm:$0xff]  ;;  %v2897_v5 = vld [vmem:[%s6019_s7 + $0xe8] sm:$0xff]  ;;  %v1347_v1 = vmul.f32 %v2898_v44, %v5303_v19 }
 0x1ed   :  { %2228 = vmatpush1.bf16.msra.mxu0 %v2227_v22  ;;  %2290 = vmatprep.subr.bf16.mxu1 %v2289_v21  ;;  %v1340_v12 = vmul.f32 %v2891_v48, %v5305_v56  ;;  %v2894_v22 = vld [vmem:[%s6020_s8 + $0xb0] sm:$0xff]  ;;  %v2895_v48 = vld [vmem:[%s6020_s8 + $0xc8] sm:$0xff]  ;;  %v2233_v54 = vpack.c.bf16 %v1343_v2, %v1341_v61  ;;  %v1345_v42 = vmul.f32 %v2897_v5, %v5303_v19  ;;  %v1555_v15 = vrot.slane %v1554_v9, 2  ;;  %v2899_v61 = vld [vmem:[%s6019_s7 + $0xe0] sm:$0xff] }
 0x1ee   :  { %2230 = vmatprep.subr.bf16.mxu0 %v2229_v43  ;;  %v1480_v21 = vmul.f32 %v2894_v22, %v5342_v59  ;;  %v1483_v29 = vmul.f32 %v2895_v48, %v5332_v35  ;;  %v1485_v43 = vmul.f32 %v2896_v0, %v5332_v35  ;;  %v1344_v2 = vmul.f32 %v2899_v61, %v5305_v56  ;;  %v2904_v5 = vld [vmem:[%s6020_s8 + $0xf8] sm:$0xff] }
 0x1ef   :  { %v2235_v22 = vpack.c.bf16 %v1342_v63, %v1340_v12  ;;  %v1489_v44 = vmul.f32 %v2904_v5, %v5332_v35  ;;  %v1351_v61 = vmul.f32 %v5303_v19, %v4681_v34 }
 0x1f0   :  { %2292 = vmatpush1.bf16.msra.mxu1 %v2291_v36  ;;  %v2295_v48 = vpack.c.bf16 %v1480_v21, %v1478_v18  ;;  %v2900_v36 = vld [vmem:[%s6020_s8 + $0xc0] sm:$0xff]  ;;  %v2297_v63 = vpack.c.bf16 %v1485_v43, %v1483_v29  ;;  %v2902_v18 = vld [vmem:[%s6019_s7 + $0xf0] sm:$0xff]  ;;  %v2237_v29 = vpack.c.bf16 %v1347_v1, %v1345_v42  ;;  %v1349_v43 = vmul.f32 %v5303_v19, %v4646_v24 }
 0x1f1   :  { %2232 = vmatpush1.bf16.msra.mxu0 %v2231_v28  ;;  %2294 = vmatprep.subr.bf16.mxu1 %v2293_v50  ;;  %v1482_v0 = vmul.f32 %v2900_v36, %v5342_v59  ;;  %v2901_v28 = vld [vmem:[%s6020_s8 + $0xd0] sm:$0xff]  ;;  %v1346_v21 = vmul.f32 %v2902_v18, %v5305_v56  ;;  %v2903_v50 = vld [vmem:[%s6020_s8 + $0xe8] sm:$0xff]  ;;  %v1556_v36 = vadd.f32 %v1555_v15, %v1554_v9  ;;  %v2906_v24 = vld [vmem:[%s6020_s8 + $0xe0] sm:$0xff] }
 0x1f2   :  { %2234 = vmatprep.subr.bf16.mxu0 %v2233_v54  ;;  %v1484_v12 = vmul.f32 %v2901_v28, %v5342_v59  ;;  %v1487_v54 = vmul.f32 %v2903_v50, %v5332_v35  ;;  %v2905_v28 = vld [vmem:[%s6019_s7 + $0x100] sm:$0xff]  ;;  %v1350_v50 = vmul.f32 %v5305_v56, %v4678_v51  ;;  %v1486_v34 = vmul.f32 %v2906_v24, %v5342_v59  ;;  %v2907_v9 = vld [vmem:[%s6020_s8 + $0xf0] sm:$0xff] }
 0x1f3   :  { %v1348_v18 = vmul.f32 %v2905_v28, %v5305_v56  ;;  %v1488_v1 = vmul.f32 %v2907_v9, %v5342_v59  ;;  %v2239_v15 = vpack.c.bf16 %v1346_v21, %v1344_v2  ;;  %v1493_v51 = vmul.f32 %v5332_v35, %v4708_v13  ;;  %v2908_v13 = vld [vmem:[%s6020_s8 + $0x100] sm:$0xff] }
 0x1f4   :  { %2296 = vmatpush1.bf16.msra.mxu1 %v2295_v48  ;;  %v2299_v42 = vpack.c.bf16 %v1484_v12, %v1482_v0  ;;  %v1491_v48 = vmul.f32 %v5332_v35, %v4673_v6  ;;  %v2241_v0 = vpack.c.bf16 %v1351_v61, %v1349_v43  ;;  %v1353_v12 = vmul.f32 %v5303_v19, %v4716_v49 }
 0x1f5   :  { %2236 = vmatpush1.bf16.msra.mxu0 %v2235_v22  ;;  %2298 = vmatprep.subr.bf16.mxu1 %v2297_v63  ;;  %v2301_v22 = vpack.c.bf16 %v1489_v44, %v1487_v54  ;;  %v1355_v63 = vmul.f32 %v5303_v19, %v4751_v10  ;;  %v1557_v5 = vrot.slane %v1556_v36, 1  ;;  %v2303_v2 = vpack.c.bf16 %v1488_v1, %v1486_v34 }
 0x1f6   :  { %2238 = vmatprep.subr.bf16.mxu0 %v2237_v29  ;;  %v2243_v29 = vpack.c.bf16 %v1350_v50, %v1348_v18  ;;  %v1352_v6 = vmul.f32 %v5305_v56, %v4713_v31  ;;  %v1490_v21 = vmul.f32 %v2908_v13, %v5342_v59  ;;  %v1492_v49 = vmul.f32 %v5342_v59, %v4705_v14  ;;  %v6506_v13 = vld [vmem:[#allocation19_spill] sm:$0xff] }
 0x1f7   :  { %v2305_v54 = vpack.c.bf16 %v1493_v51, %v1491_v48  ;;  %v1354_v10 = vmul.f32 %v5305_v56, %v4748_v25  ;;  %v1495_v44 = vmul.f32 %v5332_v35, %v4743_v30  ;;  %v1497_v43 = vmul.f32 %v5332_v35, %v4778_v46  ;;  %v6504_v51 = vld [vmem:[#allocation13_spill] sm:$0xff] }
 0x1f8   :  { %2300 = vmatpush1.bf16.msra.mxu1 %v2299_v42  ;;  %v2245_v31 = vpack.c.bf16 %v1355_v63, %v1353_v12  ;;  %v1357_v61 = vmul.f32 %v5303_v19, %v4786_v27  ;;  %v1359_v28 = vmul.f32 %v5303_v19, %v4821_v39  ;;  %v1558_v18 = vadd.f32 %v1557_v5, %v1556_v36 }
 0x1f9   :  { %2240 = vmatpush1.bf16.msra.mxu0 %v2239_v15  ;;  %2302 = vmatprep.subr.bf16.mxu1 %v2301_v22  ;;  %v1356_v14 = vmul.f32 %v5305_v56, %v4783_v40  ;;  %v1358_v30 = vmul.f32 %v5305_v56, %v4818_v57  ;;  %v2307_v25 = vpack.c.bf16 %v1492_v49, %v1490_v21  ;;  %v6507_v49 = vld [vmem:[#allocation14_spill] sm:$0xff] }
 0x1fa   :  { %2242 = vmatprep.subr.bf16.mxu0 %v2241_v0  ;;  %v1494_v46 = vmul.f32 %v5342_v59, %v4740_v3  ;;  %v1496_v27 = vmul.f32 %v5342_v59, %v4775_v11  ;;  %v2247_v50 = vpack.c.bf16 %v1354_v10, %v1352_v6  ;;  %v2309_v42 = vpack.c.bf16 %v1497_v43, %v1495_v44  ;;  %v6509_v43 = vld [vmem:[#allocation23_spill] sm:$0xff] }
 0x1fb   :  { %v1499_v39 = vmul.f32 %v5332_v35, %v4813_v37  ;;  %v1501_v36 = vmul.f32 %v5332_v35, %v4848_v7  ;;  %v2249_v40 = vpack.c.bf16 %v1359_v28, %v1357_v61  ;;  %v1361_v57 = vmul.f32 %v5303_v19, %v4856_v60  ;;  %v6510_v28 = vld [vmem:[#allocation26_spill] sm:$0xff] }
 0x1fc   :  { %2304 = vmatpush1.bf16.msra.mxu1 %v2303_v2  ;;  %v1363_v24 = vmul.f32 %v5303_v19, %v4894_v26  ;;  %v1559_v3 = vmax.f32 %v1558_v18, 1e-12  ;;  %v2251_v11 = vpack.c.bf16 %v1358_v30, %v1356_v14  ;;  %v2311_v34 = vpack.c.bf16 %v1496_v27, %v1494_v46  ;;  %v6511_v14 = vld [vmem:[#allocation31_spill] sm:$0xff] }
 0x1fd   :  { %2244 = vmatpush1.bf16.msra.mxu0 %v2243_v29  ;;  %2306 = vmatprep.subr.bf16.mxu1 %v2305_v54  ;;  %v1360_v37 = vmul.f32 %v5305_v56, %v4853_v32  ;;  %v1498_v7 = vmul.f32 %v5342_v59, %v4810_v52  ;;  %v1500_v9 = vmul.f32 %v5342_v59, %v4845_v45 }
 0x1fe   :  { %2246 = vmatprep.subr.bf16.mxu0 %v2245_v31  ;;  %v2313_v1 = vpack.c.bf16 %v1501_v36, %v1499_v39  ;;  %v1362_v60 = vmul.f32 %v5305_v56, %v4891_v20  ;;  %v1503_v26 = vmul.f32 %v5332_v35, %v4883_v8  ;;  %v1505_v15 = vmul.f32 %v5332_v35, %v4921_v16  ;;  %v6503_v16 = vld [vmem:[#allocation12_spill] sm:$0xff]  ;;  %v6515_v36 = vld [vmem:[#allocation22_spill] sm:$0xff] }
 0x1ff   :  { %v2253_v22 = vpack.c.bf16 %v1363_v24, %v1361_v57  ;;  %v1365_v32 = vmul.f32 %v5303_v19, %v4929_v55  ;;  %v1367_v52 = vmul.f32 %v5303_v19, %v4967_v53  ;;  %2777 = vrcp.f32 %v1559_v3  ;;  %v6505_v53 = vld [vmem:[#allocation15_spill] sm:$0xff]  ;;  %v6516_v3 = vld [vmem:[#allocation28_spill] sm:$0xff] }
 0x200   :  { %2308 = vmatpush1.bf16.msra.mxu1 %v2307_v25  ;;  %v1364_v45 = vmul.f32 %v5305_v56, %v4926_v4  ;;  %v1366_v8 = vmul.f32 %v5305_v56, %v4964_v47  ;;  %v2315_v20 = vpack.c.bf16 %v1500_v9, %v1498_v7  ;;  %v1502_v48 = vmul.f32 %v5342_v59, %v6503_v16  ;;  %v6512_v25 = vld [vmem:[#allocation25_spill] sm:$0xff]  ;;  %v6518_v9 = vld [vmem:[#allocation36_spill] sm:$0xff] }
 0x201   :  { %2248 = vmatpush1.bf16.msra.mxu0 %v2247_v50  ;;  %2310 = vmatprep.subr.bf16.mxu1 %v2309_v42  ;;  %v1504_v55 = vmul.f32 %v5342_v59, %v6504_v51  ;;  %v2255_v0 = vpack.c.bf16 %v1362_v60, %v1360_v37  ;;  %v2317_v12 = vpack.c.bf16 %v1505_v15, %v1503_v26  ;;  %v6514_v42 = vld [vmem:[#allocation20_spill] sm:$0xff]  ;;  %v6519_v60 = vld [vmem:[#allocation41_spill] sm:$0xff] }
 0x202   :  { %2250 = vmatprep.subr.bf16.mxu0 %v2249_v40  ;;  %v1507_v63 = vmul.f32 %v5332_v35, %v6505_v53  ;;  %v1509_v5 = vmul.f32 %v5332_v35, %v4994_v33  ;;  %v2257_v4 = vpack.c.bf16 %v1367_v52, %v1365_v32  ;;  %v1369_v47 = vmul.f32 %v5303_v19, %v5012_v17  ;;  %v6508_v33 = vld [vmem:[#allocation16_spill] sm:$0xff]  ;;  %v6521_v52 = vld [vmem:[#allocation18_spill] sm:$0xff] }
 0x203   :  { %v1371_v29 = vmul.f32 %v5303_v19, %v5054_v38  ;;  %v2259_v2 = vpack.c.bf16 %v1366_v8, %v1364_v45  ;;  %v2319_v6 = vpack.c.bf16 %v1504_v55, %v1502_v48  ;;  %v1368_v21 = vmul.f32 %v5305_v56, %v6506_v13  ;;  %v6523_v48 = vld [vmem:[#allocation27_spill] sm:$0xff]  ;;  %v6524_v55 = vld [vmem:[#allocation32_spill] sm:$0xff] }
 0x204   :  { %2312 = vmatpush1.bf16.msra.mxu1 %v2311_v34  ;;  %v1506_v54 = vmul.f32 %v5342_v59, %v6507_v49  ;;  %v1508_v10 = vmul.f32 %v5342_v59, %v6508_v33  ;;  %v2321_v44 = vpack.c.bf16 %v1509_v5, %v1507_v63  ;;  %v1370_v17 = vmul.f32 %v5305_v56, %v5051_v41  ;;  %v6513_v41 = vld [vmem:[#allocation30_spill] sm:$0xff]  ;;  %v6517_v34 = vld [vmem:[#allocation33_spill] sm:$0xff]  ;;  %v6529_v13 = vld [vmem:[#allocation24_spill] sm:$0xff] }
 0x205   :  { %2252 = vmatpush1.bf16.msra.mxu0 %v2251_v11  ;;  %2314 = vmatprep.subr.bf16.mxu1 %v2313_v1  ;;  %v1511_v38 = vmul.f32 %v5332_v35, %v5041_v58  ;;  %v1513_v31 = vmul.f32 %v5332_v35, %v6509_v43  ;;  %v2261_v61 = vpack.c.bf16 %v1371_v29, %v1369_v47  ;;  %v6526_v63 = vld [vmem:[#allocation38_spill] sm:$0xff] }
 0x206   :  { %2254 = vmatprep.subr.bf16.mxu0 %v2253_v22  ;;  %v1373_v18 = vmul.f32 %v5303_v19, %v6510_v28  ;;  %v1375_v30 = vmul.f32 %v5303_v19, %v6511_v14  ;;  %v1372_v46 = vmul.f32 %v5305_v56, %v6512_v25  ;;  %v1374_v27 = vmul.f32 %v5305_v56, %v6513_v41  ;;  %v6520_v22 = vld [vmem:[#allocation17_spill] sm:$0xff]  ;;  %v1582_v25 = vld [vmem:[%s6021_s0 + $0x28] sm:$0xff]  ;;  %v1585_v41 = vld [vmem:[%s6021_s0 + $0x40] sm:$0xff] }
 0x207   :  { %v2323_v50 = vpack.c.bf16 %v1508_v10, %v1506_v54  ;;  %v1510_v39 = vmul.f32 %v5342_v59, %v6514_v42  ;;  %v1512_v40 = vmul.f32 %v5342_v59, %v6515_v36  ;;  %v2263_v57 = vpack.c.bf16 %v1370_v17, %v1368_v21  ;;  %v6531_v10 = vld [vmem:[#allocation42_spill] sm:$0xff]  ;;  %v6532_v28 = vld [vmem:[#allocation29_spill] sm:$0xff] }
 0x208   :  { %2316 = vmatpush1.bf16.msra.mxu1 %v2315_v20  ;;  %v2325_v24 = vpack.c.bf16 %v1513_v31, %v1511_v38  ;;  %v1515_v11 = vmul.f32 %v5332_v35, %v6516_v3  ;;  %v1517_v37 = vmul.f32 %v5332_v35, %v6517_v34  ;;  %v2265_v7 = vpack.c.bf16 %v1375_v30, %v1373_v18  ;;  %v6522_v20 = vld [vmem:[#allocation35_spill] sm:$0xff]  ;;  %v1577_v38 = vld [vmem:[%s6021_s0] sm:$0xff]  ;;  %v1583_v31 = vld [vmem:[%s6021_s0 + $0x30] sm:$0xff] }
 0x209   :  { %2256 = vmatpush1.bf16.msra.mxu0 %v2255_v0  ;;  %2318 = vmatprep.subr.bf16.mxu1 %v2317_v12  ;;  %v5684_v58 = vpop.eup %2777  ;;  %v1377_v1 = vmul.f32 %v5303_v19, %v6518_v9  ;;  %v1379_v26 = vmul.f32 %v5303_v19, %v6519_v60  ;;  %v2267_v15 = vpack.c.bf16 %v1374_v27, %v1372_v46  ;;  %v6525_v12 = vld [vmem:[#allocation40_spill] sm:$0xff]  ;;  %v1588_v46 = vld [vmem:[%s6021_s0 + $0x58] sm:$0xff]  ;;  %v6536_v3 = vld [vmem:[#allocation2_spill] sm:$0xff] }
 0x20a   :  { %2258 = vmatprep.subr.bf16.mxu0 %v2257_v4  ;;  %v1561_v32 = vmul.f32 %v5684_v58, %v6520_v22  ;;  %v1562_v45 = vmul.f32 %v5684_v58, %v6521_v52  ;;  %v2327_v8 = vpack.c.bf16 %v1512_v40, %v1510_v39  ;;  %v1376_v16 = vmul.f32 %v5305_v56, %v6522_v20  ;;  %v6527_v4 = vld [vmem:[#allocation43_spill] sm:$0xff]  ;;  %v1579_v30 = vld [vmem:[%s6021_s0 + $0x10] sm:$0xff]  ;;  %v1584_v40 = vld [vmem:[%s6021_s0 + $0x38] sm:$0xff] }
 0x20b   :  { %v1514_v51 = vmul.f32 %v5342_v59, %v6523_v48  ;;  %v1516_v19 = vmul.f32 %v5342_v59, %v6524_v55  ;;  %v2329_v0 = vpack.c.bf16 %v1517_v37, %v1515_v11  ;;  %v1378_v53 = vmul.f32 %v5305_v56, %v6525_v12  ;;  %v6530_v56 = vld [vmem:[#allocation37_spill] sm:$0xff]  ;;  %v6535_v39 = vld [vmem:[#allocation44_spill] sm:$0xff]  ;;  %v6538_v22 = vld [vmem:[#allocation3_spill] sm:$0xff] }
 0x20c   :  { %2320 = vmatpush1.bf16.msra.mxu1 %v2319_v6  ;;  %v1519_v5 = vmul.f32 %v5332_v35, %v6526_v63  ;;  %v1521_v47 = vmul.f32 %v5332_v35, %v6527_v4  ;;  %v2269_v29 = vpack.c.bf16 %v1379_v26, %v1377_v1  ;;  %v1564_v21 = vmul.f32 %v5684_v58, %v6529_v13  ;;  %v6537_v34 = vld [vmem:[#allocation4_spill] sm:$0xff]  ;;  %v1589_v1 = vld [vmem:[%s6021_s0 + $0x60] sm:$0xff]  ;;  %v1592_v60 = vld [vmem:[%s6021_s0 + $0x78] sm:$0xff] }
 0x20d   :  { %2260 = vmatpush1.bf16.msra.mxu0 %v2259_v2  ;;  %2322 = vmatprep.subr.bf16.mxu1 %v2321_v44  ;;  %v6528_v2 = vld [vmem:[#allocation21_spill] sm:$0xff]  ;;  %v2331_v49 = vpack.c.bf16 %v1516_v19, %v1514_v51  ;;  %v2337_v54 = vpack.c.bf16 %v1562_v45, %v1561_v32  ;;  %v1518_v33 = vmul.f32 %v5342_v59, %v6530_v56  ;;  %v1595_v26 = vld [vmem:[%s6021_s0 + $0x90] sm:$0xff]  ;;  %v1581_v20 = vld [vmem:[%s6021_s0 + $0x20] sm:$0xff] }
 0x20e   :  { %2262 = vmatprep.subr.bf16.mxu0 %v2261_v61  ;;  %v1563_v6 = vmul.f32 %v5684_v58, %v6528_v2  ;;  %v1520_v44 = vmul.f32 %v5342_v59, %v6531_v10  ;;  %v2271_v35 = vpack.c.bf16 %v1378_v53, %v1376_v16  ;;  %v2333_v17 = vpack.c.bf16 %v1521_v47, %v1519_v5  ;;  %v6533_v59 = vld [vmem:[#allocation34_spill] sm:$0xff]  ;;  %v6539_v52 = vld [vmem:[#allocation45_spill] sm:$0xff]  ;;  %v1591_v16 = vld [vmem:[%s6021_s0 + $0x70] sm:$0xff] }
 0x20f   :  { %v1565_v18 = vmul.f32 %v5684_v58, %v6532_v28  ;;  %v1566_v14 = vmul.f32 %v5684_v58, %v6533_v59  ;;  %v1568_v36 = vmul.f32 %v5684_v58, %v6535_v39  ;;  %v1569_v11 = vmul.f32 %v5684_v58, %v6536_v3  ;;  %v6540_v51 = vld [vmem:[#allocation46_spill] sm:$0xff]  ;;  %v1586_v4 = vld [vmem:[%s6021_s0 + $0x48] sm:$0xff] }
 0x210   :  { %2324 = vmatpush1.bf16.msra.mxu1 %v2323_v50  ;;  %v2335_v43 = vpack.c.bf16 %v1520_v44, %v1518_v33  ;;  %v2341_v61 = vpack.c.bf16 %v1564_v21, %v1563_v6  ;;  %v6534_v50 = vld [vmem:[#allocation39_spill] sm:$0xff]  ;;  %v1570_v37 = vmul.f32 %v5684_v58, %v6537_v34  ;;  %v1571_v32 = vmul.f32 %v5684_v58, %v6538_v22  ;;  %v6541_v19 = vld [vmem:[#allocation6_spill] sm:$0xff] }
 0x211   :  { %2264 = vmatpush1.bf16.msra.mxu0 %v2263_v57  ;;  %2326 = vmatprep.subr.bf16.mxu1 %v2325_v24  ;;  %v2345_v27 = vpack.c.bf16 %v1566_v14, %v1565_v18  ;;  %v1567_v42 = vmul.f32 %v5684_v58, %v6534_v50  ;;  %v1587_v57 = vld [vmem:[%s6021_s0 + $0x50] sm:$0xff]  ;;  %v1593_v24 = vld [vmem:[%s6021_s0 + $0x80] sm:$0xff]  ;;  %v1572_v45 = vmul.f32 %v5684_v58, %v6539_v52 }
 0x212   :  { %2266 = vmatprep.subr.bf16.mxu0 %v2265_v7  ;;  %v1590_v7 = vld [vmem:[%s6021_s0 + $0x68] sm:$0xff]  ;;  %v1573_v55 = vmul.f32 %v5684_v58, %v6540_v51  ;;  %v1575_v53 = vmul.f32 %v5684_v58, %v5375_v62  ;;  %v1576_v63 = vmul.f32 %v5684_v58, %v5417_v23  ;;  %v1596_v62 = vld [vmem:[%s6021_s0 + $0x98] sm:$0xff] }
 0x213   :  { %v2349_v9 = vpack.c.bf16 %v1568_v36, %v1567_v42  ;;  %v2357_v48 = vpack.c.bf16 %v1572_v45, %v1571_v32 }
 0x214   :  { %2328 = vmatpush1.bf16.msra.mxu1 %v2327_v8  ;;  %v1594_v8 = vld [vmem:[%s6021_s0 + $0x88] sm:$0xff]  ;;  %v2365_v5 = vpack.c.bf16 %v1576_v63, %v1575_v53 }
 0x215   :  { %2268 = vmatpush1.bf16.msra.mxu0 %v2267_v15  ;;  %2330 = vmatprep.subr.bf16.mxu1 %v2329_v0  ;;  %v2353_v15 = vpack.c.bf16 %v1570_v37, %v1569_v11  ;;  %v1574_v0 = vmul.f32 %v5684_v58, %v6541_v19 }
 0x216   :  { %2270 = vmatprep.subr.bf16.mxu0 %v2269_v29 }
 0x217   :  { %v2361_v12 = vpack.c.bf16 %v1574_v0, %v1573_v55 }
 0x218   :  { %2332 = vmatpush1.bf16.msra.mxu1 %v2331_v49 }
 0x219   :  { %2272 = vmatpush1.bf16.msra.mxu0 %v2271_v35  ;;  %2334 = vmatprep.subr.bf16.mxu1 %v2333_v17 }
 0x21a   :  { %2338 = vmatprep.subr.bf16.mxu0 %v2337_v54 }
 0x21c   :  { %1662 = vmatmul.mubr.f32.vlgmr.msra.gmra.mrb[0].mxu0 %v1577_v38  ;;  %2336 = vmatpush1.bf16.msra.mxu1 %v2335_v43 }
 0x21d   :  { %2340 = vmatpush3.bf16.msra.mxu0 %v2337_v54  ;;  %1667 = vmatprep.mubr.f32.mxu0 %v1583_v31 }
 0x21e   :  { %2369 = vmatprep.subr.bf16.mxu1 %v2337_v54  ;;  %2342 = vmatprep.subr.bf16.mxu0 %v2341_v61 }
 0x21f   :  { %1751 = vmatmul.mubr.f32.vlgmr.msra.gmra.mrb[0].mxu1 %v1579_v30 }
 0x220   :  { %1668 = vmatmul.mubr.f32.gmra.mrb[2].mxu0 %v1582_v25  ;;  %2377 = vmatpush3.bf16.msra.mxu1 %v2337_v54 }
 0x221   :  { %2344 = vmatpush3.bf16.msra.mxu0 %v2341_v61  ;;  %1673 = vmatprep.mubr.f32.mxu0 %v1588_v46 }
 0x222   :  { %1756 = vmatprep.mubr.f32.mxu1 %v1585_v41  ;;  %2370 = vmatprep.subr.bf16.mxu1 %v2341_v61 }
 0x223   :  { %1757 = vmatmul.mubr.f32.gmra.mrb[2].mxu1 %v1584_v40  ;;  %2346 = vmatprep.subr.bf16.mxu0 %v2345_v27 }
 0x224   :  { %1674 = vmatmul.mubr.f32.gmra.mrb[4].mxu0 %v1587_v57  ;;  %2378 = vmatpush3.bf16.msra.mxu1 %v2341_v61 }
 0x225   :  { %2348 = vmatpush3.bf16.msra.mxu0 %v2345_v27  ;;  %1679 = vmatprep.mubr.f32.mxu0 %v1593_v24 }
 0x226   :  { %1762 = vmatprep.mubr.f32.mxu1 %v1590_v7  ;;  %2371 = vmatprep.subr.bf16.mxu1 %v2345_v27 }
 0x227   :  { %1763 = vmatmul.mubr.f32.gmra.mrb[4].mxu1 %v1589_v1  ;;  %2350 = vmatprep.subr.bf16.mxu0 %v2349_v9 }
 0x228   :  { %1680 = vmatmul.mubr.f32.gmra.mrb[6].mxu0 %v1592_v60  ;;  %2379 = vmatpush3.bf16.msra.mxu1 %v2345_v27 }
 0x229   :  { %2352 = vmatpush3.bf16.msra.mxu0 %v2349_v9  ;;  %1768 = vmatprep.mubr.f32.mxu1 %v1595_v26 }
 0x22a   :  { %2372 = vmatprep.subr.bf16.mxu1 %v2349_v9  ;;  %2354 = vmatprep.subr.bf16.mxu0 %v2353_v15 }
 0x22b   :  { %1769 = vmatmul.mubr.f32.gmra.mrb[6].mxu1 %v1594_v8  ;;  %2203 = vmatprep.mubr.f32.mxu0 %v1581_v20 }
 0x22c   :  { %2380 = vmatpush3.bf16.msra.mxu1 %v2349_v9  ;;  %2206 = vmatprep.mubr.f32.mxu1 %v1591_v16 }
 0x22d   :  { %2356 = vmatpush3.bf16.msra.mxu0 %v2353_v15  ;;  %2373 = vmatprep.subr.bf16.mxu1 %v2353_v15 }
 0x22e   :  { %2358 = vmatprep.subr.bf16.mxu0 %v2357_v48 }
 0x230   :  { %2381 = vmatpush3.bf16.msra.mxu1 %v2353_v15 }
 0x231   :  { %2360 = vmatpush3.bf16.msra.mxu0 %v2357_v48  ;;  %2374 = vmatprep.subr.bf16.mxu1 %v2357_v48 }
 0x232   :  { %2362 = vmatprep.subr.bf16.mxu0 %v2361_v12 }
 0x234   :  { %2382 = vmatpush3.bf16.msra.mxu1 %v2357_v48 }
 0x235   :  { %2364 = vmatpush3.bf16.msra.mxu0 %v2361_v12  ;;  %2375 = vmatprep.subr.bf16.mxu1 %v2361_v12 }
 0x236   :  { %2366 = vmatprep.subr.bf16.mxu0 %v2365_v5 }
 0x238   :  { %2383 = vmatpush3.bf16.msra.mxu1 %v2361_v12 }
 0x239   :  { %2368 = vmatpush3.bf16.msra.mxu0 %v2365_v5  ;;  %2376 = vmatprep.subr.bf16.mxu1 %v2365_v5 }
 0x23c   :  { %2204 = vmatmul.mubr.f32.vlgmr.msra.gmra.mrb[8].mxu0 %v1586_v4  ;;  %2384 = vmatpush3.bf16.msra.mxu1 %v2365_v5 }
 0x23f   :  { %2207 = vmatmul.mubr.f32.vlgmr.msra.gmra.mrb[8].mxu1 %v1596_v62 }
 0x2ef   :  { %v1663_v23 = vpop.f32.mrb[0].mxu0 }
 0x2f0   :  { %v1665_v58 = vpop.f32.mrb[1].mxu0 }
 0x2f2   :  { %v5800_v47 = vpop.f32.mrb[0].mxu1 }
 0x2f3   :  { %v1669_v29 = vpop.f32.mrb[2].mxu0  ;;  %v5802_v2 = vpop.f32.mrb[1].mxu1 }
 0x2f4   :  { %v1860_v6 = vadd.f32 %v1669_v29, %v1663_v23  ;;  %v1671_v13 = vpop.f32.mrb[3].mxu0 }
 0x2f5   :  { %v1867_v21 = vadd.f32 %v1671_v13, %v1665_v58 }
 0x2f6   :  { %v1861_v49 = vrot.slane %v1860_v6, 4  ;;  %v5804_v54 = vpop.f32.mrb[2].mxu1 }
 0x2f7   :  { %v1868_v56 = vrot.slane %v1867_v21, 4  ;;  %v1969_v33 = vadd.f32 %v5804_v54, %v5800_v47  ;;  %v5808_v10 = vpop.f32.mrb[3].mxu1  ;;  %v5810_v44 = vpop.f32.mrb[4].mxu0 }
 0x2f8   :  { %v1862_v35 = vadd.f32 %v1861_v49, %v1860_v6  ;;  %v1976_v17 = vadd.f32 %v5808_v10, %v5802_v2  ;;  %v5814_v38 = vpop.f32.mrb[5].mxu0 }
 0x2f9   :  { %v1869_v43 = vadd.f32 %v1868_v56, %v1867_v21  ;;  %v1970_v31 = vrot.slane %v1969_v33, 4 }
 0x2fa   :  { %v1863_v61 = vrot.slane %v1862_v35, 2  ;;  %v1977_v28 = vrot.slane %v1976_v17, 4  ;;  %v5816_v18 = vpop.f32.mrb[4].mxu1 }
 0x2fb   :  { %v1870_v59 = vrot.slane %v1869_v43, 2  ;;  %v1971_v14 = vadd.f32 %v1970_v31, %v1969_v33  ;;  %v5818_v30 = vpop.f32.mrb[6].mxu0  ;;  %v5820_v25 = vpop.f32.mrb[5].mxu1 }
 0x2fc   :  { %v1864_v46 = vadd.f32 %v1863_v61, %v1862_v35  ;;  %v1978_v41 = vadd.f32 %v1977_v28, %v1976_v17  ;;  %v1874_v27 = vadd.f32 %v5818_v30, %v5810_v44  ;;  %v5824_v50 = vpop.f32.mrb[7].mxu0 }
 0x2fd   :  { %v1871_v42 = vadd.f32 %v1870_v59, %v1869_v43  ;;  %v1972_v39 = vrot.slane %v1971_v14, 2  ;;  %v1881_v36 = vadd.f32 %v5824_v50, %v5814_v38 }
 0x2fe   :  { %v1865_v40 = vrot.slane %v1864_v46, 1  ;;  %v1979_v57 = vrot.slane %v1978_v41, 2  ;;  %v1875_v24 = vrot.slane %v1874_v27, 4  ;;  %v5828_v3 = vpop.f32.mrb[6].mxu1 }
 0x2ff   :  { %v1872_v11 = vrot.slane %v1871_v42, 1  ;;  %v1973_v34 = vadd.f32 %v1972_v39, %v1971_v14  ;;  %v1882_v37 = vrot.slane %v1881_v36, 4  ;;  %v1983_v7 = vadd.f32 %v5828_v3, %v5816_v18  ;;  %v5832_v9 = vpop.f32.mrb[7].mxu1 }
 0x300   :  { %v1866_v1 = vadd.f32 %v1865_v40, %v1864_v46  ;;  %v1980_v60 = vadd.f32 %v1979_v57, %v1978_v41  ;;  %v1876_v26 = vadd.f32 %v1875_v24, %v1874_v27  ;;  %v5836_v15 = vadd.f32 %v5832_v9, %v5820_v25 }
 0x301   :  { %v1873_v22 = vadd.f32 %v1872_v11, %v1871_v42  ;;  %v1974_v32 = vrot.slane %v1973_v34, 1  ;;  %v1883_v52 = vadd.f32 %v1882_v37, %v1881_v36  ;;  %v1984_v45 = vrot.slane %v1983_v7, 4 }
 0x302   :  { %v1889_v8 = vmul.f32 0.0625, %v1866_v1  ;;  %v1981_v20 = vrot.slane %v1980_v60, 1  ;;  %v1877_v16 = vrot.slane %v1876_v26, 2  ;;  %v1991_v48 = vrot.slane %v5836_v15, 4 }
 0x303   :  { %v1890_v51 = vmul.f32 0.0625, %v1873_v22  ;;  %v1975_v55 = vadd.f32 %v1974_v32, %v1973_v34  ;;  %v1884_v19 = vrot.slane %v1883_v52, 2  ;;  %v1985_v0 = vadd.f32 %v1984_v45, %v1983_v7 }
 0x304   :  { %v5839_v12 = vsub.f32 %v1663_v23, %v1889_v8  ;;  %v5841_v53 = vsub.f32 %v1669_v29, %v1889_v8  ;;  %v1982_v63 = vadd.f32 %v1981_v20, %v1980_v60  ;;  %v1878_v5 = vadd.f32 %v1877_v16, %v1876_v26 }
 0x305   :  { %v5843_v4 = vsub.f32 %v1665_v58, %v1890_v51  ;;  %v5845_v62 = vsub.f32 %v1671_v13, %v1890_v51  ;;  %v1997_v6 = vmul.f32 0.0625, %v1975_v55  ;;  %v1885_v21 = vadd.f32 %v1884_v19, %v1883_v52 }
 0x306   :  { %v1901_v49 = vmul.f32 %v5839_v12, %v5839_v12  ;;  %v1903_v56 = vmul.f32 %v5841_v53, %v5841_v53  ;;  %v1998_v33 = vmul.f32 0.0625, %v1982_v63  ;;  %v1879_v35 = vrot.slane %v1878_v5, 1 }
 0x307   :  { %v1902_v23 = vmul.f32 %v5843_v4, %v5843_v4  ;;  %v1904_v29 = vmul.f32 %v5845_v62, %v5845_v62  ;;  %v5856_v58 = vsub.f32 %v5800_v47, %v1997_v6  ;;  %v5859_v13 = vsub.f32 %v5804_v54, %v1997_v6 }
 0x308   :  { %v1909_v17 = vadd.f32 %v1903_v56, %v1901_v49  ;;  %v5862_v43 = vsub.f32 %v5802_v2, %v1998_v33  ;;  %v5865_v31 = vsub.f32 %v5808_v10, %v1998_v33  ;;  %v1880_v61 = vadd.f32 %v1879_v35, %v1878_v5 }
 0x309   :  { %v1916_v28 = vadd.f32 %v1904_v29, %v1902_v23  ;;  %v2009_v59 = vmul.f32 %v5856_v58, %v5856_v58  ;;  %v2011_v14 = vmul.f32 %v5859_v13, %v5859_v13  ;;  %v1886_v47 = vrot.slane %v1885_v21, 1 }
 0x30a   :  { %v1910_v46 = vrot.slane %v1909_v17, 4  ;;  %v2010_v54 = vmul.f32 %v5862_v43, %v5862_v43  ;;  %v2012_v2 = vmul.f32 %v5865_v31, %v5865_v31  ;;  %v1891_v41 = vmul.f32 0.0625, %v1880_v61 }
 0x30b   :  { %v1917_v27 = vrot.slane %v1916_v28, 4  ;;  %v2017_v10 = vadd.f32 %v2011_v14, %v2009_v59  ;;  %v1887_v42 = vadd.f32 %v1886_v47, %v1885_v21  ;;  %v1986_v39 = vrot.slane %v1985_v0, 2 }
 0x30c   :  { %v1911_v36 = vadd.f32 %v1910_v46, %v1909_v17  ;;  %v2024_v40 = vadd.f32 %v2012_v2, %v2010_v54  ;;  %v5876_v57 = vsub.f32 %v5810_v44, %v1891_v41  ;;  %v5879_v24 = vsub.f32 %v5818_v30, %v1891_v41 }
 0x30d   :  { %v1918_v11 = vadd.f32 %v1917_v27, %v1916_v28  ;;  %v2018_v34 = vrot.slane %v2017_v10, 4  ;;  %v1892_v37 = vmul.f32 0.0625, %v1887_v42  ;;  %v1987_v7 = vadd.f32 %v1986_v39, %v1985_v0 }
 0x30e   :  { %v1912_v1 = vrot.slane %v1911_v36, 2  ;;  %v2025_v60 = vrot.slane %v2024_v40, 4  ;;  %v1905_v26 = vmul.f32 %v5876_v57, %v5876_v57  ;;  %v1907_v22 = vmul.f32 %v5879_v24, %v5879_v24 }
 0x30f   :  { %v1919_v32 = vrot.slane %v1918_v11, 2  ;;  %v2019_v52 = vadd.f32 %v2018_v34, %v2017_v10  ;;  %v5886_v44 = vsub.f32 %v5814_v38, %v1892_v37  ;;  %v5889_v30 = vsub.f32 %v5824_v50, %v1892_v37  ;;  %v5891_v45 = vpop.f32.mrb[8].mxu0 }
 0x310   :  { %v1913_v8 = vadd.f32 %v1912_v1, %v1911_v36  ;;  %v2026_v20 = vadd.f32 %v2025_v60, %v2024_v40  ;;  %v1923_v16 = vadd.f32 %v1907_v22, %v1905_v26  ;;  %v1988_v51 = vrot.slane %v1987_v7, 1  ;;  %v5893_v55 = vpop.f32.mrb[9].mxu0 }
 0x311   :  { %v1920_v19 = vadd.f32 %v1919_v32, %v1918_v11  ;;  %v2020_v0 = vrot.slane %v2019_v52, 2  ;;  %v1906_v63 = vmul.f32 %v5886_v44, %v5886_v44  ;;  %v1908_v38 = vmul.f32 %v5889_v30, %v5889_v30 }
 0x312   :  { %v1914_v5 = vrot.slane %v1913_v8, 1  ;;  %v2027_v6 = vrot.slane %v2026_v20, 2  ;;  %v1924_v50 = vrot.slane %v1923_v16, 4  ;;  %v1989_v21 = vadd.f32 %v1988_v51, %v1987_v7  ;;  %v5899_v49 = vpop.f32.mrb[8].mxu1 }
 0x313   :  { %v1921_v56 = vrot.slane %v1920_v19, 1  ;;  %v2021_v33 = vadd.f32 %v2020_v0, %v2019_v52  ;;  %v1930_v35 = vadd.f32 %v1908_v38, %v1906_v63  ;;  %v1992_v23 = vadd.f32 %v1991_v48, %v5836_v15  ;;  %v5904_v29 = vpop.f32.mrb[9].mxu1 }
 0x314   :  { %v1915_v17 = vadd.f32 %v1914_v5, %v1913_v8  ;;  %v2028_v61 = vadd.f32 %v2027_v6, %v2026_v20  ;;  %v1925_v28 = vadd.f32 %v1924_v50, %v1923_v16  ;;  %v1999_v59 = vmul.f32 0.0625, %v1989_v21 }
 0x315   :  { %v1922_v14 = vadd.f32 %v1921_v56, %v1920_v19  ;;  %v2022_v47 = vrot.slane %v2021_v33, 1  ;;  %v1931_v46 = vrot.slane %v1930_v35, 4  ;;  %v1993_v54 = vrot.slane %v1992_v23, 2 }
 0x316   :  { %v1937_v2 = vmul.f32 0.06666667, %v1915_v17  ;;  %v2029_v41 = vrot.slane %v2028_v61, 1  ;;  %v1926_v27 = vrot.slane %v1925_v28, 2  ;;  %v5907_v10 = vsub.f32 %v5816_v18, %v1999_v59 }
 0x317   :  { %v1938_v42 = vmul.f32 0.06666667, %v1922_v14  ;;  %v2023_v39 = vadd.f32 %v2022_v47, %v2021_v33  ;;  %v1932_v36 = vadd.f32 %v1931_v46, %v1930_v35  ;;  %v5910_v15 = vsub.f32 %v5828_v3, %v1999_v59 }
 0x318   :  { %2779 = vrsqrt.f32 %v1937_v2  ;;  %v2030_v48 = vadd.f32 %v2029_v41, %v2028_v61  ;;  %v1927_v40 = vadd.f32 %v1926_v27, %v1925_v28  ;;  %v2013_v1 = vmul.f32 %v5907_v10, %v5907_v10 }
 0x319   :  { %2781 = vrsqrt.f32 %v1938_v42  ;;  %v2045_v11 = vmul.f32 0.06666667, %v2023_v39  ;;  %v1933_v34 = vrot.slane %v1932_v36, 2  ;;  %v2015_v18 = vmul.f32 %v5910_v15, %v5910_v15 }
 0x31a   :  { %v2046_v37 = vmul.f32 0.06666667, %v2030_v48  ;;  %v1928_v7 = vrot.slane %v1927_v40, 1  ;;  %v1994_v26 = vadd.f32 %v1993_v54, %v1992_v23  ;;  %v2077_v8 = vadd.f32 %v5891_v45, %v5893_v55 }
 0x31b   :  { %2783 = vrsqrt.f32 %v2045_v11  ;;  %v1934_v60 = vadd.f32 %v1933_v34, %v1932_v36  ;;  %v2031_v22 = vadd.f32 %v2015_v18, %v2013_v1  ;;  %v2084_v20 = vadd.f32 %v5899_v49, %v5904_v29 }
 0x31c   :  { %2785 = vrsqrt.f32 %v2046_v37  ;;  %v1929_v3 = vadd.f32 %v1928_v7, %v1927_v40  ;;  %v1995_v52 = vrot.slane %v1994_v26, 1  ;;  %v2078_v63 = vrot.slane %v2077_v8, 4 }
 0x31d   :  { %v1935_v32 = vrot.slane %v1934_v60, 1  ;;  %v2032_v51 = vrot.slane %v2031_v22, 4  ;;  %v2085_v38 = vrot.slane %v2084_v20, 4  ;;  %vm1941_vm0 = vcmp.gt.f32.partialorder %v1937_v2, 0.0 }
 0x31e   :  { %v1939_v16 = vmul.f32 0.06666667, %v1929_v3  ;;  %v1996_v0 = vadd.f32 %v1995_v52, %v1994_v26  ;;  %vm1942_vm1 = vcmp.gt.f32.partialorder %v1938_v42, 0.0  ;;  %vm2049_vm2 = vcmp.gt.f32.partialorder %v2045_v11, 0.0 }
 0x31f   :  { %v1936_v19 = vadd.f32 %v1935_v32, %v1934_v60  ;;  %v2033_v5 = vadd.f32 %v2032_v51, %v2031_v22  ;;  %v2079_v33 = vadd.f32 %v2078_v63, %v2077_v8  ;;  %v2086_v35 = vadd.f32 %v2085_v38, %v2084_v20 }
 0x320   :  { %2787 = vrsqrt.f32 %v1939_v16  ;;  %v2000_v50 = vmul.f32 0.0625, %v1996_v0  ;;  %vm2050_vm3 = vcmp.gt.f32.partialorder %v2046_v37, 0.0  ;;  %vm1943_vm4 = vcmp.gt.f32.partialorder %v1939_v16, 0.0 }
 0x321   :  { %v5920_v6 = vmul.f32 0.06666667, %v1936_v19  ;;  %v2034_v56 = vrot.slane %v2033_v5, 2 }
 0x322   :  { %v2780_v21 = vpop.eup %2779  ;;  %v5924_v61 = vsub.f32 %v5820_v25, %v2000_v50  ;;  %v5932_v41 = vsub.f32 %v5832_v9, %v2000_v50 }
 0x323   :  { %v2782_v23 = vpop.eup %2781  ;;  %v1949_v17 = vsel %vm1941_vm0, %v2780_v21, 0.0  ;;  %2789 = vrsqrt.f32 %v5920_v6  ;;  %v2035_v47 = vadd.f32 %v2034_v56, %v2033_v5  ;;  %vm1944_vm5 = vcmp.gt.f32.partialorder %v5920_v6, 0.0 }
 0x324   :  { %v1953_v28 = vmul.f32 %v1949_v17, %v5839_v12  ;;  %v1955_v59 = vmul.f32 %v1949_v17, %v5841_v53  ;;  %v1950_v14 = vsel %vm1942_vm1, %v2782_v23, 0.0  ;;  %v2014_v27 = vmul.f32 %v5924_v61, %v5924_v61 }
 0x325   :  { %v2784_v46 = vpop.eup %2783  ;;  %v1954_v54 = vmul.f32 %v1950_v14, %v5843_v4  ;;  %v1956_v2 = vmul.f32 %v1950_v14, %v5845_v62  ;;  %v2036_v53 = vrot.slane %v2035_v47, 1  ;;  %v2080_v4 = vrot.slane %v2079_v33, 2 }
 0x326   :  { %v2786_v25 = vpop.eup %2785  ;;  %1961 = vst [vmem:[%s6023_s4] sm:$0xff] %v1953_v28  ;;  %1963 = vst [vmem:[%s6023_s4 + $0x10] sm:$0xff] %v1955_v59  ;;  %v2057_v12 = vsel %vm2049_vm2, %v2784_v46, 0.0  ;;  %v2087_v62 = vrot.slane %v2086_v35, 2  ;;  %v2016_v36 = vmul.f32 %v5932_v41, %v5932_v41 }
 0x327   :  { %1962 = vst [vmem:[%s6023_s4 + $0x8] sm:$0xff] %v1954_v54  ;;  %1964 = vst [vmem:[%s6023_s4 + $0x18] sm:$0xff] %v1956_v2  ;;  %v2061_v9 = vmul.f32 %v2057_v12, %v5856_v58  ;;  %v2063_v42 = vmul.f32 %v2057_v12, %v5859_v13  ;;  %v2058_v39 = vsel %vm2050_vm3, %v2786_v25, 0.0  ;;  %v2037_v11 = vadd.f32 %v2036_v53, %v2035_v47 }
 0x328   :  { %v2062_v48 = vmul.f32 %v2058_v39, %v5862_v43  ;;  %v2064_v40 = vmul.f32 %v2058_v39, %v5865_v31  ;;  %v2081_v34 = vadd.f32 %v2080_v4, %v2079_v33  ;;  %v2038_v58 = vadd.f32 %v2016_v36, %v2014_v27 }
 0x329   :  { %2069 = vst [vmem:[%s6024_s5] sm:$0xff] %v2061_v9  ;;  %2071 = vst [vmem:[%s6024_s5 + $0x10] sm:$0xff] %v2063_v42  ;;  %v2088_v13 = vadd.f32 %v2087_v62, %v2086_v35  ;;  %v2047_v43 = vmul.f32 0.06666667, %v2037_v11 }
 0x32a   :  { %v2788_v37 = vpop.eup %2787  ;;  %2070 = vst [vmem:[%s6024_s5 + $0x8] sm:$0xff] %v2062_v48  ;;  %2072 = vst [vmem:[%s6024_s5 + $0x18] sm:$0xff] %v2064_v40  ;;  %v2082_v31 = vrot.slane %v2081_v34, 1  ;;  %v2039_v1 = vrot.slane %v2038_v58, 4 }
 0x32b   :  { %v1951_v7 = vsel %vm1943_vm4, %v2788_v37, 0.0  ;;  %v2089_v18 = vrot.slane %v2088_v13, 1  ;;  %2791 = vrsqrt.f32 %v2047_v43  ;;  %vm2051_vm6 = vcmp.gt.f32.partialorder %v2047_v43, 0.0 }
 0x32c   :  { %v1957_v60 = vmul.f32 %v1951_v7, %v5876_v57  ;;  %v1959_v26 = vmul.f32 %v1951_v7, %v5879_v24  ;;  %v2040_v22 = vadd.f32 %v2039_v1, %v2038_v58  ;;  %v2083_v32 = vadd.f32 %v2082_v31, %v2081_v34 }
 0x32d   :  { %v2790_v3 = vpop.eup %2789  ;;  %v2090_v52 = vadd.f32 %v2089_v18, %v2088_v13 }
 0x32e   :  { %1965 = vst [vmem:[%s6023_s4 + $0x20] sm:$0xff] %v1957_v60  ;;  %1967 = vst [vmem:[%s6023_s4 + $0x30] sm:$0xff] %v1959_v26  ;;  %v1952_v8 = vsel %vm1944_vm5, %v2790_v3, 0.0  ;;  %v2041_v20 = vrot.slane %v2040_v22, 2  ;;  %v2091_v16 = vmul.f32 0.0625, %v2083_v32 }
 0x32f   :  { %v1958_v57 = vmul.f32 %v1952_v8, %v5886_v44  ;;  %v1960_v24 = vmul.f32 %v1952_v8, %v5889_v30  ;;  %v2092_v51 = vmul.f32 0.0625, %v2090_v52 }
 0x330   :  { %v2042_v19 = vadd.f32 %v2041_v20, %v2040_v22  ;;  %v2093_v0 = vsub.f32 %v5893_v55, %v2091_v16  ;;  %v2094_v63 = vsub.f32 %v5891_v45, %v2091_v16 }
 0x331   :  { %1966 = vst [vmem:[%s6023_s4 + $0x28] sm:$0xff] %v1958_v57  ;;  %1968 = vst [vmem:[%s6023_s4 + $0x38] sm:$0xff] %v1960_v24  ;;  %v2095_v44 = vsub.f32 %v5904_v29, %v2092_v51  ;;  %v2096_v30 = vsub.f32 %v5899_v49, %v2092_v51 }
 0x332   :  { %v2043_v38 = vrot.slane %v2042_v19, 1  ;;  %v2097_v5 = vmul.f32 %v2093_v0, %v2093_v0  ;;  %v2098_v6 = vmul.f32 %v2094_v63, %v2094_v63 }
 0x333   :  { %v2099_v50 = vmul.f32 %v2095_v44, %v2095_v44  ;;  %v2100_v21 = vmul.f32 %v2096_v30, %v2096_v30 }
 0x334   :  { %v2044_v56 = vadd.f32 %v2043_v38, %v2042_v19  ;;  %v2101_v33 = vadd.f32 %v2098_v6, %v2097_v5 }
 0x335   :  { %v2792_v35 = vpop.eup %2791  ;;  %v2108_v23 = vadd.f32 %v2100_v21, %v2099_v50 }
 0x336   :  { %v2059_v17 = vsel %vm2051_vm6, %v2792_v35, 0.0  ;;  %v2048_v28 = vmul.f32 0.06666667, %v2044_v56  ;;  %v2102_v59 = vrot.slane %v2101_v33, 4 }
 0x337   :  { %v2065_v55 = vmul.f32 %v2059_v17, %v5907_v10  ;;  %v2067_v45 = vmul.f32 %v2059_v17, %v5910_v15  ;;  %v2109_v29 = vrot.slane %v2108_v23, 4 }
 0x338   :  { %2793 = vrsqrt.f32 %v2048_v28  ;;  %v2103_v49 = vadd.f32 %v2102_v59, %v2101_v33  ;;  %vm2052_vm7 = vcmp.gt.f32.partialorder %v2048_v28, 0.0 }
 0x339   :  { %2073 = vst [vmem:[%s6024_s5 + $0x20] sm:$0xff] %v2065_v55  ;;  %2075 = vst [vmem:[%s6024_s5 + $0x30] sm:$0xff] %v2067_v45  ;;  %v2110_v14 = vadd.f32 %v2109_v29, %v2108_v23 }
 0x33a   :  { %v2104_v47 = vrot.slane %v2103_v49, 2 }
 0x33b   :  { %v2111_v46 = vrot.slane %v2110_v14, 2 }
 0x33c   :  { %v2105_v54 = vadd.f32 %v2104_v47, %v2103_v49 }
 0x33d   :  { %v2112_v2 = vadd.f32 %v2111_v46, %v2110_v14 }
 0x33e   :  { %v2106_v27 = vrot.slane %v2105_v54, 1 }
 0x33f   :  { %v2113_v10 = vrot.slane %v2112_v2, 1 }
 0x340   :  { %v2107_v25 = vadd.f32 %v2106_v27, %v2105_v54 }
 0x341   :  { %v2114_v15 = vadd.f32 %v2113_v10, %v2112_v2 }
 0x342   :  { %v2794_v12 = vpop.eup %2793  ;;  %v2115_v53 = vmul.f32 0.06666667, %v2107_v25 }
 0x343   :  { %v2060_v4 = vsel %vm2052_vm7, %v2794_v12, 0.0  ;;  %v2116_v62 = vmul.f32 0.06666667, %v2114_v15 }
 0x344   :  { %v2066_v9 = vmul.f32 %v2060_v4, %v5924_v61  ;;  %v2068_v42 = vmul.f32 %v2060_v4, %v5932_v41  ;;  %2795 = vrsqrt.f32 %v2115_v53  ;;  %vm2117_vm8 = vcmp.gt.f32.partialorder %v2115_v53, 0.0 }
 0x345   :  { %2797 = vrsqrt.f32 %v2116_v62  ;;  %vm2118_vm9 = vcmp.gt.f32.partialorder %v2116_v62, 0.0 }
 0x346   :  { %2074 = vst [vmem:[%s6024_s5 + $0x28] sm:$0xff] %v2066_v9  ;;  %2076 = vst [vmem:[%s6024_s5 + $0x38] sm:$0xff] %v2068_v42 }
 0x34e   :  { %v2796_v39 = vpop.eup %2795 }
 0x34f   :  { %v2798_v36 = vpop.eup %2797  ;;  %v2121_v48 = vsel %vm2117_vm8, %v2796_v39, 0.0 }
 0x350   :  { %v2123_v40 = vmul.f32 %v2121_v48, %v2093_v0  ;;  %v2124_v11 = vmul.f32 %v2121_v48, %v2094_v63  ;;  %v2122_v61 = vsel %vm2118_vm9, %v2798_v36, 0.0 }
 0x351   :  { %v2125_v34 = vmul.f32 %v2122_v61, %v2095_v44  ;;  %v2126_v41 = vmul.f32 %v2122_v61, %v2096_v30 }
 0x352   :  { %2127 = vst [vmem:[%s6025_s6] sm:$0xff] %v2123_v40  ;;  %2128 = vst [vmem:[%s6025_s6 + $0x8] sm:$0xff] %v2124_v11 }
 0x353   :  { %2129 = vst [vmem:[%s6025_s6 + $0x10] sm:$0xff] %v2125_v34  ;;  %2130 = vst [vmem:[%s6025_s6 + $0x18] sm:$0xff] %v2126_v41 }

</bundles_post_ra>
